<compile_context>
chip_gen: v6e
topology: v6e:2x2x1
jax: 0.10.0
libtpu: 0.0.40
codegen_flags: <defaults>
</compile_context>

<pallas_src>
import functools

import jax
import jax.numpy as jnp
from jax.experimental import pallas as pl
from jax.experimental.pallas import tpu as pltpu


# ------------------------------- helpers ----------------------------------- #

@functools.lru_cache(maxsize=None)
def _vmem_capacity_bytes():
    try:
        return int(getattr(pltpu.get_tpu_info(), "vmem_capacity_bytes", 0)) or (64 << 20)
    except Exception:
        return 64 << 20


def _vmem_limit_bytes():
    # Generous scoped-VMEM limit (<= 3/4 of physical) so big fused kernels don't hit the
    # conservative per-chip defaults (16 MiB on v5e).
    return int(_vmem_capacity_bytes() * 3 // 4)


def _row_tile(m, bytes_per_row):
    """Largest row tile (multiple of 16, bf16-friendly) dividing m whose activation blocks
    stay within ~1/8 of physical VMEM (weights are budgeted via vmem_limit_bytes)."""
    budget = _vmem_capacity_bytes() // 8
    for t in (512, 256, 128, 64, 32, 16):
        if m % t == 0 and t * bytes_per_row <= budget:
            return t
    return m


def _hidden_tile(hd):
    """Hidden-dim chunk for the MLP kernel: bounds the h1 intermediate and keeps the
    per-chunk fc1/fc2 weight blocks small enough for v5e/v7x VMEM."""
    for t in (1024, 768, 512, 384, 256, 128):
        if hd % t == 0:
            return t
    return hd


def _q_tile(npad):
    """Query-row tile for the attention kernel (second parallel grid axis)."""
    if npad <= 128:
        return npad
    best = 16
    for t in range(16, 129, 8):
        if npad % t == 0:
            best = t
    return best


def _gelu_erf(x):
    # Exact (erf-based) GELU, matching nn.GELU: erf via Abramowitz&Stegun 7.1.26 rational
    # approximation (|err| <= 1.5e-7); only exp is needed (EUP slot), guaranteed to lower.
    # TODO(synk): on v5e consider tanh-approx GELU if the f32 polynomial saturates the VALU.
    z = x * 0.7071067811865476
    az = jnp.abs(z)
    t = 1.0 / (1.0 + 0.3275911 * az)
    poly = ((((1.061405429 * t - 1.453152027) * t + 1.421413741) * t
             - 0.284496736) * t + 0.254829592) * t
    erf_abs = 1.0 - poly * jnp.exp(-az * az)
    erf = jnp.where(z >= 0, erf_abs, -erf_abs)
    return 0.5 * x * (1.0 + erf)


# ----------------------------- Pallas kernels ------------------------------ #

def _matmul_bias_kernel(x_ref, w_ref, b_ref, o_ref):
    # f32 activations DMA'd in, cast to bf16 in-kernel (no wrapper-level astype pass).
    acc = jnp.dot(x_ref[...].astype(jnp.bfloat16), w_ref[...],
                  preferred_element_type=jnp.float32)
    o_ref[...] = acc + b_ref[...]


def matmul_bias(x, w, b):
    """x: (M, K) f32, w: (K, N) bf16, b: (1, N) f32 -> (M, N) f32."""
    M, K = x.shape
    N = w.shape[1]
    tm = _row_tile(M, 2 * (K + N) * 4)
    ce = pl.CostEstimate(flops=int(2 * M * K * N), transcendentals=0,
                         bytes_accessed=int(x.nbytes + w.nbytes + M * N * 4))
    return pl.pallas_call(
        _matmul_bias_kernel,
        out_shape=jax.ShapeDtypeStruct((M, N), jnp.float32),
        grid=(M // tm,),
        in_specs=[
            pl.BlockSpec((tm, K), lambda i: (i, 0)),
            pl.BlockSpec((K, N), lambda i: (0, 0)),
            pl.BlockSpec((1, N), lambda i: (0, 0)),
        ],
        out_specs=pl.BlockSpec((tm, N), lambda i: (i, 0)),
        compiler_params=pltpu.CompilerParams(
            dimension_semantics=("parallel",),
            vmem_limit_bytes=_vmem_limit_bytes()),
        cost_estimate=ce,
    )(x, w, b)


def _ln_matmul_kernel(x_ref, g_ref, b_ref, w_ref, bias_ref, o_ref, *, eps):
    # Fused LayerNorm (f32) -> bf16 matmul -> + bias.
    x = x_ref[...].astype(jnp.float32)
    mean = jnp.mean(x, axis=-1, keepdims=True)
    var = jnp.mean((x - mean) ** 2, axis=-1, keepdims=True)
    h = ((x - mean) * jax.lax.rsqrt(var + eps) * g_ref[...] + b_ref[...]).astype(jnp.bfloat16)
    acc = jnp.dot(h, w_ref[...], preferred_element_type=jnp.float32)
    o_ref[...] = (acc + bias_ref[...]).astype(o_ref.dtype)


def ln_matmul_bias(x, g, b, w, bias, *, out_dtype=jnp.bfloat16, eps=1e-6):
    """LN(x) @ w + bias.  x: (M, D), w: (D, N) bf16, g/b: (1, D) f32, bias: (1, N) f32."""
    M, D = x.shape
    N = w.shape[1]
    in_b = x.dtype.itemsize
    out_b = jnp.dtype(out_dtype).itemsize
    tm = _row_tile(M, 2 * D * in_b + 2 * N * out_b + N * 4 + D * 4)
    ce = pl.CostEstimate(
        flops=int(2 * M * D * N + 10 * M * D),
        transcendentals=int(M),
        bytes_accessed=int(x.nbytes + w.nbytes + bias.nbytes + M * N * out_b))
    return pl.pallas_call(
        functools.partial(_ln_matmul_kernel, eps=eps),
        out_shape=jax.ShapeDtypeStruct((M, N), out_dtype),
        grid=(M // tm,),
        in_specs=[
            pl.BlockSpec((tm, D), lambda i: (i, 0)),
            pl.BlockSpec((1, D), lambda i: (0, 0)),
            pl.BlockSpec((1, D), lambda i: (0, 0)),
            pl.BlockSpec((D, N), lambda i: (0, 0)),
            pl.BlockSpec((1, N), lambda i: (0, 0)),
        ],
        out_specs=pl.BlockSpec((tm, N), lambda i: (i, 0)),
        compiler_params=pltpu.CompilerParams(
            dimension_semantics=("parallel",),
            vmem_limit_bytes=_vmem_limit_bytes()),
        cost_estimate=ce,
    )(x, g, b, w, bias)


def _attn_proj_kernel(qkv_q_ref, qkv_kv_ref, res_ref, pw_ref, pb_ref, o_ref,
                      attn_ref, *, num_heads, n_valid, scale):
    # Multi-head attention for one (batch, query-row-tile) + single full-depth output
    # projection + residual add.  Per-head outputs land in a VMEM scratch (no register
    # accumulator to spill), then one (tq, D) @ (D, D) MXU matmul does the projection.
    tq, d3 = qkv_q_ref.shape
    d = d3 // 3
    hd = d // num_heads
    npad = qkv_kv_ref.shape[0]

    # Mask padded key positions (columns >= n_valid).
    col = jax.lax.broadcasted_iota(jnp.int32, (tq, npad), 1)
    kmask = col < n_valid

    # TODO(synk): per-head q/k/v slices are hd-lane (sub-128) windows; a head-major padded
    # QKV layout would make these vreg-aligned views.
    for h in range(num_heads):
        q = qkv_q_ref[:, h * hd:(h + 1) * hd]                    # (tq, hd)   bf16
        k = qkv_kv_ref[:, d + h * hd:d + (h + 1) * hd]           # (npad, hd) bf16
        v = qkv_kv_ref[:, 2 * d + h * hd:2 * d + (h + 1) * hd]   # (npad, hd) bf16
        s = jax.lax.dot_general(q, k, (((1,), (1,)), ((), ())),
                                preferred_element_type=jnp.float32) * scale
        s = jnp.where(kmask, s, -1e30)
        s = s - jnp.max(s, axis=-1, keepdims=True)
        p = jnp.exp(s)
        denom = jnp.sum(p, axis=-1, keepdims=True)
        o_h = jnp.dot(p.astype(jnp.bfloat16), v, preferred_element_type=jnp.float32)
        # Deferred softmax normalization: scale the (tq, hd) head output, not (tq, npad) probs.
        o_h = o_h * pl.reciprocal(denom, approx=True)
        attn_ref[:, h * hd:(h + 1) * hd] = o_h.astype(jnp.bfloat16)

    proj = jnp.dot(attn_ref[...], pw_ref[...], preferred_element_type=jnp.float32)
    o_ref[...] = (res_ref[...].astype(jnp.float32) + proj + pb_ref[...]).astype(o_ref.dtype)


def attention_proj_residual(qkv, x_res, proj_w, proj_b, *, num_heads, n_valid, npad, scale):
    """qkv: (B*Npad, 3D) bf16, x_res: (B*Npad, D) bf16 -> x_res + proj(attn)  (bf16)."""
    M, D3 = qkv.shape
    D = D3 // 3
    B = M // npad
    hd = D // num_heads
    tq = _q_tile(npad)
    nq = npad // tq
    ce = pl.CostEstimate(
        flops=int(B * (num_heads * 4 * npad * npad * hd + 2 * npad * D * D)),
        transcendentals=int(B * num_heads * npad * npad),
        bytes_accessed=int(qkv.nbytes * (1 + nq) + 2 * x_res.nbytes + proj_w.nbytes))
    return pl.pallas_call(
        functools.partial(_attn_proj_kernel, num_heads=num_heads,
                          n_valid=n_valid, scale=scale),
        out_shape=jax.ShapeDtypeStruct((M, D), jnp.bfloat16),
        grid=(B, nq),
        in_specs=[
            pl.BlockSpec((tq, D3), lambda b, q: (b * nq + q, 0)),   # query rows of QKV
            pl.BlockSpec((npad, D3), lambda b, q: (b, 0)),          # full K/V rows of QKV
            pl.BlockSpec((tq, D), lambda b, q: (b * nq + q, 0)),    # residual
            pl.BlockSpec((D, D), lambda b, q: (0, 0)),              # proj weight
            pl.BlockSpec((1, D), lambda b, q: (0, 0)),              # proj bias
        ],
        out_specs=pl.BlockSpec((tq, D), lambda b, q: (b * nq + q, 0)),
        scratch_shapes=[pltpu.VMEM((tq, D), jnp.bfloat16)],
        compiler_params=pltpu.CompilerParams(
            dimension_semantics=("parallel", "parallel"),
            vmem_limit_bytes=_vmem_limit_bytes()),
        cost_estimate=ce,
    )(qkv, qkv, x_res, proj_w, proj_b)


def _mlp_kernel(x_ref, g_ref, b_ref, w1_ref, b1_ref, w2_ref, b2_ref, o_ref,
                h_ref, acc_ref, *, eps):
    # Fused LN2 -> fc1 -> GELU -> fc2 -> + residual, tiled over the hidden dim (axis 1 of the
    # grid, "arbitrary").  LN'd activations and the f32 accumulator live in VMEM scratch.
    k = pl.program_id(1)

    @pl.when(k == 0)
    def _():
        x = x_ref[...].astype(jnp.float32)
        mean = jnp.mean(x, axis=-1, keepdims=True)
        var = jnp.mean((x - mean) ** 2, axis=-1, keepdims=True)
        h_ref[...] = ((x - mean) * jax.lax.rsqrt(var + eps) * g_ref[...]
                      + b_ref[...]).astype(jnp.bfloat16)
        acc_ref[...] = x + b2_ref[...]          # residual + fc2 bias

    h1 = jnp.dot(h_ref[...], w1_ref[...], preferred_element_type=jnp.float32) + b1_ref[...]
    h1 = _gelu_erf(h1)
    acc_ref[...] += jnp.dot(h1.astype(jnp.bfloat16), w2_ref[...],
                            preferred_element_type=jnp.float32)

    @pl.when(k == pl.num_programs(1) - 1)
    def _():
        o_ref[...] = acc_ref[...].astype(o_ref.dtype)


def mlp_residual(x, g, b, w1, b1, w2, b2, eps=1e-6):
    """x + fc2(GELU(fc1(LN2(x)))).  x: (M, D) bf16 -> (M, D) bf16."""
    M, D = x.shape
    Hd = w1.shape[1]
    th = _hidden_tile(Hd)
    tm = _row_tile(M, 4 * D * x.dtype.itemsize + D * 2 + D * 4 + 2 * th * 4)
    ce = pl.CostEstimate(
        flops=int(4 * M * D * Hd + 12 * M * Hd),
        transcendentals=int(M * Hd),
        bytes_accessed=int(2 * x.nbytes + w1.nbytes + w2.nbytes))
    return pl.pallas_call(
        functools.partial(_mlp_kernel, eps=eps),
        out_shape=jax.ShapeDtypeStruct((M, D), jnp.bfloat16),
        grid=(M // tm, Hd // th),
        in_specs=[
            pl.BlockSpec((tm, D), lambda i, k: (i, 0)),
            pl.BlockSpec((1, D), lambda i, k: (0, 0)),
            pl.BlockSpec((1, D), lambda i, k: (0, 0)),
            pl.BlockSpec((D, th), lambda i, k: (0, k)),
            pl.BlockSpec((1, th), lambda i, k: (0, k)),
            pl.BlockSpec((th, D), lambda i, k: (k, 0)),
            pl.BlockSpec((1, D), lambda i, k: (0, 0)),
        ],
        out_specs=pl.BlockSpec((tm, D), lambda i, k: (i, 0)),
        scratch_shapes=[pltpu.VMEM((tm, D), jnp.bfloat16),   # LN'd activations
                        pltpu.VMEM((tm, D), jnp.float32)],   # f32 accumulator
        compiler_params=pltpu.CompilerParams(
            dimension_semantics=("parallel", "arbitrary"),
            vmem_limit_bytes=_vmem_limit_bytes()),
        cost_estimate=ce,
    )(x, g, b, w1, b1, w2, b2)


# --------------------------- parameter construction ------------------------ #

def init_vit_params(key, *, img_size, patch, in_chans, embed_dim, depth,
                    num_heads, mlp_ratio, num_classes):
    """Matmul weights stored bf16 once at init (no per-forward casts); LN params / biases f32.
    Head weight pre-padded to a 128-lane multiple for lane-dense stores."""
    del num_heads  # structural; passed statically to forward
    n_patches = (img_size // patch) ** 2
    hidden = int(embed_dim * mlp_ratio)
    keys = iter(jax.random.split(key, 8 + depth * 8))

    def wbf16(k, shape, scale=0.02):
        return (scale * jax.random.normal(k, shape)).astype(jnp.bfloat16)

    def wf32(k, shape, scale=0.02):
        return (scale * jax.random.normal(k, shape)).astype(jnp.float32)

    nc_pad = max(128, -(-num_classes // 128) * 128)
    head_w = jnp.zeros((embed_dim, nc_pad), jnp.bfloat16)
    head_w = head_w.at[:, :num_classes].set(wbf16(next(keys), (embed_dim, num_classes)))

    params = {
        # Conv2d(in_chans, D, kernel=P, stride=P) == matmul with weight (C*P*P, D).
        "patch_w": wbf16(next(keys), (in_chans * patch * patch, embed_dim)),
        "patch_b": jnp.zeros((1, embed_dim), jnp.float32),
        "cls_token": wf32(next(keys), (1, 1, embed_dim)),
        "pos_embed": wf32(next(keys), (1, n_patches + 1, embed_dim)),
        "ln_g": jnp.ones((1, embed_dim), jnp.float32),
        "ln_b": jnp.zeros((1, embed_dim), jnp.float32),
        "head_w": head_w,
        "head_b": jnp.zeros((1, nc_pad), jnp.float32),
        "blocks": [],
    }
    for _ in range(depth):
        params["blocks"].append({
            "ln1_g": jnp.ones((1, embed_dim), jnp.float32),
            "ln1_b": jnp.zeros((1, embed_dim), jnp.float32),
            "qkv_w": wbf16(next(keys), (embed_dim, 3 * embed_dim)),
            "qkv_b": jnp.zeros((1, 3 * embed_dim), jnp.float32),
            "proj_w": wbf16(next(keys), (embed_dim, embed_dim)),
            "proj_b": jnp.zeros((1, embed_dim), jnp.float32),
            "ln2_g": jnp.ones((1, embed_dim), jnp.float32),
            "ln2_b": jnp.zeros((1, embed_dim), jnp.float32),
            "fc1_w": wbf16(next(keys), (embed_dim, hidden)),
            "fc1_b": jnp.zeros((1, hidden), jnp.float32),
            "fc2_w": wbf16(next(keys), (hidden, embed_dim)),
            "fc2_b": jnp.zeros((1, embed_dim), jnp.float32),
        })
    return params


# ------------------------------- forward pass ------------------------------ #

@functools.partial(jax.jit, static_argnames=("patch", "num_heads", "num_classes"))
def insect_model_forward(params, image, *, patch, num_heads, num_classes):
    """image: NCHW float32 (B, C, H, W) -> logits (B, num_classes)."""
    B, C, H, W = image.shape
    P = patch
    D = params["pos_embed"].shape[-1]
    nH, nW = H // P, W // P
    n_patches = nH * nW

    # Patch embedding: stride-P conv == im2col + Pallas matmul (bf16 cast happens in-kernel).
    # TODO(synk): fold the NCHW->patch gather into the matmul kernel's index_map to drop
    # this extra XLA transpose pass at 224x224 scale.
    patches = image.reshape(B, C, nH, P, nW, P).transpose(0, 2, 4, 1, 3, 5)
    patches = patches.reshape(B * n_patches, C * P * P)
    x = matmul_bias(patches, params["patch_w"], params["patch_b"])      # (B*np, D) f32
    x = x.reshape(B, n_patches, D)

    # cls token + positional embedding (tiny elementwise glue), then bf16 residual stream.
    cls = jnp.broadcast_to(params["cls_token"], (B, 1, D))
    x = jnp.concatenate([cls, x], axis=1) + params["pos_embed"]         # (B, N1, D) f32
    N1 = x.shape[1]

    # Pad tokens to a multiple of 16 (bf16 sublane tile); padded keys masked in attention.
    Npad = -(-N1 // 16) * 16
    x = jnp.pad(x, ((0, 0), (0, Npad - N1), (0, 0)))
    hd = D // num_heads
    scale = hd ** -0.5

    xf = x.reshape(B * Npad, D).astype(jnp.bfloat16)                    # bf16 residual stream
    for blk in params["blocks"]:
        # ---- attention sub-block: x = x + proj(attn(LN1(x))) ---- (2 fused kernels)
        qkv = ln_matmul_bias(xf, blk["ln1_g"], blk["ln1_b"],
                             blk["qkv_w"], blk["qkv_b"],
                             out_dtype=jnp.bfloat16)                    # (B*Npad, 3D) bf16
        xf = attention_proj_residual(qkv, xf, blk["proj_w"], blk["proj_b"],
                                     num_heads=num_heads, n_valid=N1,
                                     npad=Npad, scale=scale)

        # ---- MLP sub-block: x = x + fc2(GELU(fc1(LN2(x)))) ---- (1 fused kernel)
        xf = mlp_residual(xf, blk["ln2_g"], blk["ln2_b"],
                          blk["fc1_w"], blk["fc1_b"],
                          blk["fc2_w"], blk["fc2_b"])

    # Final LayerNorm is per-token and only the cls token feeds the head, so LN just the cls
    # rows, fused with the (pre-padded, lane-dense) head matmul.
    cls_tok = xf.reshape(B, Npad, D)[:, 0, :]                           # (B, D) bf16
    logits = ln_matmul_bias(cls_tok, params["ln_g"], params["ln_b"],
                            params["head_w"], params["head_b"],
                            out_dtype=jnp.float32)                      # (B, nc_pad)
    return logits[:, :num_classes]


# ----------------------------------- main ----------------------------------- #

if __name__ == "__main__":
    # Scaled-down ViT config (same architecture family as vit_base_patch16_224):
    # img 32x32, patch 16 -> 4 patches + cls = 5 tokens (padded to 16), embed 128,
    # depth 2, heads 4, mlp_ratio 4.
    key = jax.random.PRNGKey(0)
    pkey, xkey = jax.random.split(key)

    num_classes = 10
    params = init_vit_params(
        pkey, img_size=32, patch=16, in_chans=3, embed_dim=128,
        depth=2, num_heads=4, mlp_ratio=4.0, num_classes=num_classes,
    )

    image = jax.random.normal(xkey, (2, 3, 32, 32), dtype=jnp.float32)  # NCHW, like PyTorch

    logits = insect_model_forward(params, image, patch=16, num_heads=4,
                                  num_classes=num_classes)
    logits = jax.block_until_ready(logits)
    assert logits.shape == (2, num_classes), logits.shape
    assert bool(jnp.all(jnp.isfinite(logits)))
    print("KERNEL_OK")
</pallas_src>

<mosaic_0001>
module attributes {stable_mosaic.version = 11 : i64} {
  func.func @_matmul_bias_kernel(%arg0: i32, %arg1: memref<8x768xf32, #tpu.memory_space<vmem>>, %arg2: memref<768x128xbf16, #tpu.memory_space<vmem>>, %arg3: memref<1x128xf32, #tpu.memory_space<vmem>>, %arg4: memref<8x128xf32, #tpu.memory_space<vmem>>) attributes {dimension_semantics = [#tpu.dimension_semantics<parallel>], iteration_bounds = array<i64: 1>, scalar_prefetch = 0 : i64, scratch_operands = 0 : i64, tpu.core_type = #tpu.core_type<tc>, window_params = [{transform_indices = @transform_0, window_bounds = array<i64: 8, 768>}, {pipeline_mode = #tpu.pipeline_mode<synchronous>, transform_indices = @transform_1, window_bounds = array<i64: 768, 128>}, {pipeline_mode = #tpu.pipeline_mode<synchronous>, transform_indices = @transform_2, window_bounds = array<i64: 1, 128>}, {transform_indices = @transform_3, window_bounds = array<i64: 8, 128>}]} {
    %c0 = arith.constant 0 : index
    %c0_0 = arith.constant 0 : index
    %0 = vector.load %arg1[%c0, %c0_0] : memref<8x768xf32, #tpu.memory_space<vmem>>, vector<8x768xf32>
    %1 = arith.truncf %0 : vector<8x768xf32> to vector<8x768xbf16>
    %c0_1 = arith.constant 0 : index
    %c0_2 = arith.constant 0 : index
    %2 = vector.load %arg2[%c0_1, %c0_2] : memref<768x128xbf16, #tpu.memory_space<vmem>>, vector<768x128xbf16>
    %cst = arith.constant dense<0.000000e+00> : vector<8x128xf32>
    %3 = tpu.matmul %1, %2, %cst {dimension_numbers = #tpu.dot_dimension_numbers<[1], [0], [0], [1], [0, 0, 1, 1], [], []>} : vector<8x768xbf16>, vector<768x128xbf16>, vector<8x128xf32> -> vector<8x128xf32>
    %c0_3 = arith.constant 0 : index
    %c0_4 = arith.constant 0 : index
    %4 = vector.load %arg3[%c0_3, %c0_4] : memref<1x128xf32, #tpu.memory_space<vmem>>, vector<1x128xf32>
    %5 = vector.broadcast %4 : vector<1x128xf32> to vector<8x128xf32>
    %6 = arith.addf %3, %5 : vector<8x128xf32>
    %c0_5 = arith.constant 0 : index
    %c0_6 = arith.constant 0 : index
    %7 = vector.load %arg4[%c0_5, %c0_6] : memref<8x128xf32, #tpu.memory_space<vmem>>, vector<8x128xf32>
    tpu.vector_store %arg4[%c0_5, %c0_6], %6 {strides = array<i32>} : memref<8x128xf32, #tpu.memory_space<vmem>>, vector<8x128xf32>,
    return
  }
  func.func @transform_0(%arg0: i32) -> (i32, i32) {
    %c0_i32 = arith.constant 0 : i32
    %c0_i32_0 = arith.constant 0 : i32
    return %arg0, %c0_i32 : i32, i32
  }
  func.func @transform_1(%arg0: i32) -> (i32, i32) {
    %c0_i32 = arith.constant 0 : i32
    %c0_i32_0 = arith.constant 0 : i32
    %c0_i32_1 = arith.constant 0 : i32
    return %c0_i32, %c0_i32_0 : i32, i32
  }
  func.func @transform_2(%arg0: i32) -> (i32, i32) {
    %c0_i32 = arith.constant 0 : i32
    %c0_i32_0 = arith.constant 0 : i32
    %c0_i32_1 = arith.constant 0 : i32
    return %c0_i32, %c0_i32_0 : i32, i32
  }
  func.func @transform_3(%arg0: i32) -> (i32, i32) {
    %c0_i32 = arith.constant 0 : i32
    %c0_i32_0 = arith.constant 0 : i32
    return %arg0, %c0_i32 : i32, i32
  }
}

module attributes {stable_mosaic.version = 11 : i64} {
  func.func @_ln_matmul_kernel(%arg0: i32, %arg1: memref<32x128xbf16, #tpu.memory_space<vmem>>, %arg2: memref<1x128xf32, #tpu.memory_space<vmem>>, %arg3: memref<1x128xf32, #tpu.memory_space<vmem>>, %arg4: memref<128x384xbf16, #tpu.memory_space<vmem>>, %arg5: memref<1x384xf32, #tpu.memory_space<vmem>>, %arg6: memref<32x384xbf16, #tpu.memory_space<vmem>>) attributes {dimension_semantics = [#tpu.dimension_semantics<parallel>], iteration_bounds = array<i64: 1>, scalar_prefetch = 0 : i64, scratch_operands = 0 : i64, tpu.core_type = #tpu.core_type<tc>, window_params = [{transform_indices = @transform_0, window_bounds = array<i64: 32, 128>}, {pipeline_mode = #tpu.pipeline_mode<synchronous>, transform_indices = @transform_1, window_bounds = array<i64: 1, 128>}, {pipeline_mode = #tpu.pipeline_mode<synchronous>, transform_indices = @transform_2, window_bounds = array<i64: 1, 128>}, {pipeline_mode = #tpu.pipeline_mode<synchronous>, transform_indices = @transform_3, window_bounds = array<i64: 128, 384>}, {pipeline_mode = #tpu.pipeline_mode<synchronous>, transform_indices = @transform_4, window_bounds = array<i64: 1, 384>}, {transform_indices = @transform_5, window_bounds = array<i64: 32, 384>}]} {
    %c0 = arith.constant 0 : index
    %c0_0 = arith.constant 0 : index
    %0 = vector.load %arg1[%c0, %c0_0] : memref<32x128xbf16, #tpu.memory_space<vmem>>, vector<32x128xbf16>
    %1 = arith.extf %0 : vector<32x128xbf16> to vector<32x128xf32>
    %cst = arith.constant dense<0.000000e+00> : vector<32xf32>
    %2 = vector.multi_reduction <add>, %1, %cst [1] : vector<32x128xf32> to vector<32xf32>
    %3 = vector.shape_cast %2 : vector<32xf32> to vector<32x1xf32>
    %cst_1 = arith.constant 1.280000e+02 : f32
    %4 = vector.broadcast %cst_1 : f32 to vector<32x1xf32>
    %5 = arith.divf %3, %4 : vector<32x1xf32>
    %6 = vector.broadcast %5 : vector<32x1xf32> to vector<32x128xf32>
    %7 = arith.subf %1, %6 : vector<32x128xf32>
    %8 = arith.mulf %7, %7 : vector<32x128xf32>
    %cst_2 = arith.constant dense<0.000000e+00> : vector<32xf32>
    %9 = vector.multi_reduction <add>, %8, %cst_2 [1] : vector<32x128xf32> to vector<32xf32>
    %10 = vector.shape_cast %9 : vector<32xf32> to vector<32x1xf32>
    %cst_3 = arith.constant 1.280000e+02 : f32
    %11 = vector.broadcast %cst_3 : f32 to vector<32x1xf32>
    %12 = arith.divf %10, %11 : vector<32x1xf32>
    %13 = vector.broadcast %5 : vector<32x1xf32> to vector<32x128xf32>
    %14 = arith.subf %1, %13 : vector<32x128xf32>
    %cst_4 = arith.constant 9.99999997E-7 : f32
    %15 = vector.broadcast %cst_4 : f32 to vector<32x1xf32>
    %16 = arith.addf %12, %15 : vector<32x1xf32>
    %17 = math.rsqrt %16 : vector<32x1xf32>
    %18 = vector.broadcast %17 : vector<32x1xf32> to vector<32x128xf32>
    %19 = arith.mulf %14, %18 : vector<32x128xf32>
    %c0_5 = arith.constant 0 : index
    %c0_6 = arith.constant 0 : index
    %20 = vector.load %arg2[%c0_5, %c0_6] : memref<1x128xf32, #tpu.memory_space<vmem>>, vector<1x128xf32>
    %21 = vector.broadcast %20 : vector<1x128xf32> to vector<32x128xf32>
    %22 = arith.mulf %19, %21 : vector<32x128xf32>
    %c0_7 = arith.constant 0 : index
    %c0_8 = arith.constant 0 : index
    %23 = vector.load %arg3[%c0_7, %c0_8] : memref<1x128xf32, #tpu.memory_space<vmem>>, vector<1x128xf32>
    %24 = vector.broadcast %23 : vector<1x128xf32> to vector<32x128xf32>
    %25 = arith.addf %22, %24 : vector<32x128xf32>
    %26 = arith.truncf %25 : vector<32x128xf32> to vector<32x128xbf16>
    %c0_9 = arith.constant 0 : index
    %c0_10 = arith.constant 0 : index
    %27 = vector.load %arg4[%c0_9, %c0_10] : memref<128x384xbf16, #tpu.memory_space<vmem>>, vector<128x384xbf16>
    %cst_11 = arith.constant dense<0.000000e+00> : vector<32x384xf32>
    %28 = tpu.matmul %26, %27, %cst_11 {dimension_numbers = #tpu.dot_dimension_numbers<[1], [0], [0], [1], [0, 0, 1, 1], [], []>} : vector<32x128xbf16>, vector<128x384xbf16>, vector<32x384xf32> -> vector<32x384xf32>
    %c0_12 = arith.constant 0 : index
    %c0_13 = arith.constant 0 : index
    %29 = vector.load %arg5[%c0_12, %c0_13] : memref<1x384xf32, #tpu.memory_space<vmem>>, vector<1x384xf32>
    %30 = vector.broadcast %29 : vector<1x384xf32> to vector<32x384xf32>
    %31 = arith.addf %28, %30 : vector<32x384xf32>
    %32 = arith.truncf %31 : vector<32x384xf32> to vector<32x384xbf16>
    %c0_14 = arith.constant 0 : index
    %c0_15 = arith.constant 0 : index
    %33 = vector.load %arg6[%c0_14, %c0_15] : memref<32x384xbf16, #tpu.memory_space<vmem>>, vector<32x384xbf16>
    tpu.vector_store %arg6[%c0_14, %c0_15], %32 {strides = array<i32>} : memref<32x384xbf16, #tpu.memory_space<vmem>>, vector<32x384xbf16>,
    return
  }
  func.func @transform_0(%arg0: i32) -> (i32, i32) {
    %c0_i32 = arith.constant 0 : i32
    %c0_i32_0 = arith.constant 0 : i32
    return %arg0, %c0_i32 : i32, i32
  }
  func.func @transform_1(%arg0: i32) -> (i32, i32) {
    %c0_i32 = arith.constant 0 : i32
    %c0_i32_0 = arith.constant 0 : i32
    %c0_i32_1 = arith.constant 0 : i32
    return %c0_i32, %c0_i32_0 : i32, i32
  }
  func.func @transform_2(%arg0: i32) -> (i32, i32) {
    %c0_i32 = arith.constant 0 : i32
    %c0_i32_0 = arith.constant 0 : i32
    %c0_i32_1 = arith.constant 0 : i32
    return %c0_i32, %c0_i32_0 : i32, i32
  }
  func.func @transform_3(%arg0: i32) -> (i32, i32) {
    %c0_i32 = arith.constant 0 : i32
    %c0_i32_0 = arith.constant 0 : i32
    %c0_i32_1 = arith.constant 0 : i32
    return %c0_i32, %c0_i32_0 : i32, i32
  }
  func.func @transform_4(%arg0: i32) -> (i32, i32) {
    %c0_i32 = arith.constant 0 : i32
    %c0_i32_0 = arith.constant 0 : i32
    %c0_i32_1 = arith.constant 0 : i32
    return %c0_i32, %c0_i32_0 : i32, i32
  }
  func.func @transform_5(%arg0: i32) -> (i32, i32) {
    %c0_i32 = arith.constant 0 : i32
    %c0_i32_0 = arith.constant 0 : i32
    return %arg0, %c0_i32 : i32, i32
  }
}

module attributes {stable_mosaic.version = 11 : i64} {
  func.func @_mlp_kernel(%arg0: i32, %arg1: i32, %arg2: memref<32x128xbf16, #tpu.memory_space<vmem>>, %arg3: memref<1x128xf32, #tpu.memory_space<vmem>>, %arg4: memref<1x128xf32, #tpu.memory_space<vmem>>, %arg5: memref<128x512xbf16, #tpu.memory_space<vmem>>, %arg6: memref<1x512xf32, #tpu.memory_space<vmem>>, %arg7: memref<512x128xbf16, #tpu.memory_space<vmem>>, %arg8: memref<1x128xf32, #tpu.memory_space<vmem>>, %arg9: memref<32x128xbf16, #tpu.memory_space<vmem>>, %arg10: memref<32x128xbf16, #tpu.memory_space<vmem>>, %arg11: memref<32x128xf32, #tpu.memory_space<vmem>>) attributes {dimension_semantics = [#tpu.dimension_semantics<parallel>, #tpu.dimension_semantics<arbitrary>], iteration_bounds = array<i64: 1, 1>, scalar_prefetch = 0 : i64, scratch_operands = 2 : i64, tpu.core_type = #tpu.core_type<tc>, window_params = [{transform_indices = @transform_0, window_bounds = array<i64: 32, 128>}, {pipeline_mode = #tpu.pipeline_mode<synchronous>, transform_indices = @transform_1, window_bounds = array<i64: 1, 128>}, {pipeline_mode = #tpu.pipeline_mode<synchronous>, transform_indices = @transform_2, window_bounds = array<i64: 1, 128>}, {transform_indices = @transform_3, window_bounds = array<i64: 128, 512>}, {transform_indices = @transform_4, window_bounds = array<i64: 1, 512>}, {transform_indices = @transform_5, window_bounds = array<i64: 512, 128>}, {pipeline_mode = #tpu.pipeline_mode<synchronous>, transform_indices = @transform_6, window_bounds = array<i64: 1, 128>}, {transform_indices = @transform_7, window_bounds = array<i64: 32, 128>}]} {
    %c0_i32 = arith.constant 0 : i32
    %0 = arith.cmpi eq, %arg1, %c0_i32 : i32
    %1 = arith.extui %0 : i1 to i32
    %c0_i32_0 = arith.constant 0 : i32
    %2 = arith.cmpi ne, %1, %c0_i32_0 : i32
    scf.if %2 {
      %c0_30 = arith.constant 0 : index
      %c0_31 = arith.constant 0 : index
      %58 = vector.load %arg2[%c0_30, %c0_31] : memref<32x128xbf16, #tpu.memory_space<vmem>>, vector<32x128xbf16>
      %59 = arith.extf %58 : vector<32x128xbf16> to vector<32x128xf32>
      %cst_32 = arith.constant dense<0.000000e+00> : vector<32xf32>
      %60 = vector.multi_reduction <add>, %59, %cst_32 [1] : vector<32x128xf32> to vector<32xf32>
      %61 = vector.shape_cast %60 : vector<32xf32> to vector<32x1xf32>
      %cst_33 = arith.constant 1.280000e+02 : f32
      %62 = vector.broadcast %cst_33 : f32 to vector<32x1xf32>
      %63 = arith.divf %61, %62 : vector<32x1xf32>
      %64 = vector.broadcast %63 : vector<32x1xf32> to vector<32x128xf32>
      %65 = arith.subf %59, %64 : vector<32x128xf32>
      %66 = arith.mulf %65, %65 : vector<32x128xf32>
      %cst_34 = arith.constant dense<0.000000e+00> : vector<32xf32>
      %67 = vector.multi_reduction <add>, %66, %cst_34 [1] : vector<32x128xf32> to vector<32xf32>
      %68 = vector.shape_cast %67 : vector<32xf32> to vector<32x1xf32>
      %cst_35 = arith.constant 1.280000e+02 : f32
      %69 = vector.broadcast %cst_35 : f32 to vector<32x1xf32>
      %70 = arith.divf %68, %69 : vector<32x1xf32>
      %71 = vector.broadcast %63 : vector<32x1xf32> to vector<32x128xf32>
      %72 = arith.subf %59, %71 : vector<32x128xf32>
      %cst_36 = arith.constant 9.99999997E-7 : f32
      %73 = vector.broadcast %cst_36 : f32 to vector<32x1xf32>
      %74 = arith.addf %70, %73 : vector<32x1xf32>
      %75 = math.rsqrt %74 : vector<32x1xf32>
      %76 = vector.broadcast %75 : vector<32x1xf32> to vector<32x128xf32>
      %77 = arith.mulf %72, %76 : vector<32x128xf32>
      %c0_37 = arith.constant 0 : index
      %c0_38 = arith.constant 0 : index
      %78 = vector.load %arg3[%c0_37, %c0_38] : memref<1x128xf32, #tpu.memory_space<vmem>>, vector<1x128xf32>
      %79 = vector.broadcast %78 : vector<1x128xf32> to vector<32x128xf32>
      %80 = arith.mulf %77, %79 : vector<32x128xf32>
      %c0_39 = arith.constant 0 : index
      %c0_40 = arith.constant 0 : index
      %81 = vector.load %arg4[%c0_39, %c0_40] : memref<1x128xf32, #tpu.memory_space<vmem>>, vector<1x128xf32>
      %82 = vector.broadcast %81 : vector<1x128xf32> to vector<32x128xf32>
      %83 = arith.addf %80, %82 : vector<32x128xf32>
      %84 = arith.truncf %83 : vector<32x128xf32> to vector<32x128xbf16>
      %c0_41 = arith.constant 0 : index
      %c0_42 = arith.constant 0 : index
      %85 = vector.load %arg10[%c0_41, %c0_42] : memref<32x128xbf16, #tpu.memory_space<vmem>>, vector<32x128xbf16>
      tpu.vector_store %arg10[%c0_41, %c0_42], %84 {strides = array<i32>} : memref<32x128xbf16, #tpu.memory_space<vmem>>, vector<32x128xbf16>,
      %c0_43 = arith.constant 0 : index
      %c0_44 = arith.constant 0 : index
      %86 = vector.load %arg8[%c0_43, %c0_44] : memref<1x128xf32, #tpu.memory_space<vmem>>, vector<1x128xf32>
      %87 = vector.broadcast %86 : vector<1x128xf32> to vector<32x128xf32>
      %88 = arith.addf %59, %87 : vector<32x128xf32>
      %c0_45 = arith.constant 0 : index
      %c0_46 = arith.constant 0 : index
      %89 = vector.load %arg11[%c0_45, %c0_46] : memref<32x128xf32, #tpu.memory_space<vmem>>, vector<32x128xf32>
      tpu.vector_store %arg11[%c0_45, %c0_46], %88 {strides = array<i32>} : memref<32x128xf32, #tpu.memory_space<vmem>>, vector<32x128xf32>,
    } else {
    }
    %c0 = arith.constant 0 : index
    %c0_1 = arith.constant 0 : index
    %3 = vector.load %arg10[%c0, %c0_1] : memref<32x128xbf16, #tpu.memory_space<vmem>>, vector<32x128xbf16>
    %c0_2 = arith.constant 0 : index
    %c0_3 = arith.constant 0 : index
    %4 = vector.load %arg5[%c0_2, %c0_3] : memref<128x512xbf16, #tpu.memory_space<vmem>>, vector<128x512xbf16>
    %cst = arith.constant dense<0.000000e+00> : vector<32x512xf32>
    %5 = tpu.matmul %3, %4, %cst {dimension_numbers = #tpu.dot_dimension_numbers<[1], [0], [0], [1], [0, 0, 1, 1], [], []>} : vector<32x128xbf16>, vector<128x512xbf16>, vector<32x512xf32> -> vector<32x512xf32>
    %c0_4 = arith.constant 0 : index
    %c0_5 = arith.constant 0 : index
    %6 = vector.load %arg6[%c0_4, %c0_5] : memref<1x512xf32, #tpu.memory_space<vmem>>, vector<1x512xf32>
    %7 = vector.broadcast %6 : vector<1x512xf32> to vector<32x512xf32>
    %8 = arith.addf %5, %7 : vector<32x512xf32>
    %cst_6 = arith.constant 0.707106769 : f32
    %9 = vector.broadcast %cst_6 : f32 to vector<32x512xf32>
    %10 = arith.mulf %8, %9 : vector<32x512xf32>
    %11 = math.absf %10 : vector<32x512xf32>
    %cst_7 = arith.constant 0.327591091 : f32
    %12 = vector.broadcast %cst_7 : f32 to vector<32x512xf32>
    %13 = arith.mulf %12, %11 : vector<32x512xf32>
    %cst_8 = arith.constant 1.000000e+00 : f32
    %14 = vector.broadcast %cst_8 : f32 to vector<32x512xf32>
    %15 = arith.addf %14, %13 : vector<32x512xf32>
    %cst_9 = arith.constant 1.000000e+00 : f32
    %16 = vector.broadcast %cst_9 : f32 to vector<32x512xf32>
    %17 = arith.divf %16, %15 : vector<32x512xf32>
    %cst_10 = arith.constant 1.06140542 : f32
    %18 = vector.broadcast %cst_10 : f32 to vector<32x512xf32>
    %19 = arith.mulf %18, %17 : vector<32x512xf32>
    %cst_11 = arith.constant 1.45315206 : f32
    %20 = vector.broadcast %cst_11 : f32 to vector<32x512xf32>
    %21 = arith.subf %19, %20 : vector<32x512xf32>
    %22 = arith.mulf %21, %17 : vector<32x512xf32>
    %cst_12 = arith.constant 1.42141378 : f32
    %23 = vector.broadcast %cst_12 : f32 to vector<32x512xf32>
    %24 = arith.addf %22, %23 : vector<32x512xf32>
    %25 = arith.mulf %24, %17 : vector<32x512xf32>
    %cst_13 = arith.constant 0.284496725 : f32
    %26 = vector.broadcast %cst_13 : f32 to vector<32x512xf32>
    %27 = arith.subf %25, %26 : vector<32x512xf32>
    %28 = arith.mulf %27, %17 : vector<32x512xf32>
    %cst_14 = arith.constant 0.254829586 : f32
    %29 = vector.broadcast %cst_14 : f32 to vector<32x512xf32>
    %30 = arith.addf %28, %29 : vector<32x512xf32>
    %31 = arith.mulf %30, %17 : vector<32x512xf32>
    %cst_15 = arith.constant 0.000000e+00 : f32
    %32 = vector.broadcast %cst_15 : f32 to vector<32x512xf32>
    %33 = arith.subf %32, %11 : vector<32x512xf32>
    %34 = arith.mulf %33, %11 : vector<32x512xf32>
    %35 = math.exp %34 : vector<32x512xf32>
    %36 = arith.mulf %31, %35 : vector<32x512xf32>
    %cst_16 = arith.constant 1.000000e+00 : f32
    %37 = vector.broadcast %cst_16 : f32 to vector<32x512xf32>
    %38 = arith.subf %37, %36 : vector<32x512xf32>
    %cst_17 = arith.constant 0.000000e+00 : f32
    %39 = vector.broadcast %cst_17 : f32 to vector<32x512xf32>
    %40 = arith.cmpf oge, %10, %39 : vector<32x512xf32>
    %cst_18 = arith.constant 0.000000e+00 : f32
    %41 = vector.broadcast %cst_18 : f32 to vector<32x512xf32>
    %42 = arith.subf %41, %38 : vector<32x512xf32>
    %43 = arith.select %40, %38, %42 : vector<32x512xi1>, vector<32x512xf32>
    %cst_19 = arith.constant 5.000000e-01 : f32
    %44 = vector.broadcast %cst_19 : f32 to vector<32x512xf32>
    %45 = arith.mulf %44, %8 : vector<32x512xf32>
    %cst_20 = arith.constant 1.000000e+00 : f32
    %46 = vector.broadcast %cst_20 : f32 to vector<32x512xf32>
    %47 = arith.addf %46, %43 : vector<32x512xf32>
    %48 = arith.mulf %45, %47 : vector<32x512xf32>
    %c0_21 = arith.constant 0 : index
    %c0_22 = arith.constant 0 : index
    %49 = vector.load %arg11[%c0_21, %c0_22] : memref<32x128xf32, #tpu.memory_space<vmem>>, vector<32x128xf32>
    %50 = arith.truncf %48 : vector<32x512xf32> to vector<32x512xbf16>
    %c0_23 = arith.constant 0 : index
    %c0_24 = arith.constant 0 : index
    %51 = vector.load %arg7[%c0_23, %c0_24] : memref<512x128xbf16, #tpu.memory_space<vmem>>, vector<512x128xbf16>
    %cst_25 = arith.constant dense<0.000000e+00> : vector<32x128xf32>
    %52 = tpu.matmul %50, %51, %cst_25 {dimension_numbers = #tpu.dot_dimension_numbers<[1], [0], [0], [1], [0, 0, 1, 1], [], []>} : vector<32x512xbf16>, vector<512x128xbf16>, vector<32x128xf32> -> vector<32x128xf32>
    %53 = arith.addf %49, %52 : vector<32x128xf32>
    %c0_26 = arith.constant 0 : index
    %c0_27 = arith.constant 0 : index
    %54 = vector.load %arg11[%c0_26, %c0_27] : memref<32x128xf32, #tpu.memory_space<vmem>>, vector<32x128xf32>
    tpu.vector_store %arg11[%c0_26, %c0_27], %53 {strides = array<i32>} : memref<32x128xf32, #tpu.memory_space<vmem>>, vector<32x128xf32>,
    %c0_i32_28 = arith.constant 0 : i32
    %55 = arith.cmpi eq, %arg1, %c0_i32_28 : i32
    %56 = arith.extui %55 : i1 to i32
    %c0_i32_29 = arith.constant 0 : i32
    %57 = arith.cmpi ne, %56, %c0_i32_29 : i32
    scf.if %57 {
      %c0_30 = arith.constant 0 : index
      %c0_31 = arith.constant 0 : index
      %58 = vector.load %arg11[%c0_30, %c0_31] : memref<32x128xf32, #tpu.memory_space<vmem>>, vector<32x128xf32>
      %59 = arith.truncf %58 : vector<32x128xf32> to vector<32x128xbf16>
      %c0_32 = arith.constant 0 : index
      %c0_33 = arith.constant 0 : index
      %60 = vector.load %arg9[%c0_32, %c0_33] : memref<32x128xbf16, #tpu.memory_space<vmem>>, vector<32x128xbf16>
      tpu.vector_store %arg9[%c0_32, %c0_33], %59 {strides = array<i32>} : memref<32x128xbf16, #tpu.memory_space<vmem>>, vector<32x128xbf16>,
    } else {
    }
    return
  }
  func.func @transform_0(%arg0: i32, %arg1: i32) -> (i32, i32) {
    %c0_i32 = arith.constant 0 : i32
    %c0_i32_0 = arith.constant 0 : i32
    return %arg0, %c0_i32 : i32, i32
  }
  func.func @transform_1(%arg0: i32, %arg1: i32) -> (i32, i32) {
    %c0_i32 = arith.constant 0 : i32
    %c0_i32_0 = arith.constant 0 : i32
    %c0_i32_1 = arith.constant 0 : i32
    return %c0_i32, %c0_i32_0 : i32, i32
  }
  func.func @transform_2(%arg0: i32, %arg1: i32) -> (i32, i32) {
    %c0_i32 = arith.constant 0 : i32
    %c0_i32_0 = arith.constant 0 : i32
    %c0_i32_1 = arith.constant 0 : i32
    return %c0_i32, %c0_i32_0 : i32, i32
  }
  func.func @transform_3(%arg0: i32, %arg1: i32) -> (i32, i32) {
    %c0_i32 = arith.constant 0 : i32
    %c0_i32_0 = arith.constant 0 : i32
    return %c0_i32, %arg1 : i32, i32
  }
  func.func @transform_4(%arg0: i32, %arg1: i32) -> (i32, i32) {
    %c0_i32 = arith.constant 0 : i32
    %c0_i32_0 = arith.constant 0 : i32
    return %c0_i32, %arg1 : i32, i32
  }
  func.func @transform_5(%arg0: i32, %arg1: i32) -> (i32, i32) {
    %c0_i32 = arith.constant 0 : i32
    %c0_i32_0 = arith.constant 0 : i32
    return %arg1, %c0_i32 : i32, i32
  }
  func.func @transform_6(%arg0: i32, %arg1: i32) -> (i32, i32) {
    %c0_i32 = arith.constant 0 : i32
    %c0_i32_0 = arith.constant 0 : i32
    %c0_i32_1 = arith.constant 0 : i32
    return %c0_i32, %c0_i32_0 : i32, i32
  }
  func.func @transform_7(%arg0: i32, %arg1: i32) -> (i32, i32) {
    %c0_i32 = arith.constant 0 : i32
    %c0_i32_0 = arith.constant 0 : i32
    return %arg0, %c0_i32 : i32, i32
  }
}

module attributes {stable_mosaic.version = 11 : i64} {
  func.func @_attn_proj_kernel(%arg0: i32, %arg1: i32, %arg2: memref<16x384xbf16, #tpu.memory_space<vmem>>, %arg3: memref<16x384xbf16, #tpu.memory_space<vmem>>, %arg4: memref<16x128xbf16, #tpu.memory_space<vmem>>, %arg5: memref<128x128xbf16, #tpu.memory_space<vmem>>, %arg6: memref<1x128xf32, #tpu.memory_space<vmem>>, %arg7: memref<16x128xbf16, #tpu.memory_space<vmem>>, %arg8: memref<16x128xbf16, #tpu.memory_space<vmem>>) attributes {dimension_semantics = [#tpu.dimension_semantics<parallel>, #tpu.dimension_semantics<parallel>], iteration_bounds = array<i64: 2, 1>, scalar_prefetch = 0 : i64, scratch_operands = 1 : i64, tpu.core_type = #tpu.core_type<tc>, window_params = [{transform_indices = @transform_0, window_bounds = array<i64: 16, 384>}, {transform_indices = @transform_1, window_bounds = array<i64: 16, 384>}, {transform_indices = @transform_2, window_bounds = array<i64: 16, 128>}, {pipeline_mode = #tpu.pipeline_mode<synchronous>, transform_indices = @transform_3, window_bounds = array<i64: 128, 128>}, {pipeline_mode = #tpu.pipeline_mode<synchronous>, transform_indices = @transform_4, window_bounds = array<i64: 1, 128>}, {transform_indices = @transform_5, window_bounds = array<i64: 16, 128>}]} {
    %0 = tpu.iota {dimensions = array<i32: 1>} : vector<16x16xi32>
    %c5_i32 = arith.constant 5 : i32
    %1 = vector.broadcast %c5_i32 : i32 to vector<16x16xi32>
    %2 = arith.cmpi slt, %0, %1 : vector<16x16xi32>
    %c0 = arith.constant 0 : index
    %c0_0 = arith.constant 0 : index
    %3 = vector.load %arg2[%c0, %c0_0] : memref<16x384xbf16, #tpu.memory_space<vmem>>, vector<16x32xbf16>
    %c0_1 = arith.constant 0 : index
    %c128 = arith.constant 128 : index
    %4 = vector.load %arg3[%c0_1, %c128] : memref<16x384xbf16, #tpu.memory_space<vmem>>, vector<16x32xbf16>
    %c0_2 = arith.constant 0 : index
    %c256 = arith.constant 256 : index
    %5 = vector.load %arg3[%c0_2, %c256] : memref<16x384xbf16, #tpu.memory_space<vmem>>, vector<16x32xbf16>
    %cst = arith.constant dense<0.000000e+00> : vector<16x16xf32>
    %6 = tpu.matmul %3, %4, %cst {dimension_numbers = #tpu.dot_dimension_numbers<[1], [1], [0], [0], [0, 0, 1, 0], [], []>} : vector<16x32xbf16>, vector<16x32xbf16>, vector<16x16xf32> -> vector<16x16xf32>
    %cst_3 = arith.constant 0.176776692 : f32
    %7 = vector.broadcast %cst_3 : f32 to vector<16x16xf32>
    %8 = arith.mulf %6, %7 : vector<16x16xf32>
    %cst_4 = arith.constant -1.000000e+30 : f32
    %9 = vector.broadcast %cst_4 : f32 to vector<16x16xf32>
    %10 = arith.select %2, %8, %9 : vector<16x16xi1>, vector<16x16xf32>
    %cst_5 = arith.constant dense<0xFF800000> : vector<16xf32>
    %11 = vector.multi_reduction <maximumf>, %10, %cst_5 [1] : vector<16x16xf32> to vector<16xf32>
    %12 = vector.shape_cast %11 : vector<16xf32> to vector<16x1xf32>
    %13 = vector.broadcast %12 : vector<16x1xf32> to vector<16x16xf32>
    %14 = arith.subf %10, %13 : vector<16x16xf32>
    %15 = math.exp %14 : vector<16x16xf32>
    %cst_6 = arith.constant dense<0.000000e+00> : vector<16xf32>
    %16 = vector.multi_reduction <add>, %15, %cst_6 [1] : vector<16x16xf32> to vector<16xf32>
    %17 = vector.shape_cast %16 : vector<16xf32> to vector<16x1xf32>
    %18 = arith.truncf %15 : vector<16x16xf32> to vector<16x16xbf16>
    %cst_7 = arith.constant dense<0.000000e+00> : vector<16x32xf32>
    %19 = tpu.matmul %18, %5, %cst_7 {dimension_numbers = #tpu.dot_dimension_numbers<[1], [0], [0], [1], [0, 0, 1, 1], [], []>} : vector<16x16xbf16>, vector<16x32xbf16>, vector<16x32xf32> -> vector<16x32xf32>
    %20 = tpu.reciprocal %17 {approx = true} : vector<16x1xf32> -> vector<16x1xf32>
    %21 = vector.broadcast %20 : vector<16x1xf32> to vector<16x32xf32>
    %22 = arith.mulf %19, %21 : vector<16x32xf32>
    %23 = arith.truncf %22 : vector<16x32xf32> to vector<16x32xbf16>
    %c0_8 = arith.constant 0 : index
    %c0_9 = arith.constant 0 : index
    %24 = vector.load %arg8[%c0_8, %c0_9] : memref<16x128xbf16, #tpu.memory_space<vmem>>, vector<16x32xbf16>
    tpu.vector_store %arg8[%c0_8, %c0_9], %23 {strides = array<i32>} : memref<16x128xbf16, #tpu.memory_space<vmem>>, vector<16x32xbf16>,
    %c0_10 = arith.constant 0 : index
    %c32 = arith.constant 32 : index
    %25 = vector.load %arg2[%c0_10, %c32] : memref<16x384xbf16, #tpu.memory_space<vmem>>, vector<16x32xbf16>
    %c0_11 = arith.constant 0 : index
    %c160 = arith.constant 160 : index
    %26 = vector.load %arg3[%c0_11, %c160] : memref<16x384xbf16, #tpu.memory_space<vmem>>, vector<16x32xbf16>
    %c0_12 = arith.constant 0 : index
    %c288 = arith.constant 288 : index
    %27 = vector.load %arg3[%c0_12, %c288] : memref<16x384xbf16, #tpu.memory_space<vmem>>, vector<16x32xbf16>
    %cst_13 = arith.constant dense<0.000000e+00> : vector<16x16xf32>
    %28 = tpu.matmul %25, %26, %cst_13 {dimension_numbers = #tpu.dot_dimension_numbers<[1], [1], [0], [0], [0, 0, 1, 0], [], []>} : vector<16x32xbf16>, vector<16x32xbf16>, vector<16x16xf32> -> vector<16x16xf32>
    %cst_14 = arith.constant 0.176776692 : f32
    %29 = vector.broadcast %cst_14 : f32 to vector<16x16xf32>
    %30 = arith.mulf %28, %29 : vector<16x16xf32>
    %cst_15 = arith.constant -1.000000e+30 : f32
    %31 = vector.broadcast %cst_15 : f32 to vector<16x16xf32>
    %32 = arith.select %2, %30, %31 : vector<16x16xi1>, vector<16x16xf32>
    %cst_16 = arith.constant dense<0xFF800000> : vector<16xf32>
    %33 = vector.multi_reduction <maximumf>, %32, %cst_16 [1] : vector<16x16xf32> to vector<16xf32>
    %34 = vector.shape_cast %33 : vector<16xf32> to vector<16x1xf32>
    %35 = vector.broadcast %34 : vector<16x1xf32> to vector<16x16xf32>
    %36 = arith.subf %32, %35 : vector<16x16xf32>
    %37 = math.exp %36 : vector<16x16xf32>
    %cst_17 = arith.constant dense<0.000000e+00> : vector<16xf32>
    %38 = vector.multi_reduction <add>, %37, %cst_17 [1] : vector<16x16xf32> to vector<16xf32>
    %39 = vector.shape_cast %38 : vector<16xf32> to vector<16x1xf32>
    %40 = arith.truncf %37 : vector<16x16xf32> to vector<16x16xbf16>
    %cst_18 = arith.constant dense<0.000000e+00> : vector<16x32xf32>
    %41 = tpu.matmul %40, %27, %cst_18 {dimension_numbers = #tpu.dot_dimension_numbers<[1], [0], [0], [1], [0, 0, 1, 1], [], []>} : vector<16x16xbf16>, vector<16x32xbf16>, vector<16x32xf32> -> vector<16x32xf32>
    %42 = tpu.reciprocal %39 {approx = true} : vector<16x1xf32> -> vector<16x1xf32>
    %43 = vector.broadcast %42 : vector<16x1xf32> to vector<16x32xf32>
    %44 = arith.mulf %41, %43 : vector<16x32xf32>
    %45 = arith.truncf %44 : vector<16x32xf32> to vector<16x32xbf16>
    %c0_19 = arith.constant 0 : index
    %c32_20 = arith.constant 32 : index
    %46 = vector.load %arg8[%c0_19, %c32_20] : memref<16x128xbf16, #tpu.memory_space<vmem>>, vector<16x32xbf16>
    tpu.vector_store %arg8[%c0_19, %c32_20], %45 {strides = array<i32>} : memref<16x128xbf16, #tpu.memory_space<vmem>>, vector<16x32xbf16>,
    %c0_21 = arith.constant 0 : index
    %c64 = arith.constant 64 : index
    %47 = vector.load %arg2[%c0_21, %c64] : memref<16x384xbf16, #tpu.memory_space<vmem>>, vector<16x32xbf16>
    %c0_22 = arith.constant 0 : index
    %c192 = arith.constant 192 : index
    %48 = vector.load %arg3[%c0_22, %c192] : memref<16x384xbf16, #tpu.memory_space<vmem>>, vector<16x32xbf16>
    %c0_23 = arith.constant 0 : index
    %c320 = arith.constant 320 : index
    %49 = vector.load %arg3[%c0_23, %c320] : memref<16x384xbf16, #tpu.memory_space<vmem>>, vector<16x32xbf16>
    %cst_24 = arith.constant dense<0.000000e+00> : vector<16x16xf32>
    %50 = tpu.matmul %47, %48, %cst_24 {dimension_numbers = #tpu.dot_dimension_numbers<[1], [1], [0], [0], [0, 0, 1, 0], [], []>} : vector<16x32xbf16>, vector<16x32xbf16>, vector<16x16xf32> -> vector<16x16xf32>
    %cst_25 = arith.constant 0.176776692 : f32
    %51 = vector.broadcast %cst_25 : f32 to vector<16x16xf32>
    %52 = arith.mulf %50, %51 : vector<16x16xf32>
    %cst_26 = arith.constant -1.000000e+30 : f32
    %53 = vector.broadcast %cst_26 : f32 to vector<16x16xf32>
    %54 = arith.select %2, %52, %53 : vector<16x16xi1>, vector<16x16xf32>
    %cst_27 = arith.constant dense<0xFF800000> : vector<16xf32>
    %55 = vector.multi_reduction <maximumf>, %54, %cst_27 [1] : vector<16x16xf32> to vector<16xf32>
    %56 = vector.shape_cast %55 : vector<16xf32> to vector<16x1xf32>
    %57 = vector.broadcast %56 : vector<16x1xf32> to vector<16x16xf32>
    %58 = arith.subf %54, %57 : vector<16x16xf32>
    %59 = math.exp %58 : vector<16x16xf32>
    %cst_28 = arith.constant dense<0.000000e+00> : vector<16xf32>
    %60 = vector.multi_reduction <add>, %59, %cst_28 [1] : vector<16x16xf32> to vector<16xf32>
    %61 = vector.shape_cast %60 : vector<16xf32> to vector<16x1xf32>
    %62 = arith.truncf %59 : vector<16x16xf32> to vector<16x16xbf16>
    %cst_29 = arith.constant dense<0.000000e+00> : vector<16x32xf32>
    %63 = tpu.matmul %62, %49, %cst_29 {dimension_numbers = #tpu.dot_dimension_numbers<[1], [0], [0], [1], [0, 0, 1, 1], [], []>} : vector<16x16xbf16>, vector<16x32xbf16>, vector<16x32xf32> -> vector<16x32xf32>
    %64 = tpu.reciprocal %61 {approx = true} : vector<16x1xf32> -> vector<16x1xf32>
    %65 = vector.broadcast %64 : vector<16x1xf32> to vector<16x32xf32>
    %66 = arith.mulf %63, %65 : vector<16x32xf32>
    %67 = arith.truncf %66 : vector<16x32xf32> to vector<16x32xbf16>
    %c0_30 = arith.constant 0 : index
    %c64_31 = arith.constant 64 : index
    %68 = vector.load %arg8[%c0_30, %c64_31] : memref<16x128xbf16, #tpu.memory_space<vmem>>, vector<16x32xbf16>
    tpu.vector_store %arg8[%c0_30, %c64_31], %67 {strides = array<i32>} : memref<16x128xbf16, #tpu.memory_space<vmem>>, vector<16x32xbf16>,
    %c0_32 = arith.constant 0 : index
    %c96 = arith.constant 96 : index
    %69 = vector.load %arg2[%c0_32, %c96] : memref<16x384xbf16, #tpu.memory_space<vmem>>, vector<16x32xbf16>
    %c0_33 = arith.constant 0 : index
    %c224 = arith.constant 224 : index
    %70 = vector.load %arg3[%c0_33, %c224] : memref<16x384xbf16, #tpu.memory_space<vmem>>, vector<16x32xbf16>
    %c0_34 = arith.constant 0 : index
    %c352 = arith.constant 352 : index
    %71 = vector.load %arg3[%c0_34, %c352] : memref<16x384xbf16, #tpu.memory_space<vmem>>, vector<16x32xbf16>
    %cst_35 = arith.constant dense<0.000000e+00> : vector<16x16xf32>
    %72 = tpu.matmul %69, %70, %cst_35 {dimension_numbers = #tpu.dot_dimension_numbers<[1], [1], [0], [0], [0, 0, 1, 0], [], []>} : vector<16x32xbf16>, vector<16x32xbf16>, vector<16x16xf32> -> vector<16x16xf32>
    %cst_36 = arith.constant 0.176776692 : f32
    %73 = vector.broadcast %cst_36 : f32 to vector<16x16xf32>
    %74 = arith.mulf %72, %73 : vector<16x16xf32>
    %cst_37 = arith.constant -1.000000e+30 : f32
    %75 = vector.broadcast %cst_37 : f32 to vector<16x16xf32>
    %76 = arith.select %2, %74, %75 : vector<16x16xi1>, vector<16x16xf32>
    %cst_38 = arith.constant dense<0xFF800000> : vector<16xf32>
    %77 = vector.multi_reduction <maximumf>, %76, %cst_38 [1] : vector<16x16xf32> to vector<16xf32>
    %78 = vector.shape_cast %77 : vector<16xf32> to vector<16x1xf32>
    %79 = vector.broadcast %78 : vector<16x1xf32> to vector<16x16xf32>
    %80 = arith.subf %76, %79 : vector<16x16xf32>
    %81 = math.exp %80 : vector<16x16xf32>
    %cst_39 = arith.constant dense<0.000000e+00> : vector<16xf32>
    %82 = vector.multi_reduction <add>, %81, %cst_39 [1] : vector<16x16xf32> to vector<16xf32>
    %83 = vector.shape_cast %82 : vector<16xf32> to vector<16x1xf32>
    %84 = arith.truncf %81 : vector<16x16xf32> to vector<16x16xbf16>
    %cst_40 = arith.constant dense<0.000000e+00> : vector<16x32xf32>
    %85 = tpu.matmul %84, %71, %cst_40 {dimension_numbers = #tpu.dot_dimension_numbers<[1], [0], [0], [1], [0, 0, 1, 1], [], []>} : vector<16x16xbf16>, vector<16x32xbf16>, vector<16x32xf32> -> vector<16x32xf32>
    %86 = tpu.reciprocal %83 {approx = true} : vector<16x1xf32> -> vector<16x1xf32>
    %87 = vector.broadcast %86 : vector<16x1xf32> to vector<16x32xf32>
    %88 = arith.mulf %85, %87 : vector<16x32xf32>
    %89 = arith.truncf %88 : vector<16x32xf32> to vector<16x32xbf16>
    %c0_41 = arith.constant 0 : index
    %c96_42 = arith.constant 96 : index
    %90 = vector.load %arg8[%c0_41, %c96_42] : memref<16x128xbf16, #tpu.memory_space<vmem>>, vector<16x32xbf16>
    tpu.vector_store %arg8[%c0_41, %c96_42], %89 {strides = array<i32>} : memref<16x128xbf16, #tpu.memory_space<vmem>>, vector<16x32xbf16>,
    %c0_43 = arith.constant 0 : index
    %c0_44 = arith.constant 0 : index
    %91 = vector.load %arg8[%c0_43, %c0_44] : memref<16x128xbf16, #tpu.memory_space<vmem>>, vector<16x128xbf16>
    %c0_45 = arith.constant 0 : index
    %c0_46 = arith.constant 0 : index
    %92 = vector.load %arg5[%c0_45, %c0_46] : memref<128x128xbf16, #tpu.memory_space<vmem>>, vector<128x128xbf16>
    %cst_47 = arith.constant dense<0.000000e+00> : vector<16x128xf32>
    %93 = tpu.matmul %91, %92, %cst_47 {dimension_numbers = #tpu.dot_dimension_numbers<[1], [0], [0], [1], [0, 0, 1, 1], [], []>} : vector<16x128xbf16>, vector<128x128xbf16>, vector<16x128xf32> -> vector<16x128xf32>
    %c0_48 = arith.constant 0 : index
    %c0_49 = arith.constant 0 : index
    %94 = vector.load %arg4[%c0_48, %c0_49] : memref<16x128xbf16, #tpu.memory_space<vmem>>, vector<16x128xbf16>
    %95 = arith.extf %94 : vector<16x128xbf16> to vector<16x128xf32>
    %96 = arith.addf %95, %93 : vector<16x128xf32>
    %c0_50 = arith.constant 0 : index
    %c0_51 = arith.constant 0 : index
    %97 = vector.load %arg6[%c0_50, %c0_51] : memref<1x128xf32, #tpu.memory_space<vmem>>, vector<1x128xf32>
    %98 = vector.broadcast %97 : vector<1x128xf32> to vector<16x128xf32>
    %99 = arith.addf %96, %98 : vector<16x128xf32>
    %100 = arith.truncf %99 : vector<16x128xf32> to vector<16x128xbf16>
    %c0_52 = arith.constant 0 : index
    %c0_53 = arith.constant 0 : index
    %101 = vector.load %arg7[%c0_52, %c0_53] : memref<16x128xbf16, #tpu.memory_space<vmem>>, vector<16x128xbf16>
    tpu.vector_store %arg7[%c0_52, %c0_53], %100 {strides = array<i32>} : memref<16x128xbf16, #tpu.memory_space<vmem>>, vector<16x128xbf16>,
    return
  }
  func.func @transform_0(%arg0: i32, %arg1: i32) -> (i32, i32) {
    %c1_i32 = arith.constant 1 : i32
    %0 = arith.muli %arg0, %c1_i32 : i32
    %1 = arith.addi %0, %arg1 : i32
    %c0_i32 = arith.constant 0 : i32
    %c0_i32_0 = arith.constant 0 : i32
    return %1, %c0_i32 : i32, i32
  }
  func.func @transform_1(%arg0: i32, %arg1: i32) -> (i32, i32) {
    %c0_i32 = arith.constant 0 : i32
    %c0_i32_0 = arith.constant 0 : i32
    return %arg0, %c0_i32 : i32, i32
  }
  func.func @transform_2(%arg0: i32, %arg1: i32) -> (i32, i32) {
    %c1_i32 = arith.constant 1 : i32
    %0 = arith.muli %arg0, %c1_i32 : i32
    %1 = arith.addi %0, %arg1 : i32
    %c0_i32 = arith.constant 0 : i32
    %c0_i32_0 = arith.constant 0 : i32
    return %1, %c0_i32 : i32, i32
  }
  func.func @transform_3(%arg0: i32, %arg1: i32) -> (i32, i32) {
    %c0_i32 = arith.constant 0 : i32
    %c0_i32_0 = arith.constant 0 : i32
    %c0_i32_1 = arith.constant 0 : i32
    return %c0_i32, %c0_i32_0 : i32, i32
  }
  func.func @transform_4(%arg0: i32, %arg1: i32) -> (i32, i32) {
    %c0_i32 = arith.constant 0 : i32
    %c0_i32_0 = arith.constant 0 : i32
    %c0_i32_1 = arith.constant 0 : i32
    return %c0_i32, %c0_i32_0 : i32, i32
  }
  func.func @transform_5(%arg0: i32, %arg1: i32) -> (i32, i32) {
    %c1_i32 = arith.constant 1 : i32
    %0 = arith.muli %arg0, %c1_i32 : i32
    %1 = arith.addi %0, %arg1 : i32
    %c0_i32 = arith.constant 0 : i32
    %c0_i32_0 = arith.constant 0 : i32
    return %1, %c0_i32 : i32, i32
  }
}

module attributes {stable_mosaic.version = 11 : i64} {
  func.func @_ln_matmul_kernel(%arg0: i32, %arg1: memref<2x128xbf16, #tpu.memory_space<vmem>>, %arg2: memref<1x128xf32, #tpu.memory_space<vmem>>, %arg3: memref<1x128xf32, #tpu.memory_space<vmem>>, %arg4: memref<128x128xbf16, #tpu.memory_space<vmem>>, %arg5: memref<1x128xf32, #tpu.memory_space<vmem>>, %arg6: memref<2x128xf32, #tpu.memory_space<vmem>>) attributes {dimension_semantics = [#tpu.dimension_semantics<parallel>], iteration_bounds = array<i64: 1>, scalar_prefetch = 0 : i64, scratch_operands = 0 : i64, tpu.core_type = #tpu.core_type<tc>, window_params = [{transform_indices = @transform_0, window_bounds = array<i64: 2, 128>}, {pipeline_mode = #tpu.pipeline_mode<synchronous>, transform_indices = @transform_1, window_bounds = array<i64: 1, 128>}, {pipeline_mode = #tpu.pipeline_mode<synchronous>, transform_indices = @transform_2, window_bounds = array<i64: 1, 128>}, {pipeline_mode = #tpu.pipeline_mode<synchronous>, transform_indices = @transform_3, window_bounds = array<i64: 128, 128>}, {pipeline_mode = #tpu.pipeline_mode<synchronous>, transform_indices = @transform_4, window_bounds = array<i64: 1, 128>}, {transform_indices = @transform_5, window_bounds = array<i64: 2, 128>}]} {
    %c0 = arith.constant 0 : index
    %c0_0 = arith.constant 0 : index
    %0 = vector.load %arg1[%c0, %c0_0] : memref<2x128xbf16, #tpu.memory_space<vmem>>, vector<2x128xbf16>
    %1 = arith.extf %0 : vector<2x128xbf16> to vector<2x128xf32>
    %cst = arith.constant dense<0.000000e+00> : vector<2xf32>
    %2 = vector.multi_reduction <add>, %1, %cst [1] : vector<2x128xf32> to vector<2xf32>
    %3 = vector.shape_cast %2 : vector<2xf32> to vector<2x1xf32>
    %cst_1 = arith.constant 1.280000e+02 : f32
    %4 = vector.broadcast %cst_1 : f32 to vector<2x1xf32>
    %5 = arith.divf %3, %4 : vector<2x1xf32>
    %6 = vector.broadcast %5 : vector<2x1xf32> to vector<2x128xf32>
    %7 = arith.subf %1, %6 : vector<2x128xf32>
    %8 = arith.mulf %7, %7 : vector<2x128xf32>
    %cst_2 = arith.constant dense<0.000000e+00> : vector<2xf32>
    %9 = vector.multi_reduction <add>, %8, %cst_2 [1] : vector<2x128xf32> to vector<2xf32>
    %10 = vector.shape_cast %9 : vector<2xf32> to vector<2x1xf32>
    %cst_3 = arith.constant 1.280000e+02 : f32
    %11 = vector.broadcast %cst_3 : f32 to vector<2x1xf32>
    %12 = arith.divf %10, %11 : vector<2x1xf32>
    %13 = vector.broadcast %5 : vector<2x1xf32> to vector<2x128xf32>
    %14 = arith.subf %1, %13 : vector<2x128xf32>
    %cst_4 = arith.constant 9.99999997E-7 : f32
    %15 = vector.broadcast %cst_4 : f32 to vector<2x1xf32>
    %16 = arith.addf %12, %15 : vector<2x1xf32>
    %17 = math.rsqrt %16 : vector<2x1xf32>
    %18 = vector.broadcast %17 : vector<2x1xf32> to vector<2x128xf32>
    %19 = arith.mulf %14, %18 : vector<2x128xf32>
    %c0_5 = arith.constant 0 : index
    %c0_6 = arith.constant 0 : index
    %20 = vector.load %arg2[%c0_5, %c0_6] : memref<1x128xf32, #tpu.memory_space<vmem>>, vector<1x128xf32>
    %21 = vector.broadcast %20 : vector<1x128xf32> to vector<2x128xf32>
    %22 = arith.mulf %19, %21 : vector<2x128xf32>
    %c0_7 = arith.constant 0 : index
    %c0_8 = arith.constant 0 : index
    %23 = vector.load %arg3[%c0_7, %c0_8] : memref<1x128xf32, #tpu.memory_space<vmem>>, vector<1x128xf32>
    %24 = vector.broadcast %23 : vector<1x128xf32> to vector<2x128xf32>
    %25 = arith.addf %22, %24 : vector<2x128xf32>
    %26 = arith.truncf %25 : vector<2x128xf32> to vector<2x128xbf16>
    %c0_9 = arith.constant 0 : index
    %c0_10 = arith.constant 0 : index
    %27 = vector.load %arg4[%c0_9, %c0_10] : memref<128x128xbf16, #tpu.memory_space<vmem>>, vector<128x128xbf16>
    %cst_11 = arith.constant dense<0.000000e+00> : vector<2x128xf32>
    %28 = tpu.matmul %26, %27, %cst_11 {dimension_numbers = #tpu.dot_dimension_numbers<[1], [0], [0], [1], [0, 0, 1, 1], [], []>} : vector<2x128xbf16>, vector<128x128xbf16>, vector<2x128xf32> -> vector<2x128xf32>
    %c0_12 = arith.constant 0 : index
    %c0_13 = arith.constant 0 : index
    %29 = vector.load %arg5[%c0_12, %c0_13] : memref<1x128xf32, #tpu.memory_space<vmem>>, vector<1x128xf32>
    %30 = vector.broadcast %29 : vector<1x128xf32> to vector<2x128xf32>
    %31 = arith.addf %28, %30 : vector<2x128xf32>
    %c0_14 = arith.constant 0 : index
    %c0_15 = arith.constant 0 : index
    %32 = vector.load %arg6[%c0_14, %c0_15] : memref<2x128xf32, #tpu.memory_space<vmem>>, vector<2x128xf32>
    tpu.vector_store %arg6[%c0_14, %c0_15], %31 {strides = array<i32>} : memref<2x128xf32, #tpu.memory_space<vmem>>, vector<2x128xf32>,
    return
  }
  func.func @transform_0(%arg0: i32) -> (i32, i32) {
    %c0_i32 = arith.constant 0 : i32
    %c0_i32_0 = arith.constant 0 : i32
    return %arg0, %c0_i32 : i32, i32
  }
  func.func @transform_1(%arg0: i32) -> (i32, i32) {
    %c0_i32 = arith.constant 0 : i32
    %c0_i32_0 = arith.constant 0 : i32
    %c0_i32_1 = arith.constant 0 : i32
    return %c0_i32, %c0_i32_0 : i32, i32
  }
  func.func @transform_2(%arg0: i32) -> (i32, i32) {
    %c0_i32 = arith.constant 0 : i32
    %c0_i32_0 = arith.constant 0 : i32
    %c0_i32_1 = arith.constant 0 : i32
    return %c0_i32, %c0_i32_0 : i32, i32
  }
  func.func @transform_3(%arg0: i32) -> (i32, i32) {
    %c0_i32 = arith.constant 0 : i32
    %c0_i32_0 = arith.constant 0 : i32
    %c0_i32_1 = arith.constant 0 : i32
    return %c0_i32, %c0_i32_0 : i32, i32
  }
  func.func @transform_4(%arg0: i32) -> (i32, i32) {
    %c0_i32 = arith.constant 0 : i32
    %c0_i32_0 = arith.constant 0 : i32
    %c0_i32_1 = arith.constant 0 : i32
    return %c0_i32, %c0_i32_0 : i32, i32
  }
  func.func @transform_5(%arg0: i32) -> (i32, i32) {
    %c0_i32 = arith.constant 0 : i32
    %c0_i32_0 = arith.constant 0 : i32
    return %arg0, %c0_i32 : i32, i32
  }
}

</mosaic_0001>

<bundles_post_ra>
// kernel: insect_model_forward.8
= control target key start
LH: loop header
LB: loop body
LE: loop exit
PB: predicated region body
PF: predicated region fallthrough
CT: control target
= control target key end

     0   :  { %s894_s1 = inlined_call_operand.vmem [shape: bf16[768,128], index: 1, kind: input, shape index: {}]   ;;  %s895_s0 = inlined_call_operand.vmem [shape: f32[8,768], index: 0, kind: input, shape index: {}]   ;;  %s896_s2 = inlined_call_operand.vmem [shape: f32[1,128], index: 2, kind: input, shape index: {}]   ;;  %s897_s3 = inlined_call_operand.vmem [shape: f32[8,128], index: 3, kind: output, shape index: {}]  }
   0x1   :  { %v658_v0 = vld [vmem:[%s894_s1 + $0x78] sm:$0xff]   ;;  %v662_v4 = vld [vmem:[%s894_s1 + $0x70] sm:$0xff]   ;;  %v666_v8 = vld [vmem:[%s894_s1 + $0x68] sm:$0xff]  }
   0x2   :  { %v659_v1 = vld [vmem:[%s894_s1 + $0x38] sm:$0xff]   ;;  %592 = vmatprep.subr.bf16.mxu0 %v658_v0  ;;  %v663_v5 = vld [vmem:[%s894_s1 + $0x30] sm:$0xff]   ;;  %v667_v9 = vld [vmem:[%s894_s1 + $0x28] sm:$0xff]  }
   0x3   :  { %v660_v2 = vld [vmem:[%s894_s1 + $0xf8] sm:$0xff]   ;;  %593 = vmatpush3.bf16.msra.mxu0 %v659_v1  ;;  %v664_v6 = vld [vmem:[%s894_s1 + $0xf0] sm:$0xff]   ;;  %v668_v10 = vld [vmem:[%s894_s1 + $0xe8] sm:$0xff]  }
   0x4   :  { %v661_v3 = vld [vmem:[%s894_s1 + $0xb8] sm:$0xff]   ;;  %614 = vmatprep.subr.bf16.mxu1 %v660_v2  ;;  %594 = vmatprep.subr.bf16.mxu0 %v662_v4  ;;  %v665_v7 = vld [vmem:[%s894_s1 + $0xb0] sm:$0xff]   ;;  %v669_v11 = vld [vmem:[%s894_s1 + $0xa8] sm:$0xff]  }
   0x5   :  { %615 = vmatpush3.bf16.msra.mxu1 %v661_v3  ;;  %v670_v12 = vld [vmem:[%s894_s1 + $0x60] sm:$0xff]   ;;  %v674_v16 = vld [vmem:[%s894_s1 + $0x58] sm:$0xff]   ;;  %v678_v20 = vld [vmem:[%s894_s1 + $0x50] sm:$0xff]  }
   0x6   :  { %616 = vmatprep.subr.bf16.mxu1 %v664_v6  ;;  %v671_v13 = vld [vmem:[%s894_s1 + $0x20] sm:$0xff]   ;;  %v675_v17 = vld [vmem:[%s894_s1 + $0x18] sm:$0xff]   ;;  %v679_v21 = vld [vmem:[%s894_s1 + $0x10] sm:$0xff]  }
   0x7   :  { %595 = vmatpush3.bf16.msra.mxu0 %v663_v5  ;;  %v672_v14 = vld [vmem:[%s894_s1 + $0xe0] sm:$0xff]   ;;  %v676_v18 = vld [vmem:[%s894_s1 + $0xd8] sm:$0xff]   ;;  %v680_v22 = vld [vmem:[%s894_s1 + $0xd0] sm:$0xff]  }
   0x8   :  { %596 = vmatprep.subr.bf16.mxu0 %v666_v8  ;;  %v673_v15 = vld [vmem:[%s894_s1 + $0xa0] sm:$0xff]   ;;  %v677_v19 = vld [vmem:[%s894_s1 + $0x98] sm:$0xff]   ;;  %v681_v23 = vld [vmem:[%s894_s1 + $0x90] sm:$0xff]  }
   0x9   :  { %617 = vmatpush3.bf16.msra.mxu1 %v665_v7  ;;  %v682_v24 = vld [vmem:[%s894_s1 + $0x48] sm:$0xff]   ;;  %v686_v28 = vld [vmem:[%s894_s1 + $0x40] sm:$0xff]   ;;  %v690_v36 = vld [vmem:[%s894_s1 + $0x178] sm:$0xff]  }
   0xa   :  { %618 = vmatprep.subr.bf16.mxu1 %v668_v10  ;;  %v683_v25 = vld [vmem:[%s894_s1 + $0x8] sm:$0xff]   ;;  %v687_v29 = vld [vmem:[%s894_s1] sm:$0xff]   ;;  %v18_v37 = vld [vmem:[%s895_s0 + $0x18] sm:$0xff] }
   0xb   :  { %597 = vmatpush3.bf16.msra.mxu0 %v667_v9  ;;  %v684_v26 = vld [vmem:[%s894_s1 + $0xc8] sm:$0xff]   ;;  %v688_v30 = vld [vmem:[%s894_s1 + $0xc0] sm:$0xff]   ;;  %v24_v38 = vpack.c.bf16 %v18_v37, %v18_v37  ;;  %v691_v39 = vld [vmem:[%s894_s1 + $0x138] sm:$0xff]  }
   0xc   :  { %598 = vmatprep.subr.bf16.mxu0 %v670_v12  ;;  %v685_v27 = vld [vmem:[%s894_s1 + $0x88] sm:$0xff]   ;;  %v689_v33 = vld [vmem:[%s894_s1 + $0x80] sm:$0xff]   ;;  %v17_v40 = vld [vmem:[%s895_s0 + $0x10] sm:$0xff] }
   0xd   :  { %619 = vmatpush3.bf16.msra.mxu1 %v669_v11  ;;  %v16_v31 = vld [vmem:[%s895_s0 + $0x8] sm:$0xff]  ;;  %v15_v34 = vld [vmem:[%s895_s0] sm:$0xff]  ;;  %490 = vmatprep.mubr.bf16.mxu1 %v24_v38  ;;  %v23_v41 = vpack.c.bf16 %v17_v40, %v17_v40  ;;  %v692_v42 = vld [vmem:[%s894_s1 + $0x170] sm:$0xff]  }
   0xe   :  { %620 = vmatprep.subr.bf16.mxu1 %v672_v14  ;;  %v22_v32 = vpack.c.bf16 %v16_v31, %v16_v31  ;;  %v21_v35 = vpack.c.bf16 %v15_v34, %v15_v34  ;;  %v693_v43 = vld [vmem:[%s894_s1 + $0x130] sm:$0xff]   ;;  %v694_v44 = vld [vmem:[%s894_s1 + $0x168] sm:$0xff]   ;;  %v696_v46 = vld [vmem:[%s894_s1 + $0x160] sm:$0xff]  }
   0xf   :  { %599 = vmatpush3.bf16.msra.mxu0 %v671_v13  ;;  %v695_v45 = vld [vmem:[%s894_s1 + $0x128] sm:$0xff]   ;;  %v697_v47 = vld [vmem:[%s894_s1 + $0x120] sm:$0xff]   ;;  %v698_v48 = vld [vmem:[%s894_s1 + $0x158] sm:$0xff]  }
  0x10   :  { %600 = vmatprep.subr.bf16.mxu0 %v674_v16  ;;  %450 = vmatprep.mubr.bf16.mxu0 %v22_v32  ;;  %v699_v49 = vld [vmem:[%s894_s1 + $0x118] sm:$0xff]   ;;  %v700_v50 = vld [vmem:[%s894_s1 + $0x150] sm:$0xff]   ;;  %v20_v51 = vld [vmem:[%s895_s0 + $0x28] sm:$0xff] }
  0x11   :  { %621 = vmatpush3.bf16.msra.mxu1 %v673_v15  ;;  %v26_v52 = vpack.c.bf16 %v20_v51, %v20_v51  ;;  %v701_v53 = vld [vmem:[%s894_s1 + $0x110] sm:$0xff]   ;;  %v702_v54 = vld [vmem:[%s894_s1 + $0x148] sm:$0xff]   ;;  %v704_v56 = vld [vmem:[%s894_s1 + $0x140] sm:$0xff]  }
  0x12   :  { %622 = vmatprep.subr.bf16.mxu1 %v676_v18  ;;  %v703_v55 = vld [vmem:[%s894_s1 + $0x108] sm:$0xff]   ;;  %v705_v57 = vld [vmem:[%s894_s1 + $0x100] sm:$0xff]  }
  0x13   :  { %601 = vmatpush3.bf16.msra.mxu0 %v675_v17  ;;  %v19_v58 = vld [vmem:[%s895_s0 + $0x20] sm:$0xff] }
  0x14   :  { %602 = vmatprep.subr.bf16.mxu0 %v678_v20  ;;  %v25_v59 = vpack.c.bf16 %v19_v58, %v19_v58  ;;  %v543_v5 = vld [vmem:[%s896_s2] ss:$0 sm:$0xff] }
  0x15   :  { %623 = vmatpush3.bf16.msra.mxu1 %v677_v19 }
  0x16   :  { %624 = vmatprep.subr.bf16.mxu1 %v680_v22 }
  0x17   :  { %603 = vmatpush3.bf16.msra.mxu0 %v679_v21 }
  0x18   :  { %604 = vmatprep.subr.bf16.mxu0 %v682_v24 }
  0x19   :  { %625 = vmatpush3.bf16.msra.mxu1 %v681_v23 }
  0x1a   :  { %626 = vmatprep.subr.bf16.mxu1 %v684_v26 }
  0x1b   :  { %605 = vmatpush3.bf16.msra.mxu0 %v683_v25 }
  0x1c   :  { %606 = vmatprep.subr.bf16.mxu0 %v686_v28 }
  0x1d   :  { %627 = vmatpush3.bf16.msra.mxu1 %v685_v27 }
  0x1e   :  { %628 = vmatprep.subr.bf16.mxu1 %v688_v30 }
  0x1f   :  { %607 = vmatpush3.bf16.msra.mxu0 %v687_v29 }
  0x20   :  { %636 = vmatprep.subr.bf16.mxu0 %v690_v36 }
  0x21   :  { %629 = vmatpush3.bf16.msra.mxu1 %v689_v33 }
  0x22   :  { %451 = vmatmul.mubr.bf16.vlgmr.msra.gmra.mxu0 %v21_v35 }
  0x23   :  { %637 = vmatpush3.bf16.msra.mxu0 %v691_v39  ;;  %530 = vmatprep.mubr.bf16.mxu0 %v26_v52 }
  0x24   :  { %491 = vmatmul.mubr.bf16.vlgmr.msra.gmra.mxu1 %v23_v41  ;;  %638 = vmatprep.subr.bf16.mxu0 %v692_v42 }
  0x27   :  { %639 = vmatpush3.bf16.msra.mxu0 %v693_v43 }
  0x28   :  { %640 = vmatprep.subr.bf16.mxu0 %v694_v44 }
  0x2b   :  { %641 = vmatpush3.bf16.msra.mxu0 %v695_v45 }
  0x2c   :  { %642 = vmatprep.subr.bf16.mxu0 %v696_v46 }
  0x2f   :  { %643 = vmatpush3.bf16.msra.mxu0 %v697_v47 }
  0x30   :  { %644 = vmatprep.subr.bf16.mxu0 %v698_v48 }
  0x33   :  { %645 = vmatpush3.bf16.msra.mxu0 %v699_v49 }
  0x34   :  { %646 = vmatprep.subr.bf16.mxu0 %v700_v50 }
  0x37   :  { %647 = vmatpush3.bf16.msra.mxu0 %v701_v53 }
  0x38   :  { %648 = vmatprep.subr.bf16.mxu0 %v702_v54 }
  0x3b   :  { %649 = vmatpush3.bf16.msra.mxu0 %v703_v55 }
  0x3c   :  { %650 = vmatprep.subr.bf16.mxu0 %v704_v56 }
  0x3f   :  { %651 = vmatpush3.bf16.msra.mxu0 %v705_v57 }
  0x42   :  { %531 = vmatmul.mubr.bf16.vlgmr.msra.gmra.mxu0 %v25_v59 }
  0xe2   :  { %v608_v60 = vpop.f32.mrf.mxu0 }
  0xe4   :  { %v609_v61 = vpop.f32.mrf.mxu0  ;;  %v630_v62 = vpop.f32.mrf.mxu1 }
  0xe5   :  { %v610_v4 = vadd.f32 %v609_v61, %v608_v60 }
  0xe6   :  { %v611_v63 = vpop.f32.mrf.mxu0  ;;  %v631_v0 = vpop.f32.mrf.mxu1 }
  0xe7   :  { %v453_v6 = vadd.f32 %v610_v4, %v543_v5  ;;  %v632_v7 = vadd.f32 %v631_v0, %v630_v62 }
  0xe8   :  { %v612_v1 = vpop.f32.mrf.mxu0  ;;  %v633_v2 = vpop.f32.mrf.mxu1 }
  0xe9   :  { %v493_v10 = vadd.f32 %v632_v7, %v453_v6 }
  0xea   :  { %v634_v3 = vpop.f32.mrf.mxu1 }
 0x102   :  { %v652_v8 = vpop.f32.mrf.mxu0 }
 0x104   :  { %v653_v9 = vpop.f32.mrf.mxu0 }
 0x105   :  { %v654_v11 = vadd.f32 %v653_v9, %v652_v8 }
 0x106   :  { %v655_v12 = vpop.f32.mrf.mxu0 }
 0x107   :  { %v533_v13 = vadd.f32 %v654_v11, %v493_v10 }
 0x108   :  { %v656_v14 = vpop.f32.mrf.mxu0 }
 0x109   :  { %538 = vst [vmem:[%s897_s3] sm:$0xff] %v533_v13 }

// kernel: insect_model_forward.9
= control target key start
LH: loop header
LB: loop body
LE: loop exit
PB: predicated region body
PF: predicated region fallthrough
CT: control target
= control target key end

     0   :  { %v551_v41 = vmov 0   ;;  %s713_s0 = inlined_call_operand.vmem [shape: bf16[32,128], index: 0, kind: input, shape index: {}]   ;;  %s714_s3 = inlined_call_operand.vmem [shape: bf16[128,384], index: 3, kind: input, shape index: {}]   ;;  %s715_s1 = inlined_call_operand.vmem [shape: f32[1,128], index: 1, kind: input, shape index: {}]   ;;  %s716_s2 = inlined_call_operand.vmem [shape: f32[1,128], index: 2, kind: input, shape index: {}]   ;;  %s717_s4 = inlined_call_operand.vmem [shape: f32[1,384], index: 4, kind: input, shape index: {}]   ;;  %s718_s5 = inlined_call_operand.vmem [shape: bf16[32,384], index: 5, kind: output, shape index: {}]  }
   0x1   :  { %v472_v0 = vld [vmem:[%s713_s0] sm:$0xff]   ;;  %v479_v1 = vld [vmem:[%s713_s0 + $0x8] sm:$0xff]   ;;  %v516_v25 = vld [vmem:[%s714_s3 + $0xb0] ss:$12 sps:$4 sm:$0xff]   ;;  %307 = vmatprep.mubr.bf16.mxu0 %v551_v41 }
   0x2   :  { %v473_v2 = vunpack.c.l.bf16 %v472_v0  ;;  %v477_v3 = vunpack.c.l.bf16 %v479_v1  ;;  %v474_v4 = vunpack.c.h.bf16 %v472_v0  ;;  %v478_v5 = vunpack.c.h.bf16 %v479_v1  ;;  %v511_v6 = vld [vmem:[%s714_s3 + $0xac] ss:$12 sps:$4 sm:$0xff]   ;;  %v513_v7 = vld [vmem:[%s714_s3 + $0xa8] ss:$12 sps:$4 sm:$0xff]   ;;  %v517_v26 = vld [vmem:[%s714_s3 + $0x90] ss:$12 sps:$4 sm:$0xff]   ;;  %490 = vmatprep.subr.bf16.mxu1 %v516_v25 }
   0x3   :  { %275 = vmatprep.subr.bf16.mxu0 %v511_v6  ;;  %v514_v24 = vld [vmem:[%s714_s3 + $0x94] ss:$12 sps:$4 sm:$0xff]   ;;  %491 = vmatpush3.bf16.msra.mxu1 %v516_v25  ;;  %v518_v27 = vld [vmem:[%s714_s3 + $0x7c] ss:$12 sps:$4 sm:$0xff]   ;;  %v520_v28 = vld [vmem:[%s714_s3 + $0x98] ss:$12 sps:$4 sm:$0xff]  }
   0x4   :  { %29 = vadd.xlane.f32.xlu0 %v473_v2  ;;  %33 = vadd.xlane.f32.xlu1 %v477_v3  ;;  %v521_v29 = vld [vmem:[%s714_s3 + $0x78] ss:$12 sps:$4 sm:$0xff]   ;;  %v524_v31 = vld [vmem:[%s714_s3 + $0x80] ss:$12 sps:$4 sm:$0xff]   ;;  %v528_v34 = vld [vmem:[%s714_s3 + $0x68] ss:$12 sps:$4 sm:$0xff]  }
   0x5   :  { %276 = vmatpush1.bf16.msra.mxu0 %v513_v7  ;;  %492 = vmatprep.subr.bf16.mxu1 %v520_v28  ;;  %v522_v30 = vld [vmem:[%s714_s3 + $0x64] ss:$12 sps:$4 sm:$0xff]   ;;  %v525_v32 = vld [vmem:[%s714_s3 + $0x60] ss:$12 sps:$4 sm:$0xff]   ;;  %v529_v35 = vld [vmem:[%s714_s3 + $0x48] ss:$12 sps:$4 sm:$0xff]  }
   0x6   :  { %277 = vmatprep.subr.bf16.mxu0 %v514_v24  ;;  %v526_v33 = vld [vmem:[%s714_s3 + $0x4c] ss:$12 sps:$4 sm:$0xff]   ;;  %v530_v36 = vld [vmem:[%s714_s3 + $0x34] ss:$12 sps:$4 sm:$0xff]   ;;  %v532_v37 = vld [vmem:[%s714_s3 + $0x50] ss:$12 sps:$4 sm:$0xff]  }
   0x7   :  { %493 = vmatpush3.bf16.msra.mxu1 %v520_v28  ;;  %v533_v38 = vld [vmem:[%s714_s3 + $0x30] ss:$12 sps:$4 sm:$0xff]   ;;  %v536_v40 = vld [vmem:[%s714_s3 + $0x38] ss:$12 sps:$4 sm:$0xff]   ;;  %v540_v44 = vld [vmem:[%s714_s3 + $0x20] ss:$12 sps:$4 sm:$0xff]  }
   0x8   :  { %31 = vadd.xlane.f32.xlu0 %v474_v4  ;;  %35 = vadd.xlane.f32.xlu1 %v478_v5  ;;  %v534_v39 = vld [vmem:[%s714_s3 + $0x1c] ss:$12 sps:$4 sm:$0xff]   ;;  %v537_v42 = vld [vmem:[%s714_s3 + $0x18] ss:$12 sps:$4 sm:$0xff]   ;;  %v541_v45 = vld [vmem:[%s714_s3] ss:$12 sps:$4 sm:$0xff]  }
   0x9   :  { %278 = vmatpush1.bf16.msra.mxu0 %v517_v26  ;;  %494 = vmatprep.subr.bf16.mxu1 %v524_v31  ;;  %v538_v43 = vld [vmem:[%s714_s3 + $0x4] ss:$12 sps:$4 sm:$0xff]   ;;  %v542_v46 = vld [vmem:[%s714_s3 + $0x8] ss:$12 sps:$4 sm:$0xff]   ;;  %v429_v61 = vld [vmem:[%s715_s1] ss:$0 sm:$0xff] }
   0xa   :  { %279 = vmatprep.subr.bf16.mxu0 %v518_v27 }
   0xb   :  { %495 = vmatpush3.bf16.msra.mxu1 %v524_v31 }
   0xc   :  { %496 = vmatprep.subr.bf16.mxu1 %v528_v34 }
   0xd   :  { %280 = vmatpush1.bf16.msra.mxu0 %v521_v29 }
   0xe   :  { %281 = vmatprep.subr.bf16.mxu0 %v522_v30 }
   0xf   :  { %497 = vmatpush3.bf16.msra.mxu1 %v528_v34 }
  0x10   :  { %498 = vmatprep.subr.bf16.mxu1 %v532_v37 }
  0x11   :  { %282 = vmatpush1.bf16.msra.mxu0 %v525_v32 }
  0x12   :  { %283 = vmatprep.subr.bf16.mxu0 %v526_v33 }
  0x13   :  { %499 = vmatpush3.bf16.msra.mxu1 %v532_v37 }
  0x14   :  { %500 = vmatprep.subr.bf16.mxu1 %v536_v40 }
  0x15   :  { %284 = vmatpush1.bf16.msra.mxu0 %v529_v35 }
  0x16   :  { %285 = vmatprep.subr.bf16.mxu0 %v530_v36 }
  0x17   :  { %501 = vmatpush3.bf16.msra.mxu1 %v536_v40 }
  0x18   :  { %502 = vmatprep.subr.bf16.mxu1 %v540_v44 }
  0x19   :  { %286 = vmatpush1.bf16.msra.mxu0 %v533_v38 }
  0x1a   :  { %287 = vmatprep.subr.bf16.mxu0 %v534_v39 }
  0x1b   :  { %503 = vmatpush3.bf16.msra.mxu1 %v540_v44 }
  0x1c   :  { %504 = vmatprep.subr.bf16.mxu1 %v542_v46 }
  0x1d   :  { %288 = vmatpush1.bf16.msra.mxu0 %v537_v42 }
  0x1e   :  { %289 = vmatprep.subr.bf16.mxu0 %v538_v43 }
  0x1f   :  { %505 = vmatpush3.bf16.msra.mxu1 %v542_v46 }
  0x21   :  { %290 = vmatpush1.bf16.msra.mxu0 %v541_v45 }
  0x8d   :  { %v30_v8 = vpop.xlane.xlu0 %29  ;;  %v34_v9 = vpop.xlane.xlu1 %33 }
  0x8e   :  { %v38_v10 = vmul.f32 0.0078125, %v30_v8  ;;  %v40_v11 = vmul.f32 0.0078125, %v34_v9 }
  0x90   :  { %v594_v12 = vsub.f32 %v473_v2, %v38_v10  ;;  %v596_v13 = vsub.f32 %v477_v3, %v40_v11  ;;  %v430_v2 = vld [vmem:[%s716_s2] ss:$0 sm:$0xff] }
  0x91   :  { %v32_v14 = vpop.xlane.xlu0 %31  ;;  %v36_v15 = vpop.xlane.xlu1 %35 }
  0x92   :  { %v39_v16 = vmul.f32 0.0078125, %v32_v14  ;;  %v46_v17 = vmul.f32 %v594_v12, %v594_v12  ;;  %v41_v18 = vmul.f32 0.0078125, %v36_v15  ;;  %v48_v21 = vmul.f32 %v596_v13, %v596_v13 }
  0x94   :  { %v600_v19 = vsub.f32 %v474_v4, %v39_v16  ;;  %50 = vadd.xlane.f32.xlu0 %v46_v17  ;;  %v602_v20 = vsub.f32 %v478_v5, %v41_v18  ;;  %v132_v16 = vlaneseq }
  0x96   :  { %v47_v22 = vmul.f32 %v600_v19, %v600_v19  ;;  %v49_v23 = vmul.f32 %v602_v20, %v602_v20  ;;  %v133_v17 = vshrl.u32 %v132_v16, 7 }
  0x98   :  { %54 = vadd.xlane.f32.xlu0 %v48_v21  ;;  %52 = vadd.xlane.f32.xlu1 %v47_v22  ;;  %v138_v18 = vsub.s32 1, %v133_v17 }
  0x9c   :  { %56 = vadd.xlane.f32.xlu1 %v49_v23 }
 0x11d   :  { %v51_v47 = vpop.xlane.xlu0 %50 }
 0x11e   :  { %v58_v48 = vmul.f32 0.0078125, %v51_v47 }
 0x120   :  { %v62_v49 = vadd.f32 1e-06, %v58_v48 }
 0x121   :  { %v53_v50 = vpop.xlane.xlu1 %52  ;;  %v55_v51 = vpop.xlane.xlu0 %54 }
 0x122   :  { %543 = vrsqrt.f32 %v62_v49  ;;  %v59_v52 = vmul.f32 0.0078125, %v53_v50  ;;  %v60_v53 = vmul.f32 0.0078125, %v55_v51 }
 0x124   :  { %v63_v54 = vadd.f32 1e-06, %v59_v52  ;;  %v64_v55 = vadd.f32 1e-06, %v60_v53 }
 0x125   :  { %v57_v56 = vpop.xlane.xlu1 %56 }
 0x126   :  { %545 = vrsqrt.f32 %v63_v54  ;;  %v61_v57 = vmul.f32 0.0078125, %v57_v56 }
 0x127   :  { %547 = vrsqrt.f32 %v64_v55 }
 0x128   :  { %v65_v58 = vadd.f32 1e-06, %v61_v57 }
 0x12a   :  { %549 = vrsqrt.f32 %v65_v58 }
 0x12f   :  { %v544_v59 = vpop.eup %543 }
 0x130   :  { %v70_v60 = vmul.f32 %v544_v59, %v594_v12 }
 0x132   :  { %v81_v1 = vmul.f32 %v429_v61, %v70_v60 }
 0x133   :  { %v546_v62 = vpop.eup %545 }
 0x134   :  { %v548_v63 = vpop.eup %547  ;;  %v71_v0 = vmul.f32 %v546_v62, %v600_v19  ;;  %v92_v6 = vadd.f32 %v430_v2, %v81_v1  ;;  %v130_v19 = vld [vmem:[%s717_s4] sm:$0x7] }
 0x135   :  { %v72_v3 = vmul.f32 %v548_v63, %v596_v13  ;;  %v134_v13 = vsub.s32 0, %v133_v17  ;;  %v139_v22 = vrot.slane %v130_v19, %v138_v18 }
 0x136   :  { %v82_v4 = vmul.f32 %v429_v61, %v71_v0 }
 0x137   :  { %v550_v5 = vpop.eup %549  ;;  %v83_v9 = vmul.f32 %v429_v61, %v72_v3  ;;  %v135_v21 = vrot.slane %v130_v19, %v134_v13 }
 0x138   :  { %v93_v7 = vadd.f32 %v430_v2, %v82_v4  ;;  %v73_v8 = vmul.f32 %v550_v5, %v602_v20  ;;  %v142_v20 = vsub.s32 2, %v133_v17 }
 0x139   :  { %v94_v12 = vadd.f32 %v430_v2, %v83_v9 }
 0x13a   :  { %v96_v10 = vpack.c.bf16 %v93_v7, %v92_v6  ;;  %v84_v11 = vmul.f32 %v429_v61, %v73_v8  ;;  %v143_v24 = vrot.slane %v130_v19, %v142_v20 }
 0x13c   :  { %308 = vmatmul.mubr.bf16.vlgmr.msra.gmra.mxu0 %v96_v10  ;;  %506 = vmatprep.mubr.bf16.mxu1 %v96_v10  ;;  %v95_v14 = vadd.f32 %v430_v2, %v84_v11 }
 0x13d   :  { %317 = vmatprep.mubr.bf16.mxu0 %v551_v41 }
 0x13e   :  { %v97_v15 = vpack.c.bf16 %v95_v14, %v94_v12 }
 0x140   :  { %507 = vmatmul.mubr.bf16.vlgmr.msra.gmra.mxu1 %v97_v15 }
 0x144   :  { %318 = vmatmul.mubr.bf16.gmra.mxu0 %v97_v15 }
 0x1fc   :  { %v309_v23 = vpop.f32.mrf.mxu0 }
 0x1fd   :  { %v310_v26 = vadd.f32 %v309_v23, %v135_v21 }
 0x1fe   :  { %v311_v25 = vpop.f32.mrf.mxu0 }
 0x1ff   :  { %v312_v27 = vadd.f32 %v311_v25, %v139_v22 }
 0x200   :  { %v313_v28 = vpop.f32.mrf.mxu0  ;;  %v508_v29 = vpop.f32.mrf.mxu1 }
 0x201   :  { %v463_v30 = vpack.c.bf16 %v312_v27, %v310_v26  ;;  %v371_v31 = vadd.f32 %v508_v29, %v143_v24  ;;  %v314_v34 = vadd.f32 %v313_v28, %v135_v21 }
 0x202   :  { %v315_v32 = vpop.f32.mrf.mxu0  ;;  %v362_v33 = vpop.f32.mrf.mxu1 }
 0x203   :  { %417 = vst [vmem:[%s718_s5] sm:$0xff] %v463_v30  ;;  %v468_v35 = vpack.c.bf16 %v371_v31, %v371_v31  ;;  %v316_v36 = vadd.f32 %v315_v32, %v139_v22  ;;  %v363_v37 = vadd.f32 %v362_v33, %v143_v24 }
 0x204   :  { %v319_v38 = vpop.f32.mrf.mxu0  ;;  %v509_v39 = vpop.f32.mrf.mxu1 }
 0x205   :  { %422 = vst [vmem:[%s718_s5 + $0x20] sm:$0xf] %v468_v35  ;;  %v465_v40 = vpack.c.bf16 %v316_v36, %v314_v34  ;;  %v464_v41 = vpack.c.bf16 %v363_v37, %v363_v37  ;;  %v374_v42 = vadd.f32 %v509_v39, %v143_v24  ;;  %v320_v45 = vadd.f32 %v319_v38, %v135_v21 }
 0x206   :  { %v321_v43 = vpop.f32.mrf.mxu0  ;;  %v365_v44 = vpop.f32.mrf.mxu1 }
 0x207   :  { %419 = vst [vmem:[%s718_s5 + $0xc] sm:$0xff] %v465_v40  ;;  %418 = vst [vmem:[%s718_s5 + $0x8] sm:$0xf] %v464_v41  ;;  %v470_v46 = vpack.c.bf16 %v374_v42, %v374_v42  ;;  %v322_v47 = vadd.f32 %v321_v43, %v139_v22  ;;  %v366_v48 = vadd.f32 %v365_v44, %v143_v24 }
 0x208   :  { %v323_v49 = vpop.f32.mrf.mxu0 }
 0x209   :  { %424 = vst [vmem:[%s718_s5 + $0x2c] sm:$0xf] %v470_v46  ;;  %v467_v50 = vpack.c.bf16 %v322_v47, %v320_v45  ;;  %v466_v51 = vpack.c.bf16 %v366_v48, %v366_v48  ;;  %v324_v53 = vadd.f32 %v323_v49, %v135_v21 }
 0x20a   :  { %v325_v52 = vpop.f32.mrf.mxu0 }
 0x20b   :  { %421 = vst [vmem:[%s718_s5 + $0x18] sm:$0xff] %v467_v50  ;;  %420 = vst [vmem:[%s718_s5 + $0x14] sm:$0xf] %v466_v51  ;;  %v326_v54 = vadd.f32 %v325_v52, %v139_v22 }
 0x20d   :  { %v469_v55 = vpack.c.bf16 %v326_v54, %v324_v53 }
 0x20f   :  { %423 = vst [vmem:[%s718_s5 + $0x24] sm:$0xff] %v469_v55 }

// kernel: insect_model_forward.10
= control target key start
LH: loop header
LB: loop body
LE: loop exit
PB: predicated region body
PF: predicated region fallthrough
CT: control target
= control target key end

     0   :  { %s1488_s18 = smov 0   ;;  %s1490_s19 = smov 0   ;;  %s1678_s0 = inlined_call_operand.vmem [shape: bf16[32,384], index: 0, kind: input, shape index: {}, may-alias: {0,1}]   ;;  %s1679_s1 = inlined_call_operand.vmem [shape: bf16[32,384], index: 1, kind: input, shape index: {}, may-alias: {0,1}]   ;;  %s1680_s2 = inlined_call_operand.vmem [shape: bf16[32,128], index: 2, kind: input, shape index: {}]   ;;  %s1681_s3 = inlined_call_operand.vmem [shape: bf16[128,128], index: 3, kind: input, shape index: {}]   ;;  %s1682_s4 = inlined_call_operand.vmem [shape: f32[1,128], index: 4, kind: input, shape index: {}]   ;;  %s1683_s5 = inlined_call_operand.vmem [shape: bf16[32,128], index: 5, kind: output, shape index: {}]  }
   0x1   :  { %s1492_s20 = smov 0  }
   0x2 LB: > { %s27_s21 = sadd.s32 1, %s1447_s19  ;;  %p1183_p0 = scmp.ge.s32.totalorder %s1451_s20, 1  ;;  %s1451_s20 = sphi %s1492_s20, %s15_s20   ;;  %s1447_s19 = sphi %s1490_s19, %s1685_s19   ;;  %s1443_s18 = sphi %s1488_s18, %s1684_s18  }
   0x3   : > { %p29_p1 = scmp.ge.s32.totalorder %s27_s21, 2  ;;  %p234_p2 = scmp.lt.s32.totalorder %s1451_s20, 3 }
   0x5   : > { %s1687_s21 = smov (%p29_p1, %s27_s21), 0  ;;  %p235_p3 = pnand %p1183_p0, %p234_p2 }
   0x6   : > { %s1184_s22 = sshll.u32 (!%p235_p3), %s1443_s18, 1  ;;  %s1455_s30 = smov (!%p235_p3), 96  }
   0x7   : > { %238 = sbr.rel (%p235_p3) target bundleno = 1296 (0x510), region = 40  ;;  %p279_p4 = scmp.lt.s32.totalorder (!%p235_p3), %s1184_s22, 3 }
   0x8   : > { %s1456_s6 = smov (!%p235_p3), 64   ;;  %s1457_s7 = smov (!%p235_p3), 32  }
   0xc   : > { %v1453_v0 = vmov 0.0   ;;  %vm1454_vm0 = vmmov 0   ;;  %s1689_s22 = smov (!%p279_p4, %s1184_s22), 3  ;;  %vm329_vm1 = vcmask 261120   ;;  %v310_v9 = vlaneseq }
   0xd   : > { %1278 = vmatprep.subr.bf16.mxu0 %v1453_v0  ;;  %1280 = vmatprep.mubr.msk.bf16.mxu0 %vm1454_vm0, %v1453_v0  ;;  %s1346_s23 = smul.u32 12, %s1689_s22  ;;  %vm381_vm3 = vcmask 130048   ;;  %vm463_vm4 = vcmask 257024   ;;  %vm624_vm5 = vcmask 519424   ;;  %vm785_vm6 = vcmask 781824   ;;  %s1189_s28 = sshll.u32 %s1689_s22, 2 }
   0xe   : > { %1302 = vmatprep.subr.bf16.mxu1 %v1453_v0  ;;  %1304 = vmatprep.mubr.msk.bf16.mxu1 %vm1454_vm0, %v1453_v0  ;;  %v1536_v10 = vand.u32 127, %v310_v9  ;;  %vm946_vm7 = vcmask 1044224   ;;  %s306_s10 = scalar_lea.vmem %s1683_s5, %s1189_s28 }
   0xf   : > { %s1518_s26 = scalar_lea.vmem %s1679_s1, %s1346_s23  ;;  %s283_s29 = scalar_lea.vmem %s1678_s0, %s1346_s23 }
  0x10   : > { %v1376_v1 = vld [vmem:[%s1518_s26 + $0x4] ss:$12 sps:$4 sm:$0xff]   ;;  %v1377_v3 = vld [vmem:[%s283_s29] ss:$12 sps:$4 sm:$0xff]   ;;  %vm312_vm2 = vcmp.lt.s32.totalorder %v1536_v10, 5 }
  0x11   : > { %v334_v2 = vsel %vm329_vm1, %v1376_v1, 0  ;;  %v1378_v4 = vld [vmem:[%s1518_s26 + $0x4] ss:$12 sps:$4 sm:$0xff]   ;;  %v1379_v5 = vld [vmem:[%s283_s29] ss:$12 sps:$4 sm:$0xff]  }
  0x12   : > { %1279 = vmatpush3.bf16.xpose.msra.mxu0 %v334_v2  ;;  %484 = vrot.lane.b32.xlu1 %v1378_v4, %s1455_s30  ;;  %v1381_v6 = vld [vmem:[%s283_s29] ss:$12 sps:$4 sm:$0xff]   ;;  %v1382_v7 = vld [vmem:[%s1518_s26 + $0x4] ss:$12 sps:$4 sm:$0xff]   ;;  %v1384_v21 = vld [vmem:[%s1518_s26 + $0x8] ss:$12 sps:$4 sm:$0xff]  }
  0x13   : > { %1284 = vmatprep.subr.bf16.mxu0 %v1453_v0  ;;  %v1383_v8 = vld [vmem:[%s283_s29] ss:$12 sps:$4 sm:$0xff]   ;;  %v1380_v22 = vld [vmem:[%s1518_s26 + $0x4] ss:$12 sps:$4 sm:$0xff]  }
  0x16   : > { %477 = vrot.lane.b32.xlu1 %v1379_v5, %s1455_s30 }
  0x19   : > { %1281 = vmatmul.mubr.msk.bf16.vlgmr.msra.gmra.mxu0 %vm329_vm1, %v1377_v3 }
  0x1a   : > { %1286 = vmatprep.mubr.msk.bf16.mxu0 %vm1454_vm0, %v1453_v0  ;;  %638 = vrot.lane.b32.xlu1 %v1381_v6, %s1456_s6 }
  0x1b   : > { %1285 = vmatpush3.bf16.msra.mxu0 %v1384_v21 }
  0x1c   : > { %1290 = vmatprep.subr.bf16.mxu0 %v1453_v0 }
  0x1e   : > { %806 = vrot.lane.b32.xlu1 %v1382_v7, %s1457_s7 }
  0x22   : > { %799 = vrot.lane.b32.xlu1 %v1383_v8, %s1457_s7 }
  0x84   : > { %v485_v23 = vpop.permute.xlu1 %484 }
  0x85   : > { %v490_v40 = vsel %vm329_vm1, %v485_v23, 0 }
  0x88   : > { %v478_v25 = vpop.permute.xlu1 %477 }
  0x8c   : > { %v639_v30 = vpop.permute.xlu1 %638 }
  0x90   : > { %v807_v34 = vpop.permute.xlu1 %806 }
  0x91   : > { %v812_v35 = vsel %vm329_vm1, %v807_v34, 0 }
  0x94   : > { %v800_v38 = vpop.permute.xlu1 %799 }
  0xd9   : > { %v370_v11 = vpop.f32.mrf.mxu0 }
  0xda   : > { %v377_v12 = vmul.f32 0.17677669, %v370_v11 }
  0xdb   : > { %v1282_v13 = vpop.f32.mrf.mxu0 }
  0xdc   : > { %v379_v14 = vsel %vm312_vm2, %v377_v12, -1e+30  ;;  %v1386_v13 = vld [vmem:[%s1518_s26 + $0x8] ss:$12 sps:$4 sm:$0xff]  }
  0xdd   : > { %v373_v15 = vpop.f32.mrf.mxu0  ;;  %v382_v16 = vsel %vm381_vm3, %v379_v14, -inf }
  0xde   : > { %v378_v17 = vmul.f32 0.17677669, %v373_v15  ;;  %383 = vmax.xlane.f32.xlu0 %v382_v16  ;;  %v1385_v15 = vld [vmem:[%s1518_s26 + $0x8] ss:$12 sps:$4 sm:$0xff]  }
  0xdf   : > { %v1283_v18 = vpop.f32.mrf.mxu0 }
  0xe0   : > { %v380_v19 = vsel %vm312_vm2, %v378_v17, -1e+30 }
  0xe1   : > { %v385_v20 = vsel %vm381_vm3, %v380_v19, -inf }
  0xe2   : > { %386 = vmax.xlane.f32.xlu0 %v385_v20 }
  0xf8   : > { %645 = vrot.lane.b32.xlu0 %v1380_v22, %s1456_s6 }
 0x167   : > { %v384_v24 = vpop.xlane.xlu0 %383 }
 0x168   : > { %v388_v26 = vsub.f32 %v379_v14, %v384_v24  ;;  %v1387_v14 = vld [vmem:[%s1518_s26 + $0x8] ss:$12 sps:$4 sm:$0xff]  }
 0x16a   : > { %v390_v27 = vmul.f32 1.442695, %v388_v26 }
 0x16b   : > { %v387_v28 = vpop.xlane.xlu0 %386 }
 0x16c   : > { %v389_v29 = vsub.f32 %v380_v19, %v387_v28  ;;  %1397 = vpow2.f32 %v390_v27 }
 0x16e   : > { %v392_v31 = vmul.f32 1.442695, %v389_v29 }
 0x16f   : > { %v646_v32 = vpop.permute.xlu0 %645 }
 0x170   : > { %1399 = vpow2.f32 %v392_v31  ;;  %v651_v33 = vsel %vm329_vm1, %v646_v32, 0 }
 0x171   : > { %1303 = vmatpush3.bf16.xpose.msra.mxu1 %v651_v33 }
 0x172   : > { %1314 = vmatprep.subr.bf16.mxu1 %v1453_v0 }
 0x178   : > { %1305 = vmatmul.mubr.msk.bf16.vlgmr.msra.gmra.mxu1 %vm329_vm1, %v639_v30 }
 0x179   : > { %1315 = vmatpush3.bf16.xpose.msra.mxu1 %v812_v35  ;;  %1316 = vmatprep.mubr.msk.bf16.mxu1 %vm1454_vm0, %v1453_v0  ;;  %v1556_v36 = vpop.eup %1397 }
 0x17a   : > { %1326 = vmatprep.subr.bf16.mxu1 %v1453_v0 }
 0x17d   : > { %v1558_v37 = vpop.eup %1399 }
 0x17e   : > { %v400_v39 = vpack.c.bf16 %v1558_v37, %v1556_v36 }
 0x180   : > { %1287 = vmatmul.mubr.msk.bf16.vlgmr.msra.gmra.mxu0 %vm381_vm3, %v400_v39  ;;  %1317 = vmatmul.mubr.msk.bf16.vlgmr.msra.gmra.mxu1 %vm329_vm1, %v800_v38 }
 0x181   : > { %1291 = vmatpush3.bf16.xpose.msra.mxu0 %v490_v40  ;;  %1292 = vmatprep.mubr.msk.bf16.mxu0 %vm1454_vm0, %v1453_v0 }
 0x182   : > { %1296 = vmatprep.subr.bf16.mxu0 %v1453_v0  ;;  %1342 = vmatprep.mubr.msk.bf16.mxu1 %vm1454_vm0, %v1453_v0 }
 0x188   : > { %1293 = vmatmul.mubr.msk.bf16.vlgmr.msra.gmra.mxu0 %vm329_vm1, %v478_v25 }
 0x189   : > { %1298 = vmatprep.mubr.msk.bf16.mxu0 %vm1454_vm0, %v1453_v0 }
 0x238   : > { %v687_v41 = vpop.f32.mrf.mxu1 }
 0x239   : > { %v694_v42 = vmul.f32 0.17677669, %v687_v41 }
 0x23a   : > { %v1306_v43 = vpop.f32.mrf.mxu1 }
 0x23b   : > { %v696_v44 = vsel %vm312_vm2, %v694_v42, -1e+30 }
 0x23c   : > { %v690_v45 = vpop.f32.mrf.mxu1  ;;  %v698_v46 = vsel %vm381_vm3, %v696_v44, -inf }
 0x23d   : > { %v695_v47 = vmul.f32 0.17677669, %v690_v45  ;;  %699 = vmax.xlane.f32.xlu1 %v698_v46 }
 0x23e   : > { %v1307_v48 = vpop.f32.mrf.mxu1 }
 0x23f   : > { %v697_v49 = vsel %vm312_vm2, %v695_v47, -1e+30 }
 0x240   : > { %v1578_v50 = vpop.f32.mrf.mxu0  ;;  %v848_v51 = vpop.f32.mrf.mxu1  ;;  %v701_v52 = vsel %vm381_vm3, %v697_v49, -inf }
 0x241   : > { %v855_v53 = vmul.f32 0.17677669, %v848_v51  ;;  %702 = vmax.xlane.f32.xlu1 %v701_v52 }
 0x242   : > { %v1288_v54 = vpop.f32.mrf.mxu0  ;;  %v1318_v55 = vpop.f32.mrf.mxu1 }
 0x243   : > { %v857_v56 = vsel %vm312_vm2, %v855_v53, -1e+30  ;;  %v394_v53 = vsel %vm381_vm3, %v1556_v36, 0.0  ;;  %v1388_v55 = vld [vmem:[%s1681_s3 + $0x38] sm:$0xff]  }
 0x244   : > { %v1583_v57 = vpop.f32.mrf.mxu0  ;;  %v859_v58 = vsel %vm381_vm3, %v857_v56, -inf  ;;  %v851_v59 = vpop.f32.mrf.mxu1  ;;  %1327 = vmatpush3.bf16.msra.mxu1 %v1388_v55 }
 0x245   : > { %860 = vmax.xlane.f32.xlu0 %v859_v58  ;;  %v856_v63 = vmul.f32 0.17677669, %v851_v59  ;;  %1328 = vmatprep.subr.bf16.mxu1 %v1453_v0 }
 0x246   : > { %v1289_v60 = vpop.f32.mrf.mxu0  ;;  %v1319_v61 = vpop.f32.mrf.mxu1 }
 0x247   : > { %v858_v7 = vsel %vm312_vm2, %v856_v63, -1e+30 }
 0x248   : > { %v526_v62 = vpop.f32.mrf.mxu0  ;;  %v862_v11 = vsel %vm381_vm3, %v858_v7, -inf }
 0x249   : > { %v533_v1 = vmul.f32 0.17677669, %v526_v62 }
 0x24a   : > { %v1294_v2 = vpop.f32.mrf.mxu0 }
 0x24b   : > { %v535_v3 = vsel %vm312_vm2, %v533_v1, -1e+30 }
 0x24c   : > { %v529_v4 = vpop.f32.mrf.mxu0  ;;  %v537_v5 = vsel %vm381_vm3, %v535_v3, -inf }
 0x24d   : > { %v534_v6 = vmul.f32 0.17677669, %v529_v4  ;;  %538 = vmax.xlane.f32.xlu1 %v537_v5 }
 0x24e   : > { %v1295_v8 = vpop.f32.mrf.mxu0 }
 0x24f   : > { %v536_v9 = vsel %vm312_vm2, %v534_v6, -1e+30 }
 0x250   : > { %v540_v12 = vsel %vm381_vm3, %v536_v9, -inf }
 0x251   : > { %863 = vmax.xlane.f32.xlu1 %v862_v11  ;;  %541 = vmax.xlane.f32.xlu0 %v540_v12 }
 0x262   : > { %722 = vrot.lane.b32.xlu1 %v1386_v13, %s1456_s6 }
 0x266   : > { %883 = vrot.lane.b32.xlu1 %v1387_v14, %s1457_s7 }
 0x267   : > { %561 = vrot.lane.b32.xlu0 %v1385_v15, %s1455_s30 }
 0x2c6   : > { %v700_v16 = vpop.xlane.xlu1 %699 }
 0x2c7   : > { %v704_v17 = vsub.f32 %v696_v44, %v700_v16  ;;  %v1392_v16 = vld [vmem:[%s1681_s3 + $0x18] sm:$0xff]  }
 0x2c9   : > { %v706_v18 = vmul.f32 1.442695, %v704_v17 }
 0x2ca   : > { %v703_v10 = vpop.xlane.xlu1 %702 }
 0x2cb   : > { %1401 = vpow2.f32 %v706_v18  ;;  %v705_v19 = vsub.f32 %v697_v49, %v703_v10  ;;  %v397_v49 = vsel %vm381_vm3, %v1558_v37, 0.0 }
 0x2cd   : > { %v708_v20 = vmul.f32 1.442695, %v705_v19 }
 0x2ce   : > { %v861_v21 = vpop.xlane.xlu0 %860 }
 0x2cf   : > { %1403 = vpow2.f32 %v708_v20  ;;  %v865_v27 = vsub.f32 %v857_v56, %v861_v21  ;;  %v1393_v21 = vld [vmem:[%s1681_s3 + $0x10] sm:$0xff]  }
 0x2d1   : > { %v867_v38 = vmul.f32 1.442695, %v865_v27  ;;  %v1394_v27 = vld [vmem:[%s1681_s3 + $0x8] sm:$0xff]  }
 0x2d6   : > { %v539_v22 = vpop.xlane.xlu1 %538 }
 0x2d7   : > { %v543_v23 = vsub.f32 %v535_v3, %v539_v22 }
 0x2d8   : > { %v1402_v24 = vpop.eup %1401 }
 0x2d9   : > { %v545_v25 = vmul.f32 1.442695, %v543_v23  ;;  %v710_v26 = vsel %vm381_vm3, %v1402_v24, 0.0 }
 0x2da   : > { %v864_v28 = vpop.xlane.xlu1 %863  ;;  %711 = vadd.xlane.f32.xlu0 %v710_v26  ;;  %v542_v29 = vpop.xlane.xlu0 %541 }
 0x2db   : > { %1405 = vpow2.f32 %v545_v25  ;;  %v866_v30 = vsub.f32 %v858_v7, %v864_v28  ;;  %v544_v31 = vsub.f32 %v536_v9, %v542_v29  ;;  %v1389_v7 = vld [vmem:[%s1681_s3 + $0x30] sm:$0xff]   ;;  %v1391_v9 = vld [vmem:[%s1681_s3 + $0x20] sm:$0xff]  }
 0x2dc   : > { %v1404_v32 = vpop.eup %1403  ;;  %1329 = vmatpush3.bf16.msra.mxu1 %v1389_v7 }
 0x2dd   : > { %v869_v33 = vmul.f32 1.442695, %v866_v30  ;;  %v547_v34 = vmul.f32 1.442695, %v544_v31  ;;  %v713_v35 = vsel %vm381_vm3, %v1404_v32, 0.0  ;;  %v716_v54 = vpack.c.bf16 %v1404_v32, %v1402_v24  ;;  %1330 = vmatprep.subr.bf16.mxu1 %v1453_v0  ;;  %v1395_v30 = vld [vmem:[%s1681_s3] sm:$0xff]  }
 0x2de   : > { %714 = vadd.xlane.f32.xlu0 %v713_v35  ;;  %v562_v39 = vpop.permute.xlu0 %561  ;;  %v723_v45 = vpop.permute.xlu1 %722 }
 0x2df   : > { %1407 = vpow2.f32 %v869_v33  ;;  %1297 = vmatpush3.bf16.msra.mxu0 %v562_v39 }
 0x2e0   : > { %1409 = vpow2.f32 %v547_v34  ;;  %1308 = vmatprep.subr.bf16.mxu0 %v1453_v0 }
 0x2e1   : > { %1411 = vpow2.f32 %v867_v38 }
 0x2e2   : > { %v884_v52 = vpop.permute.xlu1 %883 }
 0x2e8   : > { %v1406_v40 = vpop.eup %1405 }
 0x2e9   : > { %v549_v41 = vsel %vm381_vm3, %v1406_v40, 0.0 }
 0x2ea   : > { %550 = vadd.xlane.f32.xlu0 %v549_v41 }
 0x2ec   : > { %v1408_v42 = vpop.eup %1407 }
 0x2ed   : > { %v1410_v43 = vpop.eup %1409  ;;  %v874_v44 = vsel %vm381_vm3, %v1408_v42, 0.0 }
 0x2ee   : > { %875 = vadd.xlane.f32.xlu0 %v874_v44  ;;  %v552_v46 = vsel %vm381_vm3, %v1410_v43, 0.0  ;;  %v555_v47 = vpack.c.bf16 %v1410_v43, %v1406_v40  ;;  %v1412_v48 = vpop.eup %1411 }
 0x2ef   : > { %553 = vadd.xlane.f32.xlu1 %v552_v46  ;;  %v871_v51 = vsel %vm381_vm3, %v1412_v48, 0.0  ;;  %v877_v37 = vpack.c.bf16 %v1408_v42, %v1412_v48 }
 0x2f0   : > { %1299 = vmatmul.mubr.msk.bf16.vlgmr.msra.gmra.mxu0 %vm381_vm3, %v555_v47 }
 0x2f1   : > { %1309 = vmatpush3.bf16.msra.mxu0 %v723_v45  ;;  %1310 = vmatprep.mubr.msk.bf16.mxu0 %vm1454_vm0, %v1453_v0 }
 0x2f2   : > { %398 = vadd.xlane.f32.xlu0 %v397_v49  ;;  %1320 = vmatprep.subr.bf16.mxu0 %v1453_v0 }
 0x2f3   : > { %872 = vadd.xlane.f32.xlu1 %v871_v51 }
 0x2f7   : > { %395 = vadd.xlane.f32.xlu1 %v394_v53 }
 0x2f8   : > { %1311 = vmatmul.mubr.msk.bf16.vlgmr.msra.gmra.mxu0 %vm381_vm3, %v716_v54 }
 0x2f9   : > { %1321 = vmatpush3.bf16.msra.mxu0 %v884_v52  ;;  %1322 = vmatprep.mubr.msk.bf16.mxu0 %vm1454_vm0, %v1453_v0 }
 0x300   : > { %1323 = vmatmul.mubr.msk.bf16.vlgmr.msra.gmra.mxu0 %vm381_vm3, %v877_v37 }
 0x363   : > { %v712_v56 = vpop.xlane.xlu0 %711 }
 0x367   : > { %v715_v36 = vpop.xlane.xlu0 %714 }
 0x373   : > { %v551_v58 = vpop.xlane.xlu0 %550 }
 0x377   : > { %v876_v59 = vpop.xlane.xlu0 %875 }
 0x378   : > { %v554_v60 = vpop.xlane.xlu1 %553 }
 0x37b   : > { %v399_v61 = vpop.xlane.xlu0 %398 }
 0x37c   : > { %v873_v62 = vpop.xlane.xlu1 %872  ;;  %1413 = vrcp.f32 %v399_v61 }
 0x380   : > { %v396_v63 = vpop.xlane.xlu1 %395 }
 0x381   : > { %1415 = vrcp.f32 %v396_v63 }
 0x382   : > { %1417 = vrcp.f32 %v551_v58 }
 0x383   : > { %1419 = vrcp.f32 %v554_v60 }
 0x384   : > { %1421 = vrcp.f32 %v712_v56  ;;  %v1229_v56 = vld [vmem:[%s1682_s4] ss:$0 sm:$0xff] }
 0x385   : > { %1423 = vrcp.f32 %v715_v36 }
 0x386   : > { %1425 = vrcp.f32 %v873_v62 }
 0x387   : > { %1427 = vrcp.f32 %v876_v59 }
 0x389   : > { %v1414_v1 = vpop.eup %1413 }
 0x38a   : > { %v454_v2 = vmul.f32 %v1414_v1, %v1583_v57  ;;  %v1390_v57 = vld [vmem:[%s1681_s3 + $0x28] sm:$0xff]  }
 0x38b   : > { %1331 = vmatpush3.bf16.msra.mxu1 %v1390_v57 }
 0x38c   : > { %v1235_v3 = vpack.c.bf16 %v454_v2, %v454_v2  ;;  %1332 = vmatprep.subr.bf16.mxu1 %v1453_v0 }
 0x38e   : > { %v1416_v4 = vpop.eup %1415  ;;  %465 = vst.msk [vmem:[#allocation2 + $0x4] sm:$0xf] %vm463_vm4, %v1235_v3 }
 0x38f   : > { %v453_v5 = vmul.f32 %v1416_v4, %v1578_v50  ;;  %v1418_v50 = vpop.eup %1417  ;;  %1333 = vmatpush3.bf16.msra.mxu1 %v1391_v9 }
 0x390   : > { %1334 = vmatprep.subr.bf16.mxu1 %v1453_v0  ;;  %v1420_v14 = vpop.eup %1419 }
 0x391   : > { %v1234_v6 = vpack.c.bf16 %v453_v5, %v453_v5  ;;  %v1422_v19 = vpop.eup %1421 }
 0x392   : > { %v1424_v25 = vpop.eup %1423 }
 0x393   : > { %464 = vst.msk [vmem:[#allocation2] sm:$0xf] %vm463_vm4, %v1234_v6  ;;  %1335 = vmatpush3.bf16.msra.mxu1 %v1392_v16  ;;  %v1426_v32 = vpop.eup %1425 }
 0x394   : > { %1336 = vmatprep.subr.bf16.mxu1 %v1453_v0  ;;  %v1428_v39 = vpop.eup %1427 }
 0x397   : > { %1337 = vmatpush3.bf16.msra.mxu1 %v1393_v21 }
 0x398   : > { %1338 = vmatprep.subr.bf16.mxu1 %v1453_v0 }
 0x39b   : > { %1339 = vmatpush3.bf16.msra.mxu1 %v1394_v27 }
 0x39c   : > { %1340 = vmatprep.subr.bf16.mxu1 %v1453_v0 }
 0x39f   : > { %1341 = vmatpush3.bf16.msra.mxu1 %v1395_v30 }
 0x3b0   : > { %v601_v8 = vpop.f32.mrf.mxu0 }
 0x3b1   : > { %v610_v11 = vmul.f32 %v1418_v50, %v601_v8 }
 0x3b2   : > { %v1300_v12 = vpop.f32.mrf.mxu0 }
 0x3b3   : > { %v1236_v13 = vpack.c.bf16 %v610_v11, %v610_v11 }
 0x3b4   : > { %v604_v15 = vpop.f32.mrf.mxu0 }
 0x3b5   : > { %v611_v17 = vmul.f32 %v1420_v14, %v604_v15  ;;  %618 = vrot.lane.b32.xlu1 %v1236_v13, %s1457_s7 }
 0x3b6   : > { %v1301_v18 = vpop.f32.mrf.mxu0 }
 0x3b7   : > { %v1237_v10 = vpack.c.bf16 %v611_v17, %v611_v17 }
 0x3b8   : > { %v762_v20 = vpop.f32.mrf.mxu0 }
 0x3b9   : > { %v771_v22 = vmul.f32 %v1422_v19, %v762_v20  ;;  %620 = vrot.lane.b32.xlu0 %v1237_v10, %s1457_s7 }
 0x3ba   : > { %v1312_v23 = vpop.f32.mrf.mxu0 }
 0x3bb   : > { %v1238_v24 = vpack.c.bf16 %v771_v22, %v771_v22 }
 0x3bc   : > { %v765_v26 = vpop.f32.mrf.mxu0 }
 0x3bd   : > { %v772_v28 = vmul.f32 %v1424_v25, %v765_v26  ;;  %779 = vrot.lane.b32.xlu1 %v1238_v24, %s1456_s6 }
 0x3be   : > { %v1313_v29 = vpop.f32.mrf.mxu0 }
 0x3bf   : > { %v1239_v31 = vpack.c.bf16 %v772_v28, %v772_v28 }
 0x3c0   : > { %v923_v33 = vpop.f32.mrf.mxu0 }
 0x3c1   : > { %v932_v34 = vmul.f32 %v1426_v32, %v923_v33  ;;  %781 = vrot.lane.b32.xlu1 %v1239_v31, %s1456_s6  ;;  %s298_s6 = scalar_lea.vmem %s1680_s2, %s1189_s28 }
 0x3c2   : > { %v1324_v35 = vpop.f32.mrf.mxu0  ;;  %v1245_v51 = vld [vmem:[%s298_s6] sm:$0xff]  }
 0x3c3   : > { %v1240_v38 = vpack.c.bf16 %v932_v34, %v932_v34  ;;  %v1246_v52 = vunpack.c.l.bf16 %v1245_v51  ;;  %v1247_v54 = vunpack.c.h.bf16 %v1245_v51 }
 0x3c4   : > { %v926_v40 = vpop.f32.mrf.mxu0 }
 0x3c5   : > { %v933_v41 = vmul.f32 %v1428_v39, %v926_v40  ;;  %940 = vrot.lane.b32.xlu0 %v1240_v38, %s1455_s30 }
 0x3c6   : > { %v1325_v42 = vpop.f32.mrf.mxu0 }
 0x3c7   : > { %v1241_v43 = vpack.c.bf16 %v933_v41, %v933_v41 }
 0x3c9   : > { %942 = vrot.lane.b32.xlu1 %v1241_v43, %s1455_s30 }
 0x427   : > { %v619_v44 = vpop.permute.xlu1 %618 }
 0x428   : > { %625 = vst.msk [vmem:[#allocation2] sm:$0xf] %vm624_vm5, %v619_v44 }
 0x42b   : > { %v621_v0 = vpop.permute.xlu0 %620 }
 0x42c   : > { %626 = vst.msk [vmem:[#allocation2 + $0x4] sm:$0xf] %vm624_vm5, %v621_v0 }
 0x42f   : > { %v780_v45 = vpop.permute.xlu1 %779 }
 0x430   : > { %786 = vst.msk [vmem:[#allocation2] sm:$0xf] %vm785_vm6, %v780_v45 }
 0x433   : > { %v782_v46 = vpop.permute.xlu1 %781 }
 0x434   : > { %787 = vst.msk [vmem:[#allocation2 + $0x4] sm:$0xf] %vm785_vm6, %v782_v46 }
 0x437   : > { %v941_v47 = vpop.permute.xlu0 %940 }
 0x438   : > { %947 = vst.msk [vmem:[#allocation2] sm:$0xf] %vm946_vm7, %v941_v47 }
 0x43b   : > { %v943_v48 = vpop.permute.xlu1 %942 }
 0x43c   : > { %948 = vst.msk [vmem:[#allocation2 + $0x4] sm:$0xf] %vm946_vm7, %v943_v48 }
 0x443   : > { %v1396_v49 = vld [vmem:[#allocation2] sm:$0xff]  }
 0x444   : > { %1343 = vmatmul.mubr.bf16.vlgmr.msra.gmra.mxu1 %v1396_v49 }
 0x504   : > { %v1055_v53 = vpop.f32.mrf.mxu1 }
 0x505   : > { %v1066_v55 = vadd.f32 %v1246_v52, %v1055_v53 }
 0x506   : > { %v1344_v37 = vpop.f32.mrf.mxu1 }
 0x507   : > { %v1075_v60 = vadd.f32 %v1229_v56, %v1066_v55 }
 0x508   : > { %v1058_v36 = vpop.f32.mrf.mxu1 }
 0x509   : > { %v1067_v58 = vadd.f32 %v1247_v54, %v1058_v36 }
 0x50a   : > { %v1345_v59 = vpop.f32.mrf.mxu1 }
 0x50b   : > { %v1076_v61 = vadd.f32 %v1229_v56, %v1067_v58 }
 0x50d   : > { %v1251_v62 = vpack.c.bf16 %v1076_v61, %v1075_v60 }
 0x50f   : > { %1252 = vst [vmem:[%s306_s10] sm:$0xff] %v1251_v62  }
 0x510 PF: > { %s15_s20 = sadd.s32 1, %s1451_s20   ;;  %s1684_s18 = smov %s1447_s19 }
 0x511   : > { %p12_p5 = scmp.ge.s32.totalorder %s15_s20, 4   ;;  %s1685_s19 = smov %s1687_s21 }
 0x513   :  { %14 = sbr.rel (!%p12_p5) target bundleno = 2 (0x2), region = 76 }

// kernel: insect_model_forward.11
= control target key start
LH: loop header
LB: loop body
LE: loop exit
PB: predicated region body
PF: predicated region fallthrough
CT: control target
= control target key end

     0   :  { %v1673_v54 = vmov 0   ;;  %s2309_s0 = inlined_call_operand.vmem [shape: bf16[32,128], index: 0, kind: input, shape index: {}]   ;;  %s2310_s3 = inlined_call_operand.vmem [shape: bf16[128,512], index: 3, kind: input, shape index: {}]   ;;  %s2311_s1 = inlined_call_operand.vmem [shape: f32[1,128], index: 1, kind: input, shape index: {}]   ;;  %s2312_s2 = inlined_call_operand.vmem [shape: f32[1,128], index: 2, kind: input, shape index: {}]   ;;  %s2313_s5 = inlined_call_operand.vmem [shape: bf16[512,128], index: 5, kind: input, shape index: {}]   ;;  %s2314_s4 = inlined_call_operand.vmem [shape: f32[1,512], index: 4, kind: input, shape index: {}]   ;;  %s2315_s6 = inlined_call_operand.vmem [shape: f32[1,128], index: 6, kind: input, shape index: {}]   ;;  %s2316_s7 = inlined_call_operand.vmem [shape: bf16[32,128], index: 7, kind: output, shape index: {}]  }
   0x1   :  { %v1432_v0 = vld [vmem:[%s2309_s0] sm:$0xff]   ;;  %v1459_v1 = vld [vmem:[%s2309_s0 + $0x8] sm:$0xff]   ;;  %403 = vmatprep.mubr.bf16.mxu0 %v1673_v54  ;;  %456 = vmatprep.mubr.bf16.mxu1 %v1673_v54 }
   0x2   :  { %v1720_v2 = vunpack.c.l.bf16 %v1432_v0  ;;  %v1722_v3 = vunpack.c.l.bf16 %v1459_v1  ;;  %v1726_v4 = vunpack.c.h.bf16 %v1432_v0  ;;  %v1728_v5 = vunpack.c.h.bf16 %v1459_v1  ;;  %v1519_v22 = vld [vmem:[%s2310_s3 + $0xe4] ss:$16 sps:$4 sm:$0xff]   ;;  %v1521_v23 = vld [vmem:[%s2310_s3 + $0xec] ss:$16 sps:$4 sm:$0xff]   ;;  %v1523_v24 = vld [vmem:[%s2310_s3 + $0xe0] ss:$16 sps:$4 sm:$0xff]  }
   0x3   :  { %371 = vmatprep.subr.bf16.mxu0 %v1519_v22  ;;  %v1524_v25 = vld [vmem:[%s2310_s3 + $0xe8] ss:$16 sps:$4 sm:$0xff]   ;;  %424 = vmatprep.subr.bf16.mxu1 %v1521_v23  ;;  %v1525_v26 = vld [vmem:[%s2310_s3 + $0xc4] ss:$16 sps:$4 sm:$0xff]   ;;  %v1527_v27 = vld [vmem:[%s2310_s3 + $0xcc] ss:$16 sps:$4 sm:$0xff]  }
   0x4   :  { %39 = vadd.xlane.f32.xlu0 %v1720_v2  ;;  %43 = vadd.xlane.f32.xlu1 %v1722_v3  ;;  %2318 = vst [vmem:[#allocation4_spill] sm:$0xff] %v1728_v5  ;;  %v1529_v28 = vld [vmem:[%s2310_s3 + $0xc0] ss:$16 sps:$4 sm:$0xff]   ;;  %v1530_v29 = vld [vmem:[%s2310_s3 + $0xc8] ss:$16 sps:$4 sm:$0xff]  }
   0x5   :  { %372 = vmatpush1.bf16.msra.mxu0 %v1523_v24  ;;  %425 = vmatpush1.bf16.msra.mxu1 %v1524_v25  ;;  %v1531_v30 = vld [vmem:[%s2310_s3 + $0xa4] ss:$16 sps:$4 sm:$0xff]   ;;  %v1533_v31 = vld [vmem:[%s2310_s3 + $0xac] ss:$16 sps:$4 sm:$0xff]   ;;  %v1535_v32 = vld [vmem:[%s2310_s3 + $0xa0] ss:$16 sps:$4 sm:$0xff]  }
   0x6   :  { %373 = vmatprep.subr.bf16.mxu0 %v1525_v26  ;;  %426 = vmatprep.subr.bf16.mxu1 %v1527_v27  ;;  %v1536_v33 = vld [vmem:[%s2310_s3 + $0xa8] ss:$16 sps:$4 sm:$0xff]   ;;  %v1537_v34 = vld [vmem:[%s2310_s3 + $0x84] ss:$16 sps:$4 sm:$0xff]   ;;  %v1539_v35 = vld [vmem:[%s2310_s3 + $0x8c] ss:$16 sps:$4 sm:$0xff]  }
   0x7   :  { %v1541_v36 = vld [vmem:[%s2310_s3 + $0x80] ss:$16 sps:$4 sm:$0xff]   ;;  %v1542_v37 = vld [vmem:[%s2310_s3 + $0x88] ss:$16 sps:$4 sm:$0xff]   ;;  %v1543_v38 = vld [vmem:[%s2310_s3 + $0x64] ss:$16 sps:$4 sm:$0xff]  }
   0x8   :  { %41 = vadd.xlane.f32.xlu0 %v1726_v4  ;;  %45 = vadd.xlane.f32.xlu1 %v1728_v5  ;;  %v1545_v39 = vld [vmem:[%s2310_s3 + $0x6c] ss:$16 sps:$4 sm:$0xff]   ;;  %v1547_v40 = vld [vmem:[%s2310_s3 + $0x60] ss:$16 sps:$4 sm:$0xff]   ;;  %v1548_v41 = vld [vmem:[%s2310_s3 + $0x68] ss:$16 sps:$4 sm:$0xff]  }
   0x9   :  { %374 = vmatpush1.bf16.msra.mxu0 %v1529_v28  ;;  %427 = vmatpush1.bf16.msra.mxu1 %v1530_v29  ;;  %v1549_v42 = vld [vmem:[%s2310_s3 + $0x44] ss:$16 sps:$4 sm:$0xff]   ;;  %v1551_v43 = vld [vmem:[%s2310_s3 + $0x4c] ss:$16 sps:$4 sm:$0xff]   ;;  %v1553_v44 = vld [vmem:[%s2310_s3 + $0x40] ss:$16 sps:$4 sm:$0xff]  }
   0xa   :  { %375 = vmatprep.subr.bf16.mxu0 %v1531_v30  ;;  %428 = vmatprep.subr.bf16.mxu1 %v1533_v31  ;;  %v1554_v45 = vld [vmem:[%s2310_s3 + $0x48] ss:$16 sps:$4 sm:$0xff]   ;;  %v1555_v46 = vld [vmem:[%s2310_s3 + $0x24] ss:$16 sps:$4 sm:$0xff]   ;;  %v1557_v47 = vld [vmem:[%s2310_s3 + $0x2c] ss:$16 sps:$4 sm:$0xff]  }
   0xb   :  { %v1559_v48 = vld [vmem:[%s2310_s3 + $0x20] ss:$16 sps:$4 sm:$0xff]   ;;  %v1560_v49 = vld [vmem:[%s2310_s3 + $0x28] ss:$16 sps:$4 sm:$0xff]   ;;  %v1561_v50 = vld [vmem:[%s2310_s3 + $0x4] ss:$16 sps:$4 sm:$0xff]  }
   0xc   :  { %v1563_v51 = vld [vmem:[%s2310_s3 + $0xc] ss:$16 sps:$4 sm:$0xff]   ;;  %v1565_v52 = vld [vmem:[%s2310_s3] ss:$16 sps:$4 sm:$0xff]   ;;  %v1566_v53 = vld [vmem:[%s2310_s3 + $0x8] ss:$16 sps:$4 sm:$0xff]  }
   0xd   :  { %376 = vmatpush1.bf16.msra.mxu0 %v1535_v32  ;;  %429 = vmatpush1.bf16.msra.mxu1 %v1536_v33  ;;  %v1569_v30 = vld [vmem:[%s2313_s5 + $0x78] sm:$0xff]   ;;  %v1573_v33 = vld [vmem:[%s2313_s5 + $0x70] sm:$0xff]  }
   0xe   :  { %377 = vmatprep.subr.bf16.mxu0 %v1537_v34  ;;  %430 = vmatprep.subr.bf16.mxu1 %v1539_v35  ;;  %v1571_v31 = vld [vmem:[%s2313_s5 + $0x38] sm:$0xff]   ;;  %v1574_v34 = vld [vmem:[%s2313_s5 + $0xf0] sm:$0xff]  }
   0xf   :  { %v1572_v32 = vld [vmem:[%s2313_s5 + $0xb8] sm:$0xff]   ;;  %v1575_v35 = vld [vmem:[%s2313_s5 + $0x30] sm:$0xff]  }
  0x11   :  { %378 = vmatpush1.bf16.msra.mxu0 %v1541_v36  ;;  %431 = vmatpush1.bf16.msra.mxu1 %v1542_v37  ;;  %v1576_v36 = vld [vmem:[%s2313_s5 + $0xb0] sm:$0xff]   ;;  %v1577_v37 = vld [vmem:[%s2313_s5 + $0x68] sm:$0xff]  }
  0x12   :  { %379 = vmatprep.subr.bf16.mxu0 %v1543_v38  ;;  %432 = vmatprep.subr.bf16.mxu1 %v1545_v39  ;;  %v1578_v38 = vld [vmem:[%s2313_s5 + $0xe8] sm:$0xff]  }
  0x13   :  { %v1579_v39 = vld [vmem:[%s2313_s5 + $0x28] sm:$0xff]  }
  0x15   :  { %380 = vmatpush1.bf16.msra.mxu0 %v1547_v40  ;;  %433 = vmatpush1.bf16.msra.mxu1 %v1548_v41  ;;  %v1580_v40 = vld [vmem:[%s2313_s5 + $0xa8] sm:$0xff]   ;;  %v1581_v41 = vld [vmem:[%s2313_s5 + $0x60] sm:$0xff]  }
  0x16   :  { %381 = vmatprep.subr.bf16.mxu0 %v1549_v42  ;;  %434 = vmatprep.subr.bf16.mxu1 %v1551_v43  ;;  %v1582_v42 = vld [vmem:[%s2313_s5 + $0xe0] sm:$0xff]  }
  0x17   :  { %v1583_v43 = vld [vmem:[%s2313_s5 + $0x20] sm:$0xff]  }
  0x19   :  { %382 = vmatpush1.bf16.msra.mxu0 %v1553_v44  ;;  %435 = vmatpush1.bf16.msra.mxu1 %v1554_v45  ;;  %v1584_v44 = vld [vmem:[%s2313_s5 + $0xa0] sm:$0xff]   ;;  %v179_v45 = vlaneseq }
  0x1a   :  { %383 = vmatprep.subr.bf16.mxu0 %v1555_v46  ;;  %436 = vmatprep.subr.bf16.mxu1 %v1557_v47  ;;  %v1585_v46 = vld [vmem:[%s2313_s5 + $0x58] sm:$0xff]  }
  0x1b   :  { %v1586_v47 = vld [vmem:[%s2313_s5 + $0xd8] sm:$0xff]  }
  0x1d   :  { %384 = vmatpush1.bf16.msra.mxu0 %v1559_v48  ;;  %437 = vmatpush1.bf16.msra.mxu1 %v1560_v49  ;;  %v1587_v48 = vld [vmem:[%s2313_s5 + $0x18] sm:$0xff]  }
  0x1e   :  { %385 = vmatprep.subr.bf16.mxu0 %v1561_v50  ;;  %438 = vmatprep.subr.bf16.mxu1 %v1563_v51  ;;  %v1588_v49 = vld [vmem:[%s2313_s5 + $0x98] sm:$0xff]   ;;  %v180_v50 = vshrl.u32 %v179_v45, 7  ;;  %v1589_v51 = vld [vmem:[%s2313_s5 + $0x50] sm:$0xff]  }
  0x21   :  { %386 = vmatpush1.bf16.msra.mxu0 %v1565_v52  ;;  %439 = vmatpush1.bf16.msra.mxu1 %v1566_v53  ;;  %v1590_v52 = vld [vmem:[%s2313_s5 + $0xd0] sm:$0xff]  }
  0x22   :  { %1462 = vmatprep.subr.bf16.mxu0 %v1569_v30  ;;  %v1591_v53 = vld [vmem:[%s2313_s5 + $0x10] sm:$0xff]  }
  0x8d   :  { %v40_v6 = vpop.xlane.xlu0 %39  ;;  %v44_v7 = vpop.xlane.xlu1 %43 }
  0x8e   :  { %v48_v8 = vmul.f32 0.0078125, %v40_v6  ;;  %v50_v9 = vmul.f32 0.0078125, %v44_v7 }
  0x90   :  { %v1733_v10 = vsub.f32 %v1720_v2, %v48_v8  ;;  %v1736_v11 = vsub.f32 %v1722_v3, %v50_v9  ;;  %v1314_v9 = vld [vmem:[%s2311_s1] ss:$0 sm:$0xff] }
  0x91   :  { %v42_v12 = vpop.xlane.xlu0 %41  ;;  %v46_v13 = vpop.xlane.xlu1 %45 }
  0x92   :  { %v49_v14 = vmul.f32 0.0078125, %v42_v12  ;;  %v56_v15 = vmul.f32 %v1733_v10, %v1733_v10  ;;  %v51_v16 = vmul.f32 0.0078125, %v46_v13  ;;  %v58_v19 = vmul.f32 %v1736_v11, %v1736_v11 }
  0x94   :  { %v1741_v17 = vsub.f32 %v1726_v4, %v49_v14  ;;  %60 = vadd.xlane.f32.xlu0 %v56_v15  ;;  %v1744_v18 = vsub.f32 %v1728_v5, %v51_v16  ;;  %v1315_v16 = vld [vmem:[%s2312_s2] ss:$0 sm:$0xff] }
  0x96   :  { %v57_v20 = vmul.f32 %v1741_v17, %v1741_v17  ;;  %v59_v21 = vmul.f32 %v1744_v18, %v1744_v18 }
  0x98   :  { %64 = vadd.xlane.f32.xlu0 %v58_v19  ;;  %62 = vadd.xlane.f32.xlu1 %v57_v20 }
  0x9c   :  { %66 = vadd.xlane.f32.xlu1 %v59_v21 }
 0x11d   :  { %v61_v55 = vpop.xlane.xlu0 %60 }
 0x11e   :  { %v68_v56 = vmul.f32 0.0078125, %v61_v55  ;;  %v177_v55 = vld [vmem:[%s2314_s4] sm:$0xf] }
 0x120   :  { %v72_v57 = vadd.f32 1e-06, %v68_v56  ;;  %v181_v56 = vsub.s32 0, %v180_v50 }
 0x121   :  { %v63_v58 = vpop.xlane.xlu1 %62  ;;  %v65_v59 = vpop.xlane.xlu0 %64 }
 0x122   :  { %1601 = vrsqrt.f32 %v72_v57  ;;  %v69_v60 = vmul.f32 0.0078125, %v63_v58  ;;  %v70_v61 = vmul.f32 0.0078125, %v65_v59  ;;  %v1593_v57 = vld [vmem:[%s2313_s5 + $0x48] sm:$0xff]   ;;  %v189_v58 = vsub.s32 2, %v180_v50 }
 0x123   :  { %v1594_v59 = vld [vmem:[%s2313_s5 + $0xc8] sm:$0xff]  }
 0x124   :  { %v73_v62 = vadd.f32 1e-06, %v69_v60  ;;  %v74_v63 = vadd.f32 1e-06, %v70_v61  ;;  %v1595_v60 = vld [vmem:[%s2313_s5 + $0x8] sm:$0xff]   ;;  %v185_v61 = vsub.s32 1, %v180_v50 }
 0x125   :  { %v67_v0 = vpop.xlane.xlu1 %66 }
 0x126   :  { %1603 = vrsqrt.f32 %v73_v62  ;;  %v71_v1 = vmul.f32 0.0078125, %v67_v0  ;;  %v1596_v62 = vld [vmem:[%s2313_s5 + $0x88] sm:$0xff]   ;;  %v1597_v0 = vld [vmem:[%s2313_s5 + $0x40] sm:$0xff]  }
 0x127   :  { %1605 = vrsqrt.f32 %v74_v63  ;;  %v193_v63 = vsub.s32 3, %v180_v50 }
 0x128   :  { %v75_v6 = vadd.f32 1e-06, %v71_v1  ;;  %v1948_v1 = vrot.slane %v177_v55, %v181_v56 }
 0x12a   :  { %1607 = vrsqrt.f32 %v75_v6  ;;  %v1950_v6 = vrot.slane %v177_v55, %v189_v58 }
 0x12f   :  { %v1602_v7 = vpop.eup %1601 }
 0x130   :  { %v80_v8 = vmul.f32 %v1602_v7, %v1733_v10  ;;  %v1598_v7 = vld [vmem:[%s2313_s5 + $0xc0] sm:$0xff]  }
 0x132   :  { %v91_v14 = vmul.f32 %v1314_v9, %v80_v8  ;;  %v1599_v8 = vld [vmem:[%s2313_s5] sm:$0xff]  }
 0x133   :  { %v1604_v12 = vpop.eup %1603 }
 0x134   :  { %v1606_v13 = vpop.eup %1605  ;;  %v81_v15 = vmul.f32 %v1604_v12, %v1741_v17  ;;  %v102_v22 = vadd.f32 %v1315_v16, %v91_v14  ;;  %v1961_v14 = vrot.slane %v177_v55, %v185_v61 }
 0x135   :  { %v82_v19 = vmul.f32 %v1606_v13, %v1736_v11 }
 0x136   :  { %v92_v20 = vmul.f32 %v1314_v9, %v81_v15  ;;  %v1963_v15 = vrot.slane %v177_v55, %v193_v63 }
 0x137   :  { %v1608_v21 = vpop.eup %1607  ;;  %v93_v10 = vmul.f32 %v1314_v9, %v82_v19 }
 0x138   :  { %v103_v23 = vadd.f32 %v1315_v16, %v92_v20  ;;  %v83_v24 = vmul.f32 %v1608_v21, %v1744_v18  ;;  %v1570_v18 = vld [vmem:[%s2313_s5 + $0xf8] sm:$0xff]  }
 0x139   :  { %v104_v27 = vadd.f32 %v1315_v16, %v93_v10  ;;  %1490 = vmatprep.subr.bf16.mxu1 %v1570_v18 }
 0x13a   :  { %v1442_v25 = vpack.c.bf16 %v103_v23, %v102_v22  ;;  %v94_v26 = vmul.f32 %v1314_v9, %v83_v24  ;;  %v1600_v9 = vld [vmem:[%s2313_s5 + $0x80] sm:$0xff]  }
 0x13c   :  { %1443 = vst [vmem:[#allocation2] sm:$0xff] %v1442_v25   ;;  %v105_v28 = vadd.f32 %v1315_v16, %v94_v26 }
 0x13e   :  { %v1447_v29 = vpack.c.bf16 %v105_v28, %v104_v27 }
 0x140   :  { %1460 = vst [vmem:[#allocation2 + $0x8] sm:$0xff] %v1447_v29  }
 0x143   :  { %v1567_v17 = vld [vmem:[#allocation2] sm:$0xff]  }
 0x144   :  { %404 = vmatmul.mubr.bf16.vlgmr.msra.gmra.mxu0 %v1567_v17  ;;  %457 = vmatmul.mubr.bf16.vlgmr.msra.gmra.mxu1 %v1567_v17 }
 0x145   :  { %413 = vmatprep.mubr.bf16.mxu0 %v1673_v54  ;;  %466 = vmatprep.mubr.bf16.mxu1 %v1673_v54  ;;  %v1592_v54 = vld [vmem:[%s2313_s5 + $0x90] sm:$0xff]  }
 0x146   :  { %1463 = vmatpush3.bf16.msra.mxu0 %v1571_v31  ;;  %1491 = vmatpush3.bf16.msra.mxu1 %v1572_v32 }
 0x147   :  { %v1568_v11 = vld [vmem:[#allocation2 + $0x8] sm:$0xff]   ;;  %1464 = vmatprep.subr.bf16.mxu0 %v1573_v33  ;;  %1492 = vmatprep.subr.bf16.mxu1 %v1574_v34 }
 0x14a   :  { %1465 = vmatpush3.bf16.msra.mxu0 %v1575_v35  ;;  %1493 = vmatpush3.bf16.msra.mxu1 %v1576_v36 }
 0x14b   :  { %1466 = vmatprep.subr.bf16.mxu0 %v1577_v37  ;;  %1494 = vmatprep.subr.bf16.mxu1 %v1578_v38 }
 0x14c   :  { %414 = vmatmul.mubr.bf16.gmra.mxu0 %v1568_v11  ;;  %467 = vmatmul.mubr.bf16.gmra.mxu1 %v1568_v11 }
 0x14e   :  { %1467 = vmatpush3.bf16.msra.mxu0 %v1579_v39  ;;  %1495 = vmatpush3.bf16.msra.mxu1 %v1580_v40 }
 0x14f   :  { %1468 = vmatprep.subr.bf16.mxu0 %v1581_v41  ;;  %1496 = vmatprep.subr.bf16.mxu1 %v1582_v42 }
 0x152   :  { %1469 = vmatpush3.bf16.msra.mxu0 %v1583_v43  ;;  %1497 = vmatpush3.bf16.msra.mxu1 %v1584_v44 }
 0x153   :  { %1470 = vmatprep.subr.bf16.mxu0 %v1585_v46  ;;  %1498 = vmatprep.subr.bf16.mxu1 %v1586_v47 }
 0x156   :  { %1471 = vmatpush3.bf16.msra.mxu0 %v1587_v48  ;;  %1499 = vmatpush3.bf16.msra.mxu1 %v1588_v49 }
 0x157   :  { %1472 = vmatprep.subr.bf16.mxu0 %v1589_v51  ;;  %1500 = vmatprep.subr.bf16.mxu1 %v1590_v52 }
 0x15a   :  { %1473 = vmatpush3.bf16.msra.mxu0 %v1591_v53  ;;  %1501 = vmatpush3.bf16.msra.mxu1 %v1592_v54 }
 0x15b   :  { %1474 = vmatprep.subr.bf16.mxu0 %v1593_v57  ;;  %1502 = vmatprep.subr.bf16.mxu1 %v1594_v59 }
 0x15e   :  { %1475 = vmatpush3.bf16.msra.mxu0 %v1595_v60  ;;  %1503 = vmatpush3.bf16.msra.mxu1 %v1596_v62 }
 0x15f   :  { %1476 = vmatprep.subr.bf16.mxu0 %v1597_v0  ;;  %1504 = vmatprep.subr.bf16.mxu1 %v1598_v7 }
 0x162   :  { %1477 = vmatpush3.bf16.msra.mxu0 %v1599_v8  ;;  %1505 = vmatpush3.bf16.msra.mxu1 %v1600_v9 }
 0x204   :  { %v405_v12 = vpop.f32.mrf.mxu0  ;;  %v458_v13 = vpop.f32.mrf.mxu1 }
 0x205   :  { %v1966_v16 = vadd.f32 %v405_v12, %v1948_v1  ;;  %v1969_v19 = vadd.f32 %v458_v13, %v1950_v6 }
 0x206   :  { %v407_v20 = vpop.f32.mrf.mxu0  ;;  %v460_v21 = vpop.f32.mrf.mxu1 }
 0x207   :  { %v1972_v22 = vmul.f32 0.70710677, %v1966_v16  ;;  %v1975_v23 = vmul.f32 0.70710677, %v1969_v19  ;;  %v1978_v10 = vadd.f32 %v407_v20, %v1961_v14  ;;  %v1981_v24 = vadd.f32 %v460_v21, %v1963_v15 }
 0x208   :  { %v409_v11 = vpop.f32.mrf.mxu0  ;;  %v462_v36 = vpop.f32.mrf.mxu1 }
 0x209   :  { %v493_v25 = vand.u32 2147483647, %v1972_v22  ;;  %v495_v26 = vand.u32 2147483647, %v1975_v23  ;;  %v1986_v27 = vmul.f32 0.70710677, %v1978_v10  ;;  %v1994_v35 = vadd.f32 %v409_v11, %v1948_v1 }
 0x20a   :  { %v1989_v28 = vmul.f32 0.70710677, %v1981_v24  ;;  %v411_v37 = vpop.f32.mrf.mxu0  ;;  %v2000_v41 = vadd.f32 %v462_v36, %v1950_v6  ;;  %v464_v46 = vpop.f32.mrf.mxu1  ;;  %vm813_vm0 = vcmp.ge.f32.partialorder %v1972_v22, 0.0  ;;  %vm815_vm1 = vcmp.ge.f32.partialorder %v1975_v23, 0.0 }
 0x20b   :  { %v509_v29 = vmul.f32 0.3275911, %v493_v25  ;;  %v511_v17 = vmul.f32 0.3275911, %v495_v26  ;;  %v494_v30 = vand.u32 2147483647, %v1986_v27  ;;  %v2003_v42 = vadd.f32 %v411_v37, %v1961_v14 }
 0x20c   :  { %v496_v18 = vand.u32 2147483647, %v1989_v28  ;;  %v1997_v40 = vmul.f32 0.70710677, %v1994_v35  ;;  %v2007_v44 = vmul.f32 0.70710677, %v2000_v41  ;;  %v2017_v51 = vadd.f32 %v464_v46, %v1963_v15 }
 0x20d   :  { %v525_v31 = vadd.f32 1.0, %v509_v29  ;;  %v527_v32 = vadd.f32 1.0, %v511_v17  ;;  %v510_v33 = vmul.f32 0.3275911, %v494_v30  ;;  %v2010_v45 = vmul.f32 0.70710677, %v2003_v42 }
 0x20e   :  { %v512_v34 = vmul.f32 0.3275911, %v496_v18  ;;  %v497_v43 = vand.u32 2147483647, %v1997_v40  ;;  %v2013_v48 = vand.u32 2147483647, %v2007_v44 }
 0x20f   :  { %1609 = vrcp.f32 %v525_v31  ;;  %v526_v38 = vadd.f32 1.0, %v510_v33  ;;  %v498_v49 = vand.u32 2147483647, %v2010_v45  ;;  %v2021_v54 = vmul.f32 0.70710677, %v2017_v51 }
 0x210   :  { %1611 = vrcp.f32 %v527_v32  ;;  %v528_v39 = vadd.f32 1.0, %v512_v34  ;;  %v513_v47 = vmul.f32 0.3275911, %v497_v43  ;;  %v515_v52 = vmul.f32 0.3275911, %v2013_v48 }
 0x211   :  { %1613 = vrcp.f32 %v526_v38  ;;  %v514_v53 = vmul.f32 0.3275911, %v498_v49  ;;  %v717_v55 = vsub.f32 0.0, %v493_v25  ;;  %v2024_v58 = vand.u32 2147483647, %v2021_v54 }
 0x212   :  { %1615 = vrcp.f32 %v528_v39  ;;  %v529_v50 = vadd.f32 1.0, %v513_v47  ;;  %v531_v56 = vadd.f32 1.0, %v515_v52  ;;  %v719_v60 = vsub.f32 0.0, %v495_v26 }
 0x213   :  { %v530_v57 = vadd.f32 1.0, %v514_v53  ;;  %v516_v63 = vmul.f32 0.3275911, %v2024_v58  ;;  %v733_v0 = vmul.f32 %v717_v55, %v493_v25  ;;  %v718_v8 = vsub.f32 0.0, %v494_v30 }
 0x214   :  { %1617 = vrcp.f32 %v529_v50  ;;  %v735_v21 = vmul.f32 %v719_v60, %v495_v26  ;;  %v720_v29 = vsub.f32 0.0, %v496_v18  ;;  %v721_v25 = vsub.f32 0.0, %v497_v43 }
 0x215   :  { %1619 = vrcp.f32 %v531_v56  ;;  %v532_v12 = vadd.f32 1.0, %v516_v63  ;;  %v749_v32 = vmul.f32 1.442695, %v733_v0  ;;  %v734_v33 = vmul.f32 %v718_v8, %v494_v30  ;;  %v415_v56 = vpop.f32.mrf.mxu0  ;;  %v468_v0 = vpop.f32.mrf.mxu1 }
 0x216   :  { %1621 = vrcp.f32 %v530_v57  ;;  %v753_v39 = vmul.f32 1.442695, %v735_v21  ;;  %v736_v46 = vmul.f32 %v720_v29, %v496_v18  ;;  %v722_v50 = vsub.f32 0.0, %v498_v49 }
 0x217   :  { %1623 = vrcp.f32 %v532_v12  ;;  %v751_v53 = vmul.f32 1.442695, %v734_v33  ;;  %v737_v55 = vmul.f32 %v721_v25, %v497_v43  ;;  %v723_v18 = vsub.f32 0.0, %v2013_v48 }
 0x218   :  { %1625 = vpow2.f32 %v749_v32  ;;  %v755_v63 = vmul.f32 1.442695, %v736_v46  ;;  %v738_v12 = vmul.f32 %v722_v50, %v498_v49  ;;  %v2051_v43 = vadd.f32 %v415_v56, %v1948_v1 }
 0x219   :  { %1627 = vpow2.f32 %v753_v39  ;;  %v757_v21 = vmul.f32 1.442695, %v737_v55  ;;  %v2060_v25 = vadd.f32 %v468_v0, %v1950_v6  ;;  %vm814_vm2 = vcmp.ge.f32.partialorder %v1986_v27, 0.0 }
 0x21a   :  { %1629 = vpow2.f32 %v751_v53  ;;  %v759_v46 = vmul.f32 1.442695, %v738_v12  ;;  %vm817_vm3 = vcmp.ge.f32.partialorder %v1997_v40, 0.0  ;;  %vm816_vm4 = vcmp.ge.f32.partialorder %v1989_v28, 0.0 }
 0x21b   :  { %1631 = vpow2.f32 %v757_v21  ;;  %vm819_vm5 = vcmp.ge.f32.partialorder %v2007_v44, 0.0  ;;  %vm818_vm6 = vcmp.ge.f32.partialorder %v2010_v45, 0.0  ;;  %vm820_vm7 = vcmp.ge.f32.partialorder %v2021_v54, 0.0 }
 0x21c   :  { %v2026_v59 = vpop.eup %1609  ;;  %1633 = vpow2.f32 %v759_v46 }
 0x21d   :  { %v2028_v61 = vpop.eup %1611  ;;  %v573_v62 = vmul.f32 1.0614054, %v2026_v59 }
 0x21e   :  { %v575_v7 = vmul.f32 1.0614054, %v2028_v61  ;;  %v2033_v13 = vpop.eup %1613 }
 0x21f   :  { %v1355_v9 = vadd.f32 -1.4531521, %v573_v62  ;;  %v574_v11 = vmul.f32 1.0614054, %v2033_v13  ;;  %v2037_v31 = vpop.eup %1615 }
 0x220   :  { %v1357_v20 = vadd.f32 -1.4531521, %v575_v7  ;;  %v576_v38 = vmul.f32 1.0614054, %v2037_v31 }
 0x221   :  { %v605_v17 = vmul.f32 %v2026_v59, %v1355_v9  ;;  %v1356_v37 = vadd.f32 -1.4531521, %v574_v11  ;;  %v2042_v52 = vpop.eup %1617 }
 0x222   :  { %v607_v36 = vmul.f32 %v2028_v61, %v1357_v20  ;;  %v1358_v47 = vadd.f32 -1.4531521, %v576_v38  ;;  %v577_v60 = vmul.f32 1.0614054, %v2042_v52  ;;  %v2048_v7 = vpop.eup %1619 }
 0x223   :  { %v621_v34 = vadd.f32 1.4214138, %v605_v17  ;;  %v606_v26 = vmul.f32 %v2033_v13, %v1356_v37  ;;  %v2053_v20 = vpop.eup %1621  ;;  %v579_v29 = vmul.f32 1.0614054, %v2048_v7  ;;  %v724_v17 = vsub.f32 0.0, %v2024_v58 }
 0x224   :  { %v623_v57 = vadd.f32 1.4214138, %v607_v36  ;;  %v608_v62 = vmul.f32 %v2037_v31, %v1358_v47  ;;  %v1359_v9 = vadd.f32 -1.4531521, %v577_v60  ;;  %v739_v36 = vmul.f32 %v723_v18, %v2013_v48  ;;  %v2068_v47 = vpop.eup %1623 }
 0x225   :  { %v637_v30 = vmul.f32 %v2026_v59, %v621_v34  ;;  %v622_v8 = vadd.f32 1.4214138, %v606_v26  ;;  %v1361_v34 = vadd.f32 -1.4531521, %v579_v29  ;;  %v578_v37 = vmul.f32 1.0614054, %v2053_v20 }
 0x226   :  { %v639_v32 = vmul.f32 %v2028_v61, %v623_v57  ;;  %v609_v33 = vmul.f32 %v2042_v52, %v1359_v9  ;;  %v624_v49 = vadd.f32 1.4214138, %v608_v62  ;;  %v2066_v26 = vmul.f32 0.70710677, %v2051_v43 }
 0x227   :  { %v1371_v11 = vadd.f32 -0.28449672, %v637_v30  ;;  %v638_v38 = vmul.f32 %v2033_v13, %v622_v8  ;;  %v611_v50 = vmul.f32 %v2048_v7, %v1361_v34  ;;  %v1360_v53 = vadd.f32 -1.4531521, %v578_v37  ;;  %v1626_v34 = vpop.eup %1625 }
 0x228   :  { %v625_v39 = vadd.f32 1.4214138, %v609_v33  ;;  %v740_v55 = vmul.f32 %v724_v17, %v2024_v58  ;;  %v1373_v48 = vadd.f32 -0.28449672, %v639_v32  ;;  %v2075_v57 = vmul.f32 0.70710677, %v2060_v25  ;;  %v1628_v46 = vpop.eup %1627 }
 0x229   :  { %v669_v56 = vmul.f32 %v2026_v59, %v1371_v11  ;;  %v640_v60 = vmul.f32 %v2037_v31, %v624_v49  ;;  %v627_v62 = vadd.f32 1.4214138, %v611_v50  ;;  %v610_v18 = vmul.f32 %v2053_v20, %v1360_v53 }
 0x22a   :  { %v641_v30 = vmul.f32 %v2042_v52, %v625_v39  ;;  %v580_v0 = vmul.f32 1.0614054, %v2068_v47  ;;  %v1372_v8 = vadd.f32 -0.28449672, %v638_v38  ;;  %v761_v9 = vmul.f32 1.442695, %v739_v36 }
 0x22b   :  { %v2081_v58 = vand.u32 2147483647, %v2066_v26  ;;  %v643_v21 = vmul.f32 %v2048_v7, %v627_v62  ;;  %v626_v29 = vadd.f32 1.4214138, %v610_v18  ;;  %v685_v11 = vadd.f32 0.2548296, %v669_v56 }
 0x22c   :  { %v1375_v12 = vadd.f32 -0.28449672, %v641_v30  ;;  %v1362_v17 = vadd.f32 -1.4531521, %v580_v0  ;;  %v671_v32 = vmul.f32 %v2028_v61, %v1373_v48  ;;  %v763_v33 = vmul.f32 1.442695, %v740_v55  ;;  %v1630_v48 = vpop.eup %1629 }
 0x22d   :  { %v2086_v49 = vand.u32 2147483647, %v2075_v57  ;;  %v1374_v37 = vadd.f32 -0.28449672, %v640_v60  ;;  %v1377_v38 = vadd.f32 -0.28449672, %v643_v21  ;;  %v642_v36 = vmul.f32 %v2053_v20, %v626_v29 }
 0x22e   :  { %v612_v39 = vmul.f32 %v2068_v47, %v1362_v17  ;;  %v670_v50 = vmul.f32 %v2033_v13, %v1372_v8  ;;  %1635 = vpow2.f32 %v761_v9  ;;  %v673_v53 = vmul.f32 %v2042_v52, %v1375_v12 }
 0x22f   :  { %1637 = vpow2.f32 %v755_v63  ;;  %v1376_v56 = vadd.f32 -0.28449672, %v642_v36  ;;  %v517_v55 = vmul.f32 0.3275911, %v2081_v58  ;;  %v687_v30 = vadd.f32 0.2548296, %v671_v32  ;;  %v417_v63 = vpop.f32.mrf.mxu0  ;;  %v1632_v36 = vpop.eup %1631 }
 0x230   :  { %v675_v62 = vmul.f32 %v2048_v7, %v1377_v38  ;;  %1639 = vpow2.f32 %v763_v33  ;;  %v519_v60 = vmul.f32 0.3275911, %v2086_v49  ;;  %v701_v18 = vmul.f32 %v2026_v59, %v685_v11 }
 0x231   :  { %v672_v0 = vmul.f32 %v2037_v31, %v1374_v37  ;;  %v674_v8 = vmul.f32 %v2053_v20, %v1376_v56  ;;  %v628_v9 = vadd.f32 1.4214138, %v612_v39  ;;  %v686_v21 = vadd.f32 0.2548296, %v670_v50 }
 0x232   :  { %v689_v12 = vadd.f32 0.2548296, %v673_v53  ;;  %v691_v32 = vadd.f32 0.2548296, %v675_v62  ;;  %v533_v5 = vadd.f32 1.0, %v517_v55  ;;  %v2100_v33 = vadd.f32 %v417_v63, %v1961_v14  ;;  %v1634_v53 = vpop.eup %1633 }
 0x233   :  { %v690_v29 = vadd.f32 0.2548296, %v674_v8  ;;  %v644_v17 = vmul.f32 %v2068_v47, %v628_v9  ;;  %v781_v38 = vmul.f32 %v1626_v34, %v701_v18  ;;  %v703_v59 = vmul.f32 %v2028_v61, %v687_v30 }
 0x234   :  { %v688_v11 = vadd.f32 0.2548296, %v672_v0  ;;  %v535_v37 = vadd.f32 1.0, %v519_v60  ;;  %v702_v56 = vmul.f32 %v2033_v13, %v686_v21  ;;  %v2106_v8 = vmul.f32 0.5, %v1966_v16  ;;  %v470_v0 = vpop.f32.mrf.mxu1 }
 0x235   :  { %v706_v39 = vmul.f32 %v2053_v20, %v690_v29  ;;  %v1378_v50 = vadd.f32 -0.28449672, %v644_v17  ;;  %v705_v62 = vmul.f32 %v2042_v52, %v689_v12  ;;  %v707_v55 = vmul.f32 %v2048_v7, %v691_v32 }
 0x236   :  { %1641 = vrcp.f32 %v533_v5  ;;  %v2112_v61 = vmul.f32 0.70710677, %v2100_v33  ;;  %v797_v34 = vsub.f32 1.0, %v781_v38  ;;  %v2114_v30 = vmul.f32 %v1628_v46, %v703_v59 }
 0x237   :  { %v676_v9 = vmul.f32 %v2068_v47, %v1378_v50  ;;  %v704_v13 = vmul.f32 %v2037_v31, %v688_v11  ;;  %1643 = vrcp.f32 %v535_v37  ;;  %v2117_v20 = vmul.f32 %v1630_v48, %v702_v56  ;;  %v419_v50 = vpop.f32.mrf.mxu0 }
 0x238   :  { %v786_v16 = vmul.f32 %v1634_v53, %v706_v39  ;;  %v2120_v52 = vand.u32 2147483647, %v2112_v61  ;;  %v2124_v5 = vmul.f32 0.5, %v1969_v19  ;;  %v2127_v18 = vmul.f32 0.5, %v1978_v10  ;;  %v472_v53 = vpop.f32.mrf.mxu1 }
 0x239   :  { %v692_v60 = vadd.f32 0.2548296, %v676_v9  ;;  %v785_v46 = vmul.f32 %v1632_v36, %v705_v62  ;;  %v2130_v48 = vmul.f32 0.5, %v1981_v24  ;;  %v829_v17 = vsub.f32 0.0, %v797_v34 }
 0x23a   :  { %v518_v12 = vmul.f32 0.3275911, %v2120_v52  ;;  %v799_v32 = vsub.f32 1.0, %v2114_v30  ;;  %v2137_v10 = vmul.f32 0.5, %v1994_v35  ;;  %v798_v36 = vsub.f32 1.0, %v2117_v20 }
 0x23b   :  { %v1636_v7 = vpop.eup %1635  ;;  %v708_v21 = vmul.f32 %v2068_v47, %v692_v60  ;;  %v802_v24 = vsub.f32 1.0, %v786_v16  ;;  %v2142_v47 = vadd.f32 %v470_v0, %v1963_v15  ;;  %v801_v59 = vsub.f32 1.0, %v785_v46 }
 0x23c   :  { %v1638_v31 = vpop.eup %1637  ;;  %v787_v63 = vmul.f32 %v1636_v7, %v707_v55  ;;  %v2146_v11 = vmul.f32 0.5, %v2000_v41  ;;  %v534_v37 = vadd.f32 1.0, %v518_v12  ;;  %v866_v56 = vmul.f32 0.5, %v2003_v42 }
 0x23d   :  { %v1640_v29 = vpop.eup %1639  ;;  %v784_v19 = vmul.f32 %v1638_v31, %v704_v13  ;;  %v831_v62 = vsub.f32 0.0, %v799_v32  ;;  %v845_v41 = vsel %vm813_vm0, %v797_v34, %v829_v17  ;;  %v830_v9 = vsub.f32 0.0, %v798_v36 }
 0x23e   :  { %v788_v38 = vmul.f32 %v1640_v29, %v708_v21  ;;  %v803_v35 = vsub.f32 1.0, %v787_v63  ;;  %1645 = vrcp.f32 %v534_v37  ;;  %v834_v30 = vsub.f32 0.0, %v802_v24 }
 0x23f   :  { %v800_v55 = vsub.f32 1.0, %v784_v19  ;;  %v2155_v13 = vmul.f32 0.70710677, %v2142_v47  ;;  %v833_v20 = vsub.f32 0.0, %v801_v59  ;;  %v2158_v42 = vadd.f32 %v419_v50, %v1948_v1 }
 0x240   :  { %v804_v39 = vsub.f32 1.0, %v788_v38  ;;  %v2161_v60 = vadd.f32 %v472_v53, %v1950_v6  ;;  %v835_v7 = vsub.f32 0.0, %v803_v35  ;;  %v868_v46 = vmul.f32 0.5, %v2017_v51 }
 0x241   :  { %v2166_v22 = vand.u32 2147483647, %v2155_v13  ;;  %v877_v0 = vadd.f32 1.0, %v845_v41  ;;  %v832_v31 = vsub.f32 0.0, %v800_v55  ;;  %v725_v63 = vsub.f32 0.0, %v2081_v58  ;;  %v421_v41 = vpop.f32.mrf.mxu0 }
 0x242   :  { %v836_v16 = vsub.f32 0.0, %v804_v39  ;;  %v2172_v1 = vmul.f32 0.70710677, %v2158_v42  ;;  %v847_v6 = vsel %vm815_vm1, %v799_v32, %v831_v62  ;;  %v850_v51 = vsel %vm818_vm6, %v802_v24, %v834_v30 }
 0x243   :  { %v2168_v34 = vpop.eup %1641  ;;  %v520_v54 = vmul.f32 0.3275911, %v2166_v22  ;;  %v2182_v12 = vmul.f32 0.70710677, %v2161_v60  ;;  %v846_v29 = vsel %vm814_vm2, %v798_v36, %v830_v9  ;;  %v849_v17 = vsel %vm817_vm3, %v801_v59, %v833_v20  ;;  %v474_v20 = vpop.f32.mrf.mxu1 }
 0x244   :  { %v2174_v21 = vpop.eup %1643  ;;  %v852_v19 = vsel %vm820_vm7, %v804_v39, %v836_v16  ;;  %v2189_v38 = vand.u32 2147483647, %v2172_v1  ;;  %v851_v23 = vsel %vm819_vm5, %v803_v35, %v835_v7  ;;  %v581_v45 = vmul.f32 1.0614054, %v2168_v34 }
 0x245   :  { %v536_v32 = vadd.f32 1.0, %v520_v54  ;;  %v2195_v24 = vand.u32 2147483647, %v2182_v12  ;;  %v848_v27 = vsel %vm816_vm4, %v800_v55, %v832_v31  ;;  %v882_v36 = vadd.f32 1.0, %v850_v51 }
 0x246   :  { %v583_v40 = vmul.f32 1.0614054, %v2174_v21  ;;  %v521_v59 = vmul.f32 0.3275911, %v2189_v38  ;;  %v881_v37 = vadd.f32 1.0, %v849_v17  ;;  %v884_v39 = vadd.f32 1.0, %v852_v19 }
 0x247   :  { %1647 = vrcp.f32 %v536_v32  ;;  %v523_v44 = vmul.f32 0.3275911, %v2195_v24  ;;  %v878_v35 = vadd.f32 1.0, %v846_v29  ;;  %v883_v50 = vadd.f32 1.0, %v851_v23 }
 0x248   :  { %v727_v53 = vsub.f32 0.0, %v2086_v49  ;;  %v537_v62 = vadd.f32 1.0, %v521_v59  ;;  %v879_v9 = vadd.f32 1.0, %v847_v6  ;;  %v880_v30 = vadd.f32 1.0, %v848_v27 }
 0x249   :  { %v1363_v28 = vadd.f32 -1.4531521, %v581_v45  ;;  %v539_v55 = vadd.f32 1.0, %v523_v44  ;;  %v893_v16 = vmul.f32 %v877_v0, %v2106_v8  ;;  %v898_v7 = vmul.f32 %v882_v36, %v866_v56 }
 0x24a   :  { %v1365_v31 = vadd.f32 -1.4531521, %v583_v40  ;;  %1649 = vrcp.f32 %v537_v62  ;;  %v897_v54 = vmul.f32 %v881_v37, %v2137_v10  ;;  %v900_v29 = vmul.f32 %v884_v39, %v868_v46 }
 0x24b   :  { %v2204_v51 = vpop.eup %1645  ;;  %1651 = vrcp.f32 %v539_v55  ;;  %v2208_v17 = vadd.f32 %v421_v41, %v1961_v14  ;;  %v894_v6 = vmul.f32 %v878_v35, %v2127_v18  ;;  %v899_v19 = vmul.f32 %v883_v50, %v2146_v11 }
 0x24c   :  { %v582_v23 = vmul.f32 1.0614054, %v2204_v51  ;;  %v2214_v8 = vadd.f32 %v474_v20, %v1963_v15  ;;  %v895_v56 = vmul.f32 %v879_v9, %v2124_v5  ;;  %v896_v0 = vmul.f32 %v880_v30, %v2130_v48 }
 0x24d   :  { %v613_v10 = vmul.f32 %v2168_v34, %v1363_v28  ;;  %v2220_v46 = vmul.f32 0.70710677, %v2208_v17  ;;  %v615_v14 = vmul.f32 %v2174_v21, %v1365_v31  ;;  %v914_v11 = vpack.c.bf16 %v898_v7, %v894_v6 }
 0x24e   :  { %v1364_v45 = vadd.f32 -1.4531521, %v582_v23  ;;  %v2224_v18 = vmul.f32 0.70710677, %v2214_v8  ;;  %v913_v32 = vpack.c.bf16 %v897_v54, %v893_v16  ;;  %v726_v15 = vsub.f32 0.0, %v2120_v52 }
 0x24f   :  { %v506_v27 = vand.u32 2147483647, %v2220_v46  ;;  %v916_v5 = vpack.c.bf16 %v900_v29, %v896_v0  ;;  %v915_v36 = vpack.c.bf16 %v899_v19, %v895_v56  ;;  %v729_v40 = vsub.f32 0.0, %v2189_v38  ;;  %1209 = vmatprep.mubr.bf16.mxu0 %v914_v11 }
 0x250   :  { %v614_v48 = vmul.f32 %v2204_v51, %v1364_v45  ;;  %v2231_v59 = vand.u32 2147483647, %v2224_v18  ;;  %v629_v37 = vadd.f32 1.4214138, %v613_v10  ;;  %v731_v39 = vsub.f32 0.0, %v2195_v24  ;;  %1210 = vmatmul.mubr.bf16.vlgmr.msra.gmra.mxu0 %v913_v32 }
 0x251   :  { %v522_v44 = vmul.f32 0.3275911, %v506_v27  ;;  %1258 = vmatprep.mubr.bf16.mxu1 %v916_v5  ;;  %v741_v35 = vmul.f32 %v725_v63, %v2081_v58  ;;  %v728_v50 = vsub.f32 0.0, %v2166_v22  ;;  %v742_v9 = vmul.f32 %v726_v15, %v2120_v52 }
 0x252   :  { %v524_v62 = vmul.f32 0.3275911, %v2231_v59  ;;  %1259 = vmatmul.mubr.bf16.vlgmr.msra.gmra.mxu1 %v915_v36  ;;  %v630_v41 = vadd.f32 1.4214138, %v614_v48  ;;  %v631_v55 = vadd.f32 1.4214138, %v615_v14  ;;  %v743_v20 = vmul.f32 %v727_v53, %v2086_v49 }
 0x253   :  { %v538_v30 = vadd.f32 1.0, %v522_v44  ;;  %v745_v16 = vmul.f32 %v729_v40, %v2189_v38  ;;  %v645_v31 = vmul.f32 %v2168_v34, %v629_v37  ;;  %v747_v63 = vmul.f32 %v731_v39, %v2195_v24 }
 0x254   :  { %v2240_v28 = vpop.eup %1647  ;;  %v540_v7 = vadd.f32 1.0, %v524_v62  ;;  %v765_v54 = vmul.f32 1.442695, %v741_v35  ;;  %v744_v29 = vmul.f32 %v728_v50, %v2166_v22  ;;  %v646_v6 = vmul.f32 %v2204_v51, %v630_v41 }
 0x255   :  { %v584_v58 = vmul.f32 1.0614054, %v2240_v28  ;;  %1653 = vrcp.f32 %v538_v30  ;;  %v767_v19 = vmul.f32 1.442695, %v742_v9  ;;  %v647_v38 = vmul.f32 %v2174_v21, %v631_v55 }
 0x256   :  { %1655 = vrcp.f32 %v540_v7  ;;  %v769_v23 = vmul.f32 1.442695, %v743_v20  ;;  %v773_v0 = vmul.f32 1.442695, %v745_v16  ;;  %v1379_v24 = vadd.f32 -0.28449672, %v645_v31 }
 0x257   :  { %v2248_v52 = vpop.eup %1649  ;;  %v1366_v49 = vadd.f32 -1.4531521, %v584_v58  ;;  %v777_v14 = vmul.f32 1.442695, %v747_v63  ;;  %1657 = vpow2.f32 %v765_v54  ;;  %v771_v45 = vmul.f32 1.442695, %v744_v29 }
 0x258   :  { %v2251_v53 = vpop.eup %1651  ;;  %v585_v56 = vmul.f32 1.0614054, %v2248_v52  ;;  %v730_v32 = vsub.f32 0.0, %v506_v27  ;;  %v1380_v15 = vadd.f32 -0.28449672, %v646_v6  ;;  %1659 = vpow2.f32 %v767_v19 }
 0x259   :  { %v616_v10 = vmul.f32 %v2240_v28, %v1366_v49  ;;  %v587_v22 = vmul.f32 1.0614054, %v2251_v53  ;;  %1661 = vpow2.f32 %v773_v0  ;;  %v732_v40 = vsub.f32 0.0, %v2231_v59 }
 0x25a   :  { %v1367_v11 = vadd.f32 -1.4531521, %v585_v56  ;;  %v1381_v37 = vadd.f32 -0.28449672, %v647_v38  ;;  %1663 = vpow2.f32 %v777_v14  ;;  %v677_v35 = vmul.f32 %v2168_v34, %v1379_v24 }
 0x25b   :  { %v632_v5 = vadd.f32 1.4214138, %v616_v10  ;;  %v1369_v36 = vadd.f32 -1.4531521, %v587_v22  ;;  %1665 = vpow2.f32 %v771_v45  ;;  %v746_v62 = vmul.f32 %v730_v32, %v506_v27 }
 0x25c   :  { %v617_v48 = vmul.f32 %v2248_v52, %v1367_v11  ;;  %1667 = vpow2.f32 %v769_v23  ;;  %v678_v41 = vmul.f32 %v2204_v51, %v1380_v15  ;;  %v748_v20 = vmul.f32 %v732_v40, %v2231_v59 }
 0x25d   :  { %v648_v39 = vmul.f32 %v2240_v28, %v632_v5  ;;  %v619_v44 = vmul.f32 %v2251_v53, %v1369_v36  ;;  %v679_v16 = vmul.f32 %v2174_v21, %v1381_v37  ;;  %v693_v63 = vadd.f32 0.2548296, %v677_v35 }
 0x25e   :  { %v633_v50 = vadd.f32 1.4214138, %v617_v48  ;;  %v775_v29 = vmul.f32 1.442695, %v746_v62  ;;  %v694_v6 = vadd.f32 0.2548296, %v678_v41 }
 0x25f   :  { %v1382_v9 = vadd.f32 -0.28449672, %v648_v39  ;;  %v635_v30 = vadd.f32 1.4214138, %v619_v44  ;;  %v779_v0 = vmul.f32 1.442695, %v748_v20  ;;  %v709_v22 = vmul.f32 %v2168_v34, %v693_v63 }
 0x260   :  { %v649_v55 = vmul.f32 %v2248_v52, %v633_v50  ;;  %v695_v59 = vadd.f32 0.2548296, %v679_v16  ;;  %v710_v32 = vmul.f32 %v2204_v51, %v694_v6  ;;  %1669 = vpow2.f32 %v775_v29 }
 0x261   :  { %v680_v7 = vmul.f32 %v2240_v28, %v1382_v9  ;;  %v651_v31 = vmul.f32 %v2251_v53, %v635_v30  ;;  %1671 = vpow2.f32 %v779_v0  ;;  %vm821_vm8 = vcmp.ge.f32.partialorder %v2066_v26, 0.0 }
 0x262   :  { %v1654_v58 = vpop.eup %1653  ;;  %v1383_v54 = vadd.f32 -0.28449672, %v649_v55  ;;  %v711_v44 = vmul.f32 %v2174_v21, %v695_v59  ;;  %vm823_vm9 = vcmp.ge.f32.partialorder %v2075_v57, 0.0  ;;  %vm822_vm10 = vcmp.ge.f32.partialorder %v2112_v61, 0.0 }
 0x263   :  { %v1656_v27 = vpop.eup %1655  ;;  %v1385_v19 = vadd.f32 -0.28449672, %v651_v31  ;;  %v586_v49 = vmul.f32 1.0614054, %v1654_v58  ;;  %v696_v38 = vadd.f32 0.2548296, %v680_v7 }
 0x264   :  { %v681_v23 = vmul.f32 %v2248_v52, %v1383_v54  ;;  %v588_v56 = vmul.f32 1.0614054, %v1656_v27  ;;  %v1658_v11 = vpop.eup %1657  ;;  %vm825_vm11 = vcmp.ge.f32.partialorder %v2172_v1, 0.0  ;;  %vm827_vm12 = vcmp.ge.f32.partialorder %v2182_v12, 0.0 }
 0x265   :  { %v683_v24 = vmul.f32 %v2251_v53, %v1385_v19  ;;  %v1368_v10 = vadd.f32 -1.4531521, %v586_v49  ;;  %v1660_v36 = vpop.eup %1659  ;;  %v712_v48 = vmul.f32 %v2240_v28, %v696_v38  ;;  %v789_v16 = vmul.f32 %v1658_v11, %v709_v22 }
 0x266   :  { %v697_v14 = vadd.f32 0.2548296, %v681_v23  ;;  %v1370_v45 = vadd.f32 -1.4531521, %v588_v56  ;;  %v1662_v39 = vpop.eup %1661  ;;  %v790_v9 = vmul.f32 %v1660_v36, %v710_v32  ;;  %v869_v56 = vmul.f32 0.5, %v2051_v43 }
 0x267   :  { %v699_v15 = vadd.f32 0.2548296, %v683_v24  ;;  %v618_v5 = vmul.f32 %v1654_v58, %v1368_v10  ;;  %v1664_v50 = vpop.eup %1663  ;;  %v870_v36 = vmul.f32 0.5, %v2100_v33  ;;  %vm824_vm13 = vcmp.ge.f32.partialorder %v2155_v13, 0.0 }
 0x268   :  { %v713_v40 = vmul.f32 %v2248_v52, %v697_v14  ;;  %v620_v37 = vmul.f32 %v1656_v27, %v1370_v45  ;;  %v1666_v51 = vpop.eup %1665  ;;  %v806_v29 = vsub.f32 1.0, %v790_v9  ;;  %v873_v61 = vmul.f32 0.5, %v2158_v42 }
 0x269   :  { %v715_v34 = vmul.f32 %v2251_v53, %v699_v15  ;;  %v634_v35 = vadd.f32 1.4214138, %v618_v5  ;;  %v1668_v20 = vpop.eup %1667  ;;  %v792_v28 = vmul.f32 %v1666_v51, %v712_v48  ;;  %v805_v53 = vsub.f32 1.0, %v789_v16 }
 0x26a   :  { %v793_v62 = vmul.f32 %v1662_v39, %v713_v40  ;;  %v636_v41 = vadd.f32 1.4214138, %v620_v37  ;;  %v791_v52 = vmul.f32 %v1668_v20, %v711_v44  ;;  %v838_v24 = vsub.f32 0.0, %v806_v29 }
 0x26b   :  { %v795_v30 = vmul.f32 %v1664_v50, %v715_v34  ;;  %v650_v55 = vmul.f32 %v1654_v58, %v634_v35  ;;  %v808_v19 = vsub.f32 1.0, %v792_v28  ;;  %v837_v45 = vsub.f32 0.0, %v805_v53 }
 0x26c   :  { %v652_v7 = vmul.f32 %v1656_v27, %v636_v41  ;;  %v809_v63 = vsub.f32 1.0, %v793_v62  ;;  %v807_v38 = vsub.f32 1.0, %v791_v52  ;;  %v875_v35 = vmul.f32 0.5, %v2161_v60 }
 0x26d   :  { %v1384_v31 = vadd.f32 -0.28449672, %v650_v55  ;;  %v811_v21 = vsub.f32 1.0, %v795_v30  ;;  %v1670_v14 = vpop.eup %1669  ;;  %v840_v11 = vsub.f32 0.0, %v808_v19  ;;  %vm826_vm14 = vcmp.ge.f32.partialorder %v2220_v46, 0.0 }
 0x26e   :  { %v1386_v54 = vadd.f32 -0.28449672, %v652_v7  ;;  %v841_v0 = vsub.f32 0.0, %v809_v63  ;;  %v1672_v15 = vpop.eup %1671  ;;  %v839_v5 = vsub.f32 0.0, %v807_v38  ;;  %vm828_vm15 = vcmp.ge.f32.partialorder %v2224_v18, 0.0 }
 0x26f   :  { %v682_v6 = vmul.f32 %v1654_v58, %v1384_v31  ;;  %v843_v10 = vsub.f32 0.0, %v811_v21  ;;  %v856_v44 = vsel %vm824_vm13, %v808_v19, %v840_v11  ;;  %v874_v42 = vmul.f32 0.5, %v2208_v17 }
 0x270   :  { %v684_v49 = vmul.f32 %v1656_v27, %v1386_v54  ;;  %v857_v48 = vsel %vm825_vm11, %v809_v63, %v841_v0  ;;  %v855_v1 = vsel %vm823_vm9, %v807_v38, %v839_v5  ;;  %v888_v51 = vadd.f32 1.0, %v856_v44 }
 0x271   :  { %v698_v23 = vadd.f32 0.2548296, %v682_v6  ;;  %v859_v37 = vsel %vm827_vm12, %v811_v21, %v843_v10  ;;  %v889_v33 = vadd.f32 1.0, %v857_v48  ;;  %v887_v9 = vadd.f32 1.0, %v855_v1  ;;  %v2319_v1 = vld [vmem:[#allocation4_spill] sm:$0xff] }
 0x272   :  { %v700_v59 = vadd.f32 0.2548296, %v684_v49  ;;  %v891_v62 = vadd.f32 1.0, %v859_v37  ;;  %v872_v55 = vmul.f32 0.5, %v2142_v47  ;;  %v876_v60 = vmul.f32 0.5, %v2214_v8 }
 0x273   :  { %v714_v22 = vmul.f32 %v1654_v58, %v698_v23  ;;  %v854_v58 = vsel %vm822_vm10, %v806_v29, %v838_v24  ;;  %v905_v20 = vmul.f32 %v889_v33, %v873_v61  ;;  %v871_v28 = vmul.f32 0.5, %v2060_v25  ;;  %v1320_v23 = vld [vmem:[%s2315_s6] ss:$0 sm:$0xff] }
 0x274   :  { %v716_v32 = vmul.f32 %v1656_v27, %v700_v59  ;;  %v853_v27 = vsel %vm821_vm8, %v805_v53, %v837_v45  ;;  %v886_v50 = vadd.f32 1.0, %v854_v58  ;;  %v907_v7 = vmul.f32 %v891_v62, %v875_v35 }
 0x275   :  { %v794_v43 = vmul.f32 %v1670_v14, %v714_v22  ;;  %v885_v41 = vadd.f32 1.0, %v853_v27  ;;  %v904_v63 = vmul.f32 %v888_v51, %v872_v55  ;;  %v903_v18 = vmul.f32 %v887_v9, %v871_v28 }
 0x276   :  { %v796_v40 = vmul.f32 %v1672_v15, %v716_v32  ;;  %v902_v46 = vmul.f32 %v886_v50, %v870_v36  ;;  %v133_v10 = vadd.f32 %v1720_v2, %v1320_v23  ;;  %v134_v14 = vadd.f32 %v1726_v4, %v1320_v23 }
 0x277   :  { %v810_v39 = vsub.f32 1.0, %v794_v43  ;;  %v901_v31 = vmul.f32 %v885_v41, %v869_v56  ;;  %v919_v6 = vpack.c.bf16 %v907_v7, %v903_v18  ;;  %v135_v61 = vadd.f32 %v1722_v3, %v1320_v23 }
 0x278   :  { %v812_v34 = vsub.f32 1.0, %v796_v40  ;;  %v136_v33 = vadd.f32 %v2319_v1, %v1320_v23 }
 0x279   :  { %v842_v12 = vsub.f32 0.0, %v810_v39  ;;  %v917_v17 = vpack.c.bf16 %v905_v20, %v901_v31 }
 0x27a   :  { %v844_v13 = vsub.f32 0.0, %v812_v34 }
 0x27b   :  { %v858_v26 = vsel %vm826_vm14, %v810_v39, %v842_v12 }
 0x27c   :  { %v890_v30 = vadd.f32 1.0, %v858_v26  ;;  %v860_v57 = vsel %vm828_vm15, %v812_v34, %v844_v13 }
 0x27d   :  { %v892_v16 = vadd.f32 1.0, %v860_v57 }
 0x27e   :  { %v906_v52 = vmul.f32 %v890_v30, %v874_v42 }
 0x27f   :  { %v908_v54 = vmul.f32 %v892_v16, %v876_v60 }
 0x280   :  { %v918_v29 = vpack.c.bf16 %v906_v52, %v902_v46 }
 0x281   :  { %v920_v21 = vpack.c.bf16 %v908_v54, %v904_v63 }
 0x282   :  { %1217 = vmatprep.mubr.bf16.mxu0 %v918_v29 }
 0x283   :  { %1266 = vmatprep.mubr.bf16.mxu1 %v920_v21  ;;  %1218 = vmatmul.mubr.bf16.gmra.mxu0 %v917_v17 }
 0x284   :  { %1267 = vmatmul.mubr.bf16.gmra.mxu1 %v919_v6 }
 0x310   :  { %v1478_v47 = vpop.f32.mrf.mxu0 }
 0x312   :  { %v1506_v8 = vpop.f32.mrf.mxu1  ;;  %v1479_v53 = vpop.f32.mrf.mxu0 }
 0x313   :  { %v1480_v25 = vadd.f32 %v1479_v53, %v1478_v47 }
 0x314   :  { %v1507_v19 = vpop.f32.mrf.mxu1  ;;  %v1481_v38 = vpop.f32.mrf.mxu0 }
 0x315   :  { %v1508_v49 = vadd.f32 %v1507_v19, %v1506_v8 }
 0x316   :  { %v1509_v56 = vpop.f32.mrf.mxu1  ;;  %v1482_v0 = vpop.f32.mrf.mxu0 }
 0x317   :  { %v1483_v59 = vadd.f32 %v1482_v0, %v1481_v38  ;;  %v1261_v22 = vadd.f32 %v1508_v49, %v1480_v25 }
 0x318   :  { %v1510_v24 = vpop.f32.mrf.mxu1 }
 0x319   :  { %v1511_v45 = vadd.f32 %v1510_v24, %v1509_v56  ;;  %v1275_v32 = vadd.f32 %v1261_v22, %v133_v10 }
 0x31b   :  { %v1264_v11 = vadd.f32 %v1511_v45, %v1483_v59 }
 0x31d   :  { %v1276_v15 = vadd.f32 %v1264_v11, %v134_v14 }
 0x31f   :  { %v1452_v5 = vpack.c.bf16 %v1276_v15, %v1275_v32 }
 0x321   :  { %1453 = vst [vmem:[%s2316_s7] sm:$0xff] %v1452_v5  }
 0x343   :  { %v1484_v43 = vpop.f32.mrf.mxu0 }
 0x344   :  { %v1512_v36 = vpop.f32.mrf.mxu1 }
 0x345   :  { %v1485_v48 = vpop.f32.mrf.mxu0 }
 0x346   :  { %v1513_v40 = vpop.f32.mrf.mxu1  ;;  %v1486_v58 = vadd.f32 %v1485_v48, %v1484_v43 }
 0x347   :  { %v1514_v37 = vadd.f32 %v1513_v40, %v1512_v36  ;;  %v1487_v39 = vpop.f32.mrf.mxu0 }
 0x348   :  { %v1515_v2 = vpop.f32.mrf.mxu1 }
 0x349   :  { %v1488_v27 = vpop.f32.mrf.mxu0  ;;  %v1269_v34 = vadd.f32 %v1514_v37, %v1486_v58 }
 0x34a   :  { %v1489_v44 = vadd.f32 %v1488_v27, %v1487_v39  ;;  %v1516_v4 = vpop.f32.mrf.mxu1 }
 0x34b   :  { %v1517_v35 = vadd.f32 %v1516_v4, %v1515_v2  ;;  %v1277_v50 = vadd.f32 %v1269_v34, %v135_v61 }
 0x34d   :  { %v1272_v12 = vadd.f32 %v1517_v35, %v1489_v44 }
 0x34f   :  { %v1278_v62 = vadd.f32 %v1272_v12, %v136_v33 }
 0x351   :  { %v1457_v13 = vpack.c.bf16 %v1278_v62, %v1277_v50 }
 0x353   :  { %1461 = vst [vmem:[%s2316_s7 + $0x8] sm:$0xff] %v1457_v13  }

// kernel: insect_model_forward.15
= control target key start
LH: loop header
LB: loop body
LE: loop exit
PB: predicated region body
PF: predicated region fallthrough
CT: control target
= control target key end

     0   :  { %vm24_vm0 = vcmask 1041408   ;;  %s331_s0 = inlined_call_operand.vmem [shape: bf16[2,128], index: 0, kind: input, shape index: {}]   ;;  %s332_s1 = inlined_call_operand.vmem [shape: f32[1,128], index: 1, kind: input, shape index: {}]   ;;  %s333_s2 = inlined_call_operand.vmem [shape: f32[1,128], index: 2, kind: input, shape index: {}]   ;;  %s334_s3 = inlined_call_operand.vmem [shape: bf16[128,128], index: 3, kind: input, shape index: {}]   ;;  %s335_s4 = inlined_call_operand.vmem [shape: f32[1,128], index: 4, kind: input, shape index: {}]   ;;  %s336_s5 = inlined_call_operand.hbm [shape: f32[2,128], index: 5, kind: output, shape index: {}]  }
   0x1   :  { %v22_v0 = vld [vmem:[%s331_s0] sm:$0x1] }
   0x2   :  { %v23_v1 = vunpack.c.l.bf16 %v22_v0 }
   0x4   :  { %v25_v2 = vsel %vm24_vm0, %v23_v1, 0.0 }
   0x5   :  { %26 = vadd.xlane.f32.xlu0 %v25_v2 }
   0x6   :  { %10 = vsyncpa [#allocation3], 0  ;;  %v225_v3 = vld [vmem:[%s334_s3 + $0x38] sm:$0xff]   ;;  %v257_v4 = vmov 0.0   ;;  %v226_v5 = vld [vmem:[%s334_s3 + $0x30] sm:$0xff]   ;;  %vm258_vm1 = vmmov 0  }
   0x7   :  { %202 = vmatprep.subr.bf16.mxu0 %v257_v4  ;;  %v227_v11 = vld [vmem:[%s334_s3 + $0x28] sm:$0xff]   ;;  %v228_v12 = vld [vmem:[%s334_s3 + $0x20] sm:$0xff]   ;;  %218 = vmatprep.mubr.msk.bf16.mxu0 %vm258_vm1, %v257_v4  ;;  %v229_v13 = vld [vmem:[%s334_s3 + $0x18] sm:$0xff]   ;;  %s259_s15 = smov [#allocation2]  }
   0x8   :  { %203 = vmatpush3.bf16.msra.mxu0 %v225_v3  ;;  %v230_v14 = vld [vmem:[%s334_s3 + $0x10] sm:$0xff]   ;;  %v231_v15 = vld [vmem:[%s334_s3 + $0x8] sm:$0xff]   ;;  %v232_v16 = vld [vmem:[%s334_s3] sm:$0xff]   ;;  %s174_s16 = sshll.u32 %s259_s15, 4  ;;  %s175_s16 = int_to_ptr.vmem [resolvable:$true] %s174_s16 }
   0x9   :  { %204 = vmatprep.subr.bf16.mxu0 %v257_v4  ;;  %v182_v21 = vld [vmem:[%s332_s1] ss:$0 sm:$0xff]  ;;  %s235_s1 = scalar_lea.vmem %s175_s16, 32  ;;  %p240_p1 = scmp.lt.s32.totalorder %s175_s16, %s175_s16 }
   0xa   :  { %v183_v23 = vld [vmem:[%s333_s2] ss:$0 sm:$0xff]  ;;  %p236_p0 = scmp.ne.s32.totalorder %s175_s16, %s235_s1  ;;  %p241_p2 = scmp.lt.s32.totalorder %s235_s1, %s235_s1 }
   0xb   :  { %v184_v27 = vld [vmem:[%s335_s4] ss:$0 sm:$0xff] }
   0xc   :  { %205 = vmatpush3.bf16.msra.mxu0 %v226_v5  ;;  %p242_p3 = por %p241_p2, %p240_p1 }
   0xd   :  { %206 = vmatprep.subr.bf16.mxu0 %v257_v4 }
   0xe   :  { %p243_p4 = pnand %p242_p3, %p236_p0 }
  0x10   :  { %207 = vmatpush3.bf16.msra.mxu0 %v227_v11 }
  0x11   :  { %208 = vmatprep.subr.bf16.mxu0 %v257_v4 }
  0x14   :  { %209 = vmatpush3.bf16.msra.mxu0 %v228_v12 }
  0x15   :  { %210 = vmatprep.subr.bf16.mxu0 %v257_v4 }
  0x18   :  { %211 = vmatpush3.bf16.msra.mxu0 %v229_v13 }
  0x19   :  { %212 = vmatprep.subr.bf16.mxu0 %v257_v4 }
  0x1c   :  { %213 = vmatpush3.bf16.msra.mxu0 %v230_v14 }
  0x1d   :  { %214 = vmatprep.subr.bf16.mxu0 %v257_v4 }
  0x20   :  { %215 = vmatpush3.bf16.msra.mxu0 %v231_v15 }
  0x21   :  { %216 = vmatprep.subr.bf16.mxu0 %v257_v4 }
  0x24   :  { %217 = vmatpush3.bf16.msra.mxu0 %v232_v16 }
  0x8e   :  { %v27_v6 = vpop.xlane.xlu0 %26 }
  0x8f   :  { %v29_v7 = vmul.f32 0.0078125, %v27_v6 }
  0x91   :  { %v30_v8 = vsub.f32 %v23_v1, %v29_v7 }
  0x93   :  { %v31_v9 = vmul.f32 %v30_v8, %v30_v8 }
  0x95   :  { %v32_v10 = vsel %vm24_vm0, %v31_v9, 0.0 }
  0x96   :  { %33 = vadd.xlane.f32.xlu0 %v32_v10 }
 0x11f   :  { %v34_v17 = vpop.xlane.xlu0 %33 }
 0x120   :  { %v35_v18 = vmul.f32 0.0078125, %v34_v17 }
 0x122   :  { %v36_v19 = vadd.f32 1e-06, %v35_v18 }
 0x124   :  { %233 = vrsqrt.f32 %v36_v19 }
 0x131   :  { %v234_v20 = vpop.eup %233 }
 0x132   :  { %v38_v22 = vmul.f32 %v234_v20, %v30_v8 }
 0x134   :  { %v46_v24 = vmul.f32 %v182_v21, %v38_v22 }
 0x136   :  { %v54_v25 = vadd.f32 %v183_v23, %v46_v24 }
 0x138   :  { %v55_v26 = vpack.c.bf16 %v54_v25, %v54_v25 }
 0x13a   :  { %219 = vmatmul.mubr.bf16.vlgmr.msra.gmra.mxu0 %v55_v26 }
 0x1fa   :  { %v161_v28 = vpop.f32.mrf.mxu0 }
 0x1fb   :  { %v162_v29 = vadd.f32 %v184_v27, %v161_v28 }
 0x1fc   :  { %v220_v30 = vpop.f32.mrf.mxu0 }
 0x1fd   :  { %167 = vst [vmem:[#allocation2] sm:$0x3] %v162_v29 }
 0x1fe   :  { %v164_v31 = vpop.f32.mrf.mxu0 }
 0x1ff   :  { %246 = shalt.err (!%p243_p4)
}
 0x200   :  { %177 = dma.vmem_to_hbm [thread:$0]  %s175_s16, 32, %s336_s5, [#allocation3]   ;;  %v221_v32 = vpop.f32.mrf.mxu0 }
 0x201   :  { %255 = dma.done.wait [#allocation3], 32  }
 0x202   :  { %256 = vsyncadd [#allocation3], 4294967264 }
 0x203   :  { %181 = vsyncpa [#allocation3], 1 }

</bundles_post_ra>
